<compile_context>
chip_gen: v6e
topology: v6e:2x2x1
jax: 0.10.0
libtpu: 0.0.40
codegen_flags: <defaults>
</compile_context>

<pallas_src>
import functools

import jax
import jax.numpy as jnp
import numpy as np
from jax.experimental import pallas as pl
from jax.experimental.pallas import tpu as pltpu

KS = 3          # kernel_size=3, stride=1, padding=1
LN_EPS = 1e-5   # nn.LayerNorm default eps


def _silu(x):
    # exp runs on the EUP slot; keep the reciprocal exact to stay well within
    # the reference tolerance.
    return x * (1.0 / (1.0 + jnp.exp(-x)))


def fused_block_kernel(x_ref, g_ref, b_ref, w1_ref, b1_ref, w2t_ref, b2_ref,
                       o_ref, xn_ref, y1_ref, *, normalize):
    # x_ref   : (1, H, W, Cin)      unpadded input sample (NHWC)
    # g_ref   : (H, W, Cin)         LayerNorm gamma (HWC)
    # b_ref   : (H, W, Cin)         LayerNorm beta  (HWC)
    # w1_ref  : (9, Cin, C1)        conv1 taps, tap = kh*3 + kw
    # b1_ref  : (1, C1)
    # w2t_ref : (9, C2, C1)         conv2 taps, per-tap transposed (C2, C1)
    # b2_ref  : (C2, 1)
    # o_ref   : (1, C2, H*W)        channel-major, lane/sublane-dense output
    # xn_ref  : VMEM (H+2, W+2, Cin)  zero-padded LN output (conv1 halo)
    # y1_ref  : VMEM (H+2, W+2, C1)   zero-padded conv1+SiLU output (conv2 halo)
    _, H, W, Cin = x_ref.shape
    C1 = y1_ref.shape[-1]
    C2 = w2t_ref.shape[1]

    xv = x_ref[0].astype(jnp.float32)                       # (H, W, Cin)

    # ---- LayerNorm over the whole sample (matches nn.LayerNorm((C,H,W))) ----
    if normalize:
        mean = jnp.mean(xv)
        diff = xv - mean
        var = jnp.mean(diff * diff)                         # biased, like torch
        xin = diff * jax.lax.rsqrt(var + LN_EPS) * g_ref[...] + b_ref[...]
    else:
        xin = xv

    # Zero the padded scratch every step, then write the interior: the border
    # is exact zero padding for conv1.
    xn_ref[...] = jnp.zeros_like(xn_ref)
    xn_ref[1:1 + H, 1:1 + W, :] = xin

    # ---- conv1 + bias + SiLU (pixel-major accumulate, f32) ----
    acc1 = jnp.zeros((H * W, C1), jnp.float32)
    for kh in range(KS):
        for kw in range(KS):
            win = xn_ref[kh:kh + H, kw:kw + W, :].reshape(H * W, Cin)
            acc1 = acc1 + jnp.dot(win, w1_ref[kh * KS + kw],
                                  preferred_element_type=jnp.float32)
    y1 = _silu(acc1 + b1_ref[...])                          # (H*W, C1)

    y1_ref[...] = jnp.zeros_like(y1_ref)
    y1_ref[1:1 + H, 1:1 + W, :] = y1.reshape(H, W, C1)

    # ---- conv2 + bias + SiLU, channel-major output (C2, H*W) ----
    # NT dot_general (contract the C1 dims) so the result is already NCHW-ish
    # and the output store is a dense (8, 256) slab.
    acc2 = jnp.zeros((C2, H * W), jnp.float32)
    for kh in range(KS):
        for kw in range(KS):
            win = y1_ref[kh:kh + H, kw:kw + W, :].reshape(H * W, C1)
            acc2 = acc2 + jax.lax.dot_general(
                w2t_ref[kh * KS + kw], win,
                dimension_numbers=(((1,), (1,)), ((), ())),
                preferred_element_type=jnp.float32)
    y2 = _silu(acc2 + b2_ref[...])                          # (C2, H*W)

    o_ref[0] = y2.astype(o_ref.dtype)


def prepare_block_params(params):
    """One-time parameter preprocessing (outside the per-call path)."""
    c1, cin = params["w1"].shape[0], params["w1"].shape[1]
    c2 = params["w2"].shape[0]
    return {
        "gamma_hwc": jnp.transpose(params["ln_gamma"], (1, 2, 0)),   # (H,W,C)
        "beta_hwc": jnp.transpose(params["ln_beta"], (1, 2, 0)),
        # (C1, Cin, 3, 3) -> (9, Cin, C1), tap = kh*3 + kw
        "w1_taps": jnp.transpose(params["w1"], (2, 3, 1, 0)).reshape(KS * KS, cin, c1),
        "b1": params["b1"].reshape(1, c1),
        # (C2, C1, 3, 3) -> (9, C2, C1) (per-tap transposed for the NT dot)
        "w2_taps_t": jnp.transpose(params["w2"], (2, 3, 0, 1)).reshape(KS * KS, c2, c1),
        "b2": params["b2"].reshape(c2, 1),
    }


def my_block_forward(x_nchw, prep, normalize=True):
    """MyBlock.forward: LayerNorm -> conv1 -> SiLU -> conv2 -> SiLU (NCHW in/out)."""
    N, Cin, H, W = x_nchw.shape
    C1 = prep["w1_taps"].shape[-1]
    C2 = prep["w2_taps_t"].shape[1]
    x = jnp.transpose(x_nchw, (0, 2, 3, 1))                  # NCHW -> NHWC (glue)

    kernel = functools.partial(fused_block_kernel, normalize=normalize)
    out = pl.pallas_call(
        kernel,
        out_shape=jax.ShapeDtypeStruct((N, C2, H * W), jnp.float32),
        grid=(N,),
        in_specs=[
            pl.BlockSpec((1, H, W, Cin), lambda n: (n, 0, 0, 0)),
            pl.BlockSpec((H, W, Cin), lambda n: (0, 0, 0)),
            pl.BlockSpec((H, W, Cin), lambda n: (0, 0, 0)),
            pl.BlockSpec((KS * KS, Cin, C1), lambda n: (0, 0, 0)),
            pl.BlockSpec((1, C1), lambda n: (0, 0)),
            pl.BlockSpec((KS * KS, C2, C1), lambda n: (0, 0, 0)),
            pl.BlockSpec((C2, 1), lambda n: (0, 0)),
        ],
        out_specs=pl.BlockSpec((1, C2, H * W), lambda n: (n, 0, 0)),
        scratch_shapes=[
            pltpu.VMEM((H + 2, W + 2, Cin), jnp.float32),
            pltpu.VMEM((H + 2, W + 2, C1), jnp.float32),
        ],
        compiler_params=pltpu.CompilerParams(dimension_semantics=("parallel",)),
    )(x, prep["gamma_hwc"], prep["beta_hwc"], prep["w1_taps"], prep["b1"],
      prep["w2_taps_t"], prep["b2"])

    return out.reshape(N, C2, H, W)                          # already NCHW


def reference_forward(x, params):
    """Pure-JAX reference matching the PyTorch module (NCHW)."""
    mean = jnp.mean(x, axis=(1, 2, 3), keepdims=True)
    var = jnp.mean((x - mean) ** 2, axis=(1, 2, 3), keepdims=True)
    xn = (x - mean) / jnp.sqrt(var + LN_EPS)
    xn = xn * params["ln_gamma"][None] + params["ln_beta"][None]

    def conv(z, w, b):
        y = jax.lax.conv_general_dilated(
            z, w, window_strides=(1, 1), padding=((1, 1), (1, 1)),
            dimension_numbers=("NCHW", "OIHW", "NCHW"))
        return y + b[None, :, None, None]

    y = conv(xn, params["w1"], params["b1"])
    y = y * jax.nn.sigmoid(y)
    y = conv(y, params["w2"], params["b2"])
    y = y * jax.nn.sigmoid(y)
    return y


if __name__ == "__main__":
    N, C_IN, C_OUT, H, W = 2, 4, 8, 16, 16   # MyBlock(shape=(4,16,16), in_c=4, out_c=8)
    key = jax.random.PRNGKey(0)
    kx, kg, kb, kw1, kb1, kw2, kb2 = jax.random.split(key, 7)

    x = jax.random.normal(kx, (N, C_IN, H, W), jnp.float32)
    params = {
        "ln_gamma": 1.0 + 0.1 * jax.random.normal(kg, (C_IN, H, W), jnp.float32),
        "ln_beta": 0.1 * jax.random.normal(kb, (C_IN, H, W), jnp.float32),
        "w1": 0.2 * jax.random.normal(kw1, (C_OUT, C_IN, KS, KS), jnp.float32),
        "b1": 0.1 * jax.random.normal(kb1, (C_OUT,), jnp.float32),
        "w2": 0.2 * jax.random.normal(kw2, (C_OUT, C_OUT, KS, KS), jnp.float32),
        "b2": 0.1 * jax.random.normal(kb2, (C_OUT,), jnp.float32),
    }

    prep = prepare_block_params(params)
    out = jax.block_until_ready(my_block_forward(x, prep, normalize=True))
    ref = jax.block_until_ready(reference_forward(x, params))
    np.testing.assert_allclose(np.asarray(out), np.asarray(ref), atol=2e-3, rtol=2e-3)
    print("KERNEL_OK")
</pallas_src>

<mosaic_0001>
module attributes {stable_mosaic.version = 11 : i64} {
  func.func @fused_block_kernel(%arg0: i32, %arg1: memref<1x16x16x4xf32, #tpu.memory_space<vmem>>, %arg2: memref<16x16x4xf32, #tpu.memory_space<vmem>>, %arg3: memref<16x16x4xf32, #tpu.memory_space<vmem>>, %arg4: memref<9x4x8xf32, #tpu.memory_space<vmem>>, %arg5: memref<1x8xf32, #tpu.memory_space<vmem>>, %arg6: memref<9x8x8xf32, #tpu.memory_space<vmem>>, %arg7: memref<8x1xf32, #tpu.memory_space<vmem>>, %arg8: memref<1x8x256xf32, #tpu.memory_space<vmem>>, %arg9: memref<18x18x4xf32, #tpu.memory_space<vmem>>, %arg10: memref<18x18x8xf32, #tpu.memory_space<vmem>>) attributes {dimension_semantics = [#tpu.dimension_semantics<parallel>], iteration_bounds = array<i64: 2>, scalar_prefetch = 0 : i64, scratch_operands = 2 : i64, tpu.core_type = #tpu.core_type<tc>, window_params = [{transform_indices = @transform_0, window_bounds = array<i64: 1, 16, 16, 4>}, {pipeline_mode = #tpu.pipeline_mode<synchronous>, transform_indices = @transform_1, window_bounds = array<i64: 16, 16, 4>}, {pipeline_mode = #tpu.pipeline_mode<synchronous>, transform_indices = @transform_2, window_bounds = array<i64: 16, 16, 4>}, {pipeline_mode = #tpu.pipeline_mode<synchronous>, transform_indices = @transform_3, window_bounds = array<i64: 9, 4, 8>}, {pipeline_mode = #tpu.pipeline_mode<synchronous>, transform_indices = @transform_4, window_bounds = array<i64: 1, 8>}, {pipeline_mode = #tpu.pipeline_mode<synchronous>, transform_indices = @transform_5, window_bounds = array<i64: 9, 8, 8>}, {pipeline_mode = #tpu.pipeline_mode<synchronous>, transform_indices = @transform_6, window_bounds = array<i64: 8, 1>}, {transform_indices = @transform_7, window_bounds = array<i64: 1, 8, 256>}]} {
    %c0 = arith.constant 0 : index
    %c0_0 = arith.constant 0 : index
    %c0_1 = arith.constant 0 : index
    %c0_2 = arith.constant 0 : index
    %0 = vector.load %arg1[%c0, %c0_0, %c0_1, %c0_2] : memref<1x16x16x4xf32, #tpu.memory_space<vmem>>, vector<1x16x16x4xf32>
    %1 = vector.shape_cast %0 : vector<1x16x16x4xf32> to vector<16x16x4xf32>
    %2 = vector.shape_cast %1 : vector<16x16x4xf32> to vector<1x16x16x4xf32>
    %cst = arith.constant dense<0.000000e+00> : vector<1xf32>
    %3 = vector.multi_reduction <add>, %2, %cst [1, 2, 3] : vector<1x16x16x4xf32> to vector<1xf32>
    %4 = vector.shape_cast %3 : vector<1xf32> to vector<1x1x1x1xf32>
    %5 = vector.extract %4[0, 0, 0, 0] : f32 from vector<1x1x1x1xf32>
    %cst_3 = arith.constant 1.024000e+03 : f32
    %6 = arith.divf %5, %cst_3 : f32
    %7 = vector.broadcast %6 : f32 to vector<16x16x4xf32>
    %8 = arith.subf %1, %7 : vector<16x16x4xf32>
    %9 = arith.mulf %8, %8 : vector<16x16x4xf32>
    %10 = vector.shape_cast %9 : vector<16x16x4xf32> to vector<1x16x16x4xf32>
    %cst_4 = arith.constant dense<0.000000e+00> : vector<1xf32>
    %11 = vector.multi_reduction <add>, %10, %cst_4 [1, 2, 3] : vector<1x16x16x4xf32> to vector<1xf32>
    %12 = vector.shape_cast %11 : vector<1xf32> to vector<1x1x1x1xf32>
    %13 = vector.extract %12[0, 0, 0, 0] : f32 from vector<1x1x1x1xf32>
    %cst_5 = arith.constant 1.024000e+03 : f32
    %14 = arith.divf %13, %cst_5 : f32
    %cst_6 = arith.constant 9.99999974E-6 : f32
    %15 = arith.addf %14, %cst_6 : f32
    %16 = math.rsqrt %15 : f32
    %17 = vector.broadcast %16 : f32 to vector<16x16x4xf32>
    %18 = arith.mulf %8, %17 : vector<16x16x4xf32>
    %c0_7 = arith.constant 0 : index
    %c0_8 = arith.constant 0 : index
    %c0_9 = arith.constant 0 : index
    %19 = vector.load %arg2[%c0_7, %c0_8, %c0_9] : memref<16x16x4xf32, #tpu.memory_space<vmem>>, vector<16x16x4xf32>
    %20 = arith.mulf %18, %19 : vector<16x16x4xf32>
    %c0_10 = arith.constant 0 : index
    %c0_11 = arith.constant 0 : index
    %c0_12 = arith.constant 0 : index
    %21 = vector.load %arg3[%c0_10, %c0_11, %c0_12] : memref<16x16x4xf32, #tpu.memory_space<vmem>>, vector<16x16x4xf32>
    %22 = arith.addf %20, %21 : vector<16x16x4xf32>
    %cst_13 = arith.constant 0.000000e+00 : f32
    %23 = vector.broadcast %cst_13 : f32 to vector<18x18x4xf32>
    %c0_14 = arith.constant 0 : index
    %c0_15 = arith.constant 0 : index
    %c0_16 = arith.constant 0 : index
    %24 = vector.load %arg9[%c0_14, %c0_15, %c0_16] : memref<18x18x4xf32, #tpu.memory_space<vmem>>, vector<18x18x4xf32>
    tpu.vector_store %arg9[%c0_14, %c0_15, %c0_16], %23 {strides = array<i32>} : memref<18x18x4xf32, #tpu.memory_space<vmem>>, vector<18x18x4xf32>,
    %c1 = arith.constant 1 : index
    %c1_17 = arith.constant 1 : index
    %c0_18 = arith.constant 0 : index
    %25 = vector.load %arg9[%c1, %c1_17, %c0_18] : memref<18x18x4xf32, #tpu.memory_space<vmem>>, vector<16x16x4xf32>
    tpu.vector_store %arg9[%c1, %c1_17, %c0_18], %22 {strides = array<i32>} : memref<18x18x4xf32, #tpu.memory_space<vmem>>, vector<16x16x4xf32>,
    %cst_19 = arith.constant 0.000000e+00 : f32
    %26 = vector.broadcast %cst_19 : f32 to vector<256x8xf32>
    %c0_20 = arith.constant 0 : index
    %c0_21 = arith.constant 0 : index
    %c0_22 = arith.constant 0 : index
    %27 = vector.load %arg9[%c0_20, %c0_21, %c0_22] : memref<18x18x4xf32, #tpu.memory_space<vmem>>, vector<16x16x4xf32>
    %28 = vector.shape_cast %27 : vector<16x16x4xf32> to vector<256x4xf32>
    %c0_23 = arith.constant 0 : index
    %c0_24 = arith.constant 0 : index
    %c0_25 = arith.constant 0 : index
    %29 = vector.load %arg4[%c0_23, %c0_24, %c0_25] : memref<9x4x8xf32, #tpu.memory_space<vmem>>, vector<1x4x8xf32>
    %30 = vector.shape_cast %29 : vector<1x4x8xf32> to vector<4x8xf32>
    %cst_26 = arith.constant dense<0.000000e+00> : vector<256x8xf32>
    %31 = tpu.matmul %28, %30, %cst_26 {dimension_numbers = #tpu.dot_dimension_numbers<[1], [0], [0], [1], [0, 0, 1, 1], [], []>} : vector<256x4xf32>, vector<4x8xf32>, vector<256x8xf32> -> vector<256x8xf32>
    %32 = arith.addf %26, %31 : vector<256x8xf32>
    %c0_27 = arith.constant 0 : index
    %c1_28 = arith.constant 1 : index
    %c0_29 = arith.constant 0 : index
    %33 = vector.load %arg9[%c0_27, %c1_28, %c0_29] : memref<18x18x4xf32, #tpu.memory_space<vmem>>, vector<16x16x4xf32>
    %34 = vector.shape_cast %33 : vector<16x16x4xf32> to vector<256x4xf32>
    %c1_30 = arith.constant 1 : index
    %c0_31 = arith.constant 0 : index
    %c0_32 = arith.constant 0 : index
    %35 = vector.load %arg4[%c1_30, %c0_31, %c0_32] : memref<9x4x8xf32, #tpu.memory_space<vmem>>, vector<1x4x8xf32>
    %36 = vector.shape_cast %35 : vector<1x4x8xf32> to vector<4x8xf32>
    %cst_33 = arith.constant dense<0.000000e+00> : vector<256x8xf32>
    %37 = tpu.matmul %34, %36, %cst_33 {dimension_numbers = #tpu.dot_dimension_numbers<[1], [0], [0], [1], [0, 0, 1, 1], [], []>} : vector<256x4xf32>, vector<4x8xf32>, vector<256x8xf32> -> vector<256x8xf32>
    %38 = arith.addf %32, %37 : vector<256x8xf32>
    %c0_34 = arith.constant 0 : index
    %c2 = arith.constant 2 : index
    %c0_35 = arith.constant 0 : index
    %39 = vector.load %arg9[%c0_34, %c2, %c0_35] : memref<18x18x4xf32, #tpu.memory_space<vmem>>, vector<16x16x4xf32>
    %40 = vector.shape_cast %39 : vector<16x16x4xf32> to vector<256x4xf32>
    %c2_36 = arith.constant 2 : index
    %c0_37 = arith.constant 0 : index
    %c0_38 = arith.constant 0 : index
    %41 = vector.load %arg4[%c2_36, %c0_37, %c0_38] : memref<9x4x8xf32, #tpu.memory_space<vmem>>, vector<1x4x8xf32>
    %42 = vector.shape_cast %41 : vector<1x4x8xf32> to vector<4x8xf32>
    %cst_39 = arith.constant dense<0.000000e+00> : vector<256x8xf32>
    %43 = tpu.matmul %40, %42, %cst_39 {dimension_numbers = #tpu.dot_dimension_numbers<[1], [0], [0], [1], [0, 0, 1, 1], [], []>} : vector<256x4xf32>, vector<4x8xf32>, vector<256x8xf32> -> vector<256x8xf32>
    %44 = arith.addf %38, %43 : vector<256x8xf32>
    %c1_40 = arith.constant 1 : index
    %c0_41 = arith.constant 0 : index
    %c0_42 = arith.constant 0 : index
    %45 = vector.load %arg9[%c1_40, %c0_41, %c0_42] : memref<18x18x4xf32, #tpu.memory_space<vmem>>, vector<16x16x4xf32>
    %46 = vector.shape_cast %45 : vector<16x16x4xf32> to vector<256x4xf32>
    %c3 = arith.constant 3 : index
    %c0_43 = arith.constant 0 : index
    %c0_44 = arith.constant 0 : index
    %47 = vector.load %arg4[%c3, %c0_43, %c0_44] : memref<9x4x8xf32, #tpu.memory_space<vmem>>, vector<1x4x8xf32>
    %48 = vector.shape_cast %47 : vector<1x4x8xf32> to vector<4x8xf32>
    %cst_45 = arith.constant dense<0.000000e+00> : vector<256x8xf32>
    %49 = tpu.matmul %46, %48, %cst_45 {dimension_numbers = #tpu.dot_dimension_numbers<[1], [0], [0], [1], [0, 0, 1, 1], [], []>} : vector<256x4xf32>, vector<4x8xf32>, vector<256x8xf32> -> vector<256x8xf32>
    %50 = arith.addf %44, %49 : vector<256x8xf32>
    %c1_46 = arith.constant 1 : index
    %c1_47 = arith.constant 1 : index
    %c0_48 = arith.constant 0 : index
    %51 = vector.load %arg9[%c1_46, %c1_47, %c0_48] : memref<18x18x4xf32, #tpu.memory_space<vmem>>, vector<16x16x4xf32>
    %52 = vector.shape_cast %51 : vector<16x16x4xf32> to vector<256x4xf32>
    %c4 = arith.constant 4 : index
    %c0_49 = arith.constant 0 : index
    %c0_50 = arith.constant 0 : index
    %53 = vector.load %arg4[%c4, %c0_49, %c0_50] : memref<9x4x8xf32, #tpu.memory_space<vmem>>, vector<1x4x8xf32>
    %54 = vector.shape_cast %53 : vector<1x4x8xf32> to vector<4x8xf32>
    %cst_51 = arith.constant dense<0.000000e+00> : vector<256x8xf32>
    %55 = tpu.matmul %52, %54, %cst_51 {dimension_numbers = #tpu.dot_dimension_numbers<[1], [0], [0], [1], [0, 0, 1, 1], [], []>} : vector<256x4xf32>, vector<4x8xf32>, vector<256x8xf32> -> vector<256x8xf32>
    %56 = arith.addf %50, %55 : vector<256x8xf32>
    %c1_52 = arith.constant 1 : index
    %c2_53 = arith.constant 2 : index
    %c0_54 = arith.constant 0 : index
    %57 = vector.load %arg9[%c1_52, %c2_53, %c0_54] : memref<18x18x4xf32, #tpu.memory_space<vmem>>, vector<16x16x4xf32>
    %58 = vector.shape_cast %57 : vector<16x16x4xf32> to vector<256x4xf32>
    %c5 = arith.constant 5 : index
    %c0_55 = arith.constant 0 : index
    %c0_56 = arith.constant 0 : index
    %59 = vector.load %arg4[%c5, %c0_55, %c0_56] : memref<9x4x8xf32, #tpu.memory_space<vmem>>, vector<1x4x8xf32>
    %60 = vector.shape_cast %59 : vector<1x4x8xf32> to vector<4x8xf32>
    %cst_57 = arith.constant dense<0.000000e+00> : vector<256x8xf32>
    %61 = tpu.matmul %58, %60, %cst_57 {dimension_numbers = #tpu.dot_dimension_numbers<[1], [0], [0], [1], [0, 0, 1, 1], [], []>} : vector<256x4xf32>, vector<4x8xf32>, vector<256x8xf32> -> vector<256x8xf32>
    %62 = arith.addf %56, %61 : vector<256x8xf32>
    %c2_58 = arith.constant 2 : index
    %c0_59 = arith.constant 0 : index
    %c0_60 = arith.constant 0 : index
    %63 = vector.load %arg9[%c2_58, %c0_59, %c0_60] : memref<18x18x4xf32, #tpu.memory_space<vmem>>, vector<16x16x4xf32>
    %64 = vector.shape_cast %63 : vector<16x16x4xf32> to vector<256x4xf32>
    %c6 = arith.constant 6 : index
    %c0_61 = arith.constant 0 : index
    %c0_62 = arith.constant 0 : index
    %65 = vector.load %arg4[%c6, %c0_61, %c0_62] : memref<9x4x8xf32, #tpu.memory_space<vmem>>, vector<1x4x8xf32>
    %66 = vector.shape_cast %65 : vector<1x4x8xf32> to vector<4x8xf32>
    %cst_63 = arith.constant dense<0.000000e+00> : vector<256x8xf32>
    %67 = tpu.matmul %64, %66, %cst_63 {dimension_numbers = #tpu.dot_dimension_numbers<[1], [0], [0], [1], [0, 0, 1, 1], [], []>} : vector<256x4xf32>, vector<4x8xf32>, vector<256x8xf32> -> vector<256x8xf32>
    %68 = arith.addf %62, %67 : vector<256x8xf32>
    %c2_64 = arith.constant 2 : index
    %c1_65 = arith.constant 1 : index
    %c0_66 = arith.constant 0 : index
    %69 = vector.load %arg9[%c2_64, %c1_65, %c0_66] : memref<18x18x4xf32, #tpu.memory_space<vmem>>, vector<16x16x4xf32>
    %70 = vector.shape_cast %69 : vector<16x16x4xf32> to vector<256x4xf32>
    %c7 = arith.constant 7 : index
    %c0_67 = arith.constant 0 : index
    %c0_68 = arith.constant 0 : index
    %71 = vector.load %arg4[%c7, %c0_67, %c0_68] : memref<9x4x8xf32, #tpu.memory_space<vmem>>, vector<1x4x8xf32>
    %72 = vector.shape_cast %71 : vector<1x4x8xf32> to vector<4x8xf32>
    %cst_69 = arith.constant dense<0.000000e+00> : vector<256x8xf32>
    %73 = tpu.matmul %70, %72, %cst_69 {dimension_numbers = #tpu.dot_dimension_numbers<[1], [0], [0], [1], [0, 0, 1, 1], [], []>} : vector<256x4xf32>, vector<4x8xf32>, vector<256x8xf32> -> vector<256x8xf32>
    %74 = arith.addf %68, %73 : vector<256x8xf32>
    %c2_70 = arith.constant 2 : index
    %c2_71 = arith.constant 2 : index
    %c0_72 = arith.constant 0 : index
    %75 = vector.load %arg9[%c2_70, %c2_71, %c0_72] : memref<18x18x4xf32, #tpu.memory_space<vmem>>, vector<16x16x4xf32>
    %76 = vector.shape_cast %75 : vector<16x16x4xf32> to vector<256x4xf32>
    %c8 = arith.constant 8 : index
    %c0_73 = arith.constant 0 : index
    %c0_74 = arith.constant 0 : index
    %77 = vector.load %arg4[%c8, %c0_73, %c0_74] : memref<9x4x8xf32, #tpu.memory_space<vmem>>, vector<1x4x8xf32>
    %78 = vector.shape_cast %77 : vector<1x4x8xf32> to vector<4x8xf32>
    %cst_75 = arith.constant dense<0.000000e+00> : vector<256x8xf32>
    %79 = tpu.matmul %76, %78, %cst_75 {dimension_numbers = #tpu.dot_dimension_numbers<[1], [0], [0], [1], [0, 0, 1, 1], [], []>} : vector<256x4xf32>, vector<4x8xf32>, vector<256x8xf32> -> vector<256x8xf32>
    %80 = arith.addf %74, %79 : vector<256x8xf32>
    %c0_76 = arith.constant 0 : index
    %c0_77 = arith.constant 0 : index
    %81 = vector.load %arg5[%c0_76, %c0_77] : memref<1x8xf32, #tpu.memory_space<vmem>>, vector<1x8xf32>
    %82 = vector.broadcast %81 : vector<1x8xf32> to vector<256x8xf32>
    %83 = arith.addf %80, %82 : vector<256x8xf32>
    %cst_78 = arith.constant 0.000000e+00 : f32
    %84 = vector.broadcast %cst_78 : f32 to vector<256x8xf32>
    %85 = arith.subf %84, %83 : vector<256x8xf32>
    %86 = math.exp %85 : vector<256x8xf32>
    %cst_79 = arith.constant 1.000000e+00 : f32
    %87 = vector.broadcast %cst_79 : f32 to vector<256x8xf32>
    %88 = arith.addf %87, %86 : vector<256x8xf32>
    %cst_80 = arith.constant 1.000000e+00 : f32
    %89 = vector.broadcast %cst_80 : f32 to vector<256x8xf32>
    %90 = arith.divf %89, %88 : vector<256x8xf32>
    %91 = arith.mulf %83, %90 : vector<256x8xf32>
    %cst_81 = arith.constant 0.000000e+00 : f32
    %92 = vector.broadcast %cst_81 : f32 to vector<18x18x8xf32>
    %c0_82 = arith.constant 0 : index
    %c0_83 = arith.constant 0 : index
    %c0_84 = arith.constant 0 : index
    %93 = vector.load %arg10[%c0_82, %c0_83, %c0_84] : memref<18x18x8xf32, #tpu.memory_space<vmem>>, vector<18x18x8xf32>
    tpu.vector_store %arg10[%c0_82, %c0_83, %c0_84], %92 {strides = array<i32>} : memref<18x18x8xf32, #tpu.memory_space<vmem>>, vector<18x18x8xf32>,
    %94 = vector.shape_cast %91 : vector<256x8xf32> to vector<16x16x8xf32>
    %c1_85 = arith.constant 1 : index
    %c1_86 = arith.constant 1 : index
    %c0_87 = arith.constant 0 : index
    %95 = vector.load %arg10[%c1_85, %c1_86, %c0_87] : memref<18x18x8xf32, #tpu.memory_space<vmem>>, vector<16x16x8xf32>
    tpu.vector_store %arg10[%c1_85, %c1_86, %c0_87], %94 {strides = array<i32>} : memref<18x18x8xf32, #tpu.memory_space<vmem>>, vector<16x16x8xf32>,
    %cst_88 = arith.constant 0.000000e+00 : f32
    %96 = vector.broadcast %cst_88 : f32 to vector<8x256xf32>
    %c0_89 = arith.constant 0 : index
    %c0_90 = arith.constant 0 : index
    %c0_91 = arith.constant 0 : index
    %97 = vector.load %arg10[%c0_89, %c0_90, %c0_91] : memref<18x18x8xf32, #tpu.memory_space<vmem>>, vector<16x16x8xf32>
    %98 = vector.shape_cast %97 : vector<16x16x8xf32> to vector<256x8xf32>
    %c0_92 = arith.constant 0 : index
    %c0_93 = arith.constant 0 : index
    %c0_94 = arith.constant 0 : index
    %99 = vector.load %arg6[%c0_92, %c0_93, %c0_94] : memref<9x8x8xf32, #tpu.memory_space<vmem>>, vector<1x8x8xf32>
    %100 = vector.shape_cast %99 : vector<1x8x8xf32> to vector<8x8xf32>
    %cst_95 = arith.constant dense<0.000000e+00> : vector<8x256xf32>
    %101 = tpu.matmul %100, %98, %cst_95 {dimension_numbers = #tpu.dot_dimension_numbers<[1], [1], [0], [0], [0, 0, 1, 0], [], []>} : vector<8x8xf32>, vector<256x8xf32>, vector<8x256xf32> -> vector<8x256xf32>
    %102 = arith.addf %96, %101 : vector<8x256xf32>
    %c0_96 = arith.constant 0 : index
    %c1_97 = arith.constant 1 : index
    %c0_98 = arith.constant 0 : index
    %103 = vector.load %arg10[%c0_96, %c1_97, %c0_98] : memref<18x18x8xf32, #tpu.memory_space<vmem>>, vector<16x16x8xf32>
    %104 = vector.shape_cast %103 : vector<16x16x8xf32> to vector<256x8xf32>
    %c1_99 = arith.constant 1 : index
    %c0_100 = arith.constant 0 : index
    %c0_101 = arith.constant 0 : index
    %105 = vector.load %arg6[%c1_99, %c0_100, %c0_101] : memref<9x8x8xf32, #tpu.memory_space<vmem>>, vector<1x8x8xf32>
    %106 = vector.shape_cast %105 : vector<1x8x8xf32> to vector<8x8xf32>
    %cst_102 = arith.constant dense<0.000000e+00> : vector<8x256xf32>
    %107 = tpu.matmul %106, %104, %cst_102 {dimension_numbers = #tpu.dot_dimension_numbers<[1], [1], [0], [0], [0, 0, 1, 0], [], []>} : vector<8x8xf32>, vector<256x8xf32>, vector<8x256xf32> -> vector<8x256xf32>
    %108 = arith.addf %102, %107 : vector<8x256xf32>
    %c0_103 = arith.constant 0 : index
    %c2_104 = arith.constant 2 : index
    %c0_105 = arith.constant 0 : index
    %109 = vector.load %arg10[%c0_103, %c2_104, %c0_105] : memref<18x18x8xf32, #tpu.memory_space<vmem>>, vector<16x16x8xf32>
    %110 = vector.shape_cast %109 : vector<16x16x8xf32> to vector<256x8xf32>
    %c2_106 = arith.constant 2 : index
    %c0_107 = arith.constant 0 : index
    %c0_108 = arith.constant 0 : index
    %111 = vector.load %arg6[%c2_106, %c0_107, %c0_108] : memref<9x8x8xf32, #tpu.memory_space<vmem>>, vector<1x8x8xf32>
    %112 = vector.shape_cast %111 : vector<1x8x8xf32> to vector<8x8xf32>
    %cst_109 = arith.constant dense<0.000000e+00> : vector<8x256xf32>
    %113 = tpu.matmul %112, %110, %cst_109 {dimension_numbers = #tpu.dot_dimension_numbers<[1], [1], [0], [0], [0, 0, 1, 0], [], []>} : vector<8x8xf32>, vector<256x8xf32>, vector<8x256xf32> -> vector<8x256xf32>
    %114 = arith.addf %108, %113 : vector<8x256xf32>
    %c1_110 = arith.constant 1 : index
    %c0_111 = arith.constant 0 : index
    %c0_112 = arith.constant 0 : index
    %115 = vector.load %arg10[%c1_110, %c0_111, %c0_112] : memref<18x18x8xf32, #tpu.memory_space<vmem>>, vector<16x16x8xf32>
    %116 = vector.shape_cast %115 : vector<16x16x8xf32> to vector<256x8xf32>
    %c3_113 = arith.constant 3 : index
    %c0_114 = arith.constant 0 : index
    %c0_115 = arith.constant 0 : index
    %117 = vector.load %arg6[%c3_113, %c0_114, %c0_115] : memref<9x8x8xf32, #tpu.memory_space<vmem>>, vector<1x8x8xf32>
    %118 = vector.shape_cast %117 : vector<1x8x8xf32> to vector<8x8xf32>
    %cst_116 = arith.constant dense<0.000000e+00> : vector<8x256xf32>
    %119 = tpu.matmul %118, %116, %cst_116 {dimension_numbers = #tpu.dot_dimension_numbers<[1], [1], [0], [0], [0, 0, 1, 0], [], []>} : vector<8x8xf32>, vector<256x8xf32>, vector<8x256xf32> -> vector<8x256xf32>
    %120 = arith.addf %114, %119 : vector<8x256xf32>
    %c1_117 = arith.constant 1 : index
    %c1_118 = arith.constant 1 : index
    %c0_119 = arith.constant 0 : index
    %121 = vector.load %arg10[%c1_117, %c1_118, %c0_119] : memref<18x18x8xf32, #tpu.memory_space<vmem>>, vector<16x16x8xf32>
    %122 = vector.shape_cast %121 : vector<16x16x8xf32> to vector<256x8xf32>
    %c4_120 = arith.constant 4 : index
    %c0_121 = arith.constant 0 : index
    %c0_122 = arith.constant 0 : index
    %123 = vector.load %arg6[%c4_120, %c0_121, %c0_122] : memref<9x8x8xf32, #tpu.memory_space<vmem>>, vector<1x8x8xf32>
    %124 = vector.shape_cast %123 : vector<1x8x8xf32> to vector<8x8xf32>
    %cst_123 = arith.constant dense<0.000000e+00> : vector<8x256xf32>
    %125 = tpu.matmul %124, %122, %cst_123 {dimension_numbers = #tpu.dot_dimension_numbers<[1], [1], [0], [0], [0, 0, 1, 0], [], []>} : vector<8x8xf32>, vector<256x8xf32>, vector<8x256xf32> -> vector<8x256xf32>
    %126 = arith.addf %120, %125 : vector<8x256xf32>
    %c1_124 = arith.constant 1 : index
    %c2_125 = arith.constant 2 : index
    %c0_126 = arith.constant 0 : index
    %127 = vector.load %arg10[%c1_124, %c2_125, %c0_126] : memref<18x18x8xf32, #tpu.memory_space<vmem>>, vector<16x16x8xf32>
    %128 = vector.shape_cast %127 : vector<16x16x8xf32> to vector<256x8xf32>
    %c5_127 = arith.constant 5 : index
    %c0_128 = arith.constant 0 : index
    %c0_129 = arith.constant 0 : index
    %129 = vector.load %arg6[%c5_127, %c0_128, %c0_129] : memref<9x8x8xf32, #tpu.memory_space<vmem>>, vector<1x8x8xf32>
    %130 = vector.shape_cast %129 : vector<1x8x8xf32> to vector<8x8xf32>
    %cst_130 = arith.constant dense<0.000000e+00> : vector<8x256xf32>
    %131 = tpu.matmul %130, %128, %cst_130 {dimension_numbers = #tpu.dot_dimension_numbers<[1], [1], [0], [0], [0, 0, 1, 0], [], []>} : vector<8x8xf32>, vector<256x8xf32>, vector<8x256xf32> -> vector<8x256xf32>
    %132 = arith.addf %126, %131 : vector<8x256xf32>
    %c2_131 = arith.constant 2 : index
    %c0_132 = arith.constant 0 : index
    %c0_133 = arith.constant 0 : index
    %133 = vector.load %arg10[%c2_131, %c0_132, %c0_133] : memref<18x18x8xf32, #tpu.memory_space<vmem>>, vector<16x16x8xf32>
    %134 = vector.shape_cast %133 : vector<16x16x8xf32> to vector<256x8xf32>
    %c6_134 = arith.constant 6 : index
    %c0_135 = arith.constant 0 : index
    %c0_136 = arith.constant 0 : index
    %135 = vector.load %arg6[%c6_134, %c0_135, %c0_136] : memref<9x8x8xf32, #tpu.memory_space<vmem>>, vector<1x8x8xf32>
    %136 = vector.shape_cast %135 : vector<1x8x8xf32> to vector<8x8xf32>
    %cst_137 = arith.constant dense<0.000000e+00> : vector<8x256xf32>
    %137 = tpu.matmul %136, %134, %cst_137 {dimension_numbers = #tpu.dot_dimension_numbers<[1], [1], [0], [0], [0, 0, 1, 0], [], []>} : vector<8x8xf32>, vector<256x8xf32>, vector<8x256xf32> -> vector<8x256xf32>
    %138 = arith.addf %132, %137 : vector<8x256xf32>
    %c2_138 = arith.constant 2 : index
    %c1_139 = arith.constant 1 : index
    %c0_140 = arith.constant 0 : index
    %139 = vector.load %arg10[%c2_138, %c1_139, %c0_140] : memref<18x18x8xf32, #tpu.memory_space<vmem>>, vector<16x16x8xf32>
    %140 = vector.shape_cast %139 : vector<16x16x8xf32> to vector<256x8xf32>
    %c7_141 = arith.constant 7 : index
    %c0_142 = arith.constant 0 : index
    %c0_143 = arith.constant 0 : index
    %141 = vector.load %arg6[%c7_141, %c0_142, %c0_143] : memref<9x8x8xf32, #tpu.memory_space<vmem>>, vector<1x8x8xf32>
    %142 = vector.shape_cast %141 : vector<1x8x8xf32> to vector<8x8xf32>
    %cst_144 = arith.constant dense<0.000000e+00> : vector<8x256xf32>
    %143 = tpu.matmul %142, %140, %cst_144 {dimension_numbers = #tpu.dot_dimension_numbers<[1], [1], [0], [0], [0, 0, 1, 0], [], []>} : vector<8x8xf32>, vector<256x8xf32>, vector<8x256xf32> -> vector<8x256xf32>
    %144 = arith.addf %138, %143 : vector<8x256xf32>
    %c2_145 = arith.constant 2 : index
    %c2_146 = arith.constant 2 : index
    %c0_147 = arith.constant 0 : index
    %145 = vector.load %arg10[%c2_145, %c2_146, %c0_147] : memref<18x18x8xf32, #tpu.memory_space<vmem>>, vector<16x16x8xf32>
    %146 = vector.shape_cast %145 : vector<16x16x8xf32> to vector<256x8xf32>
    %c8_148 = arith.constant 8 : index
    %c0_149 = arith.constant 0 : index
    %c0_150 = arith.constant 0 : index
    %147 = vector.load %arg6[%c8_148, %c0_149, %c0_150] : memref<9x8x8xf32, #tpu.memory_space<vmem>>, vector<1x8x8xf32>
    %148 = vector.shape_cast %147 : vector<1x8x8xf32> to vector<8x8xf32>
    %cst_151 = arith.constant dense<0.000000e+00> : vector<8x256xf32>
    %149 = tpu.matmul %148, %146, %cst_151 {dimension_numbers = #tpu.dot_dimension_numbers<[1], [1], [0], [0], [0, 0, 1, 0], [], []>} : vector<8x8xf32>, vector<256x8xf32>, vector<8x256xf32> -> vector<8x256xf32>
    %150 = arith.addf %144, %149 : vector<8x256xf32>
    %c0_152 = arith.constant 0 : index
    %c0_153 = arith.constant 0 : index
    %151 = vector.load %arg7[%c0_152, %c0_153] : memref<8x1xf32, #tpu.memory_space<vmem>>, vector<8x1xf32>
    %152 = vector.broadcast %151 : vector<8x1xf32> to vector<8x256xf32>
    %153 = arith.addf %150, %152 : vector<8x256xf32>
    %cst_154 = arith.constant 0.000000e+00 : f32
    %154 = vector.broadcast %cst_154 : f32 to vector<8x256xf32>
    %155 = arith.subf %154, %153 : vector<8x256xf32>
    %156 = math.exp %155 : vector<8x256xf32>
    %cst_155 = arith.constant 1.000000e+00 : f32
    %157 = vector.broadcast %cst_155 : f32 to vector<8x256xf32>
    %158 = arith.addf %157, %156 : vector<8x256xf32>
    %cst_156 = arith.constant 1.000000e+00 : f32
    %159 = vector.broadcast %cst_156 : f32 to vector<8x256xf32>
    %160 = arith.divf %159, %158 : vector<8x256xf32>
    %161 = arith.mulf %153, %160 : vector<8x256xf32>
    %c0_157 = arith.constant 0 : index
    %c0_158 = arith.constant 0 : index
    %c0_159 = arith.constant 0 : index
    %162 = vector.load %arg8[%c0_157, %c0_158, %c0_159] : memref<1x8x256xf32, #tpu.memory_space<vmem>>, vector<1x8x256xf32>
    %163 = vector.shape_cast %162 : vector<1x8x256xf32> to vector<8x256xf32>
    %164 = vector.shape_cast %161 : vector<8x256xf32> to vector<1x8x256xf32>
    tpu.vector_store %arg8[%c0_157, %c0_158, %c0_159], %164 {strides = array<i32>} : memref<1x8x256xf32, #tpu.memory_space<vmem>>, vector<1x8x256xf32>,
    return
  }
  func.func @transform_0(%arg0: i32) -> (i32, i32, i32, i32) {
    %c0_i32 = arith.constant 0 : i32
    %c0_i32_0 = arith.constant 0 : i32
    %c0_i32_1 = arith.constant 0 : i32
    %c0_i32_2 = arith.constant 0 : i32
    return %arg0, %c0_i32, %c0_i32_0, %c0_i32_1 : i32, i32, i32, i32
  }
  func.func @transform_1(%arg0: i32) -> (i32, i32, i32) {
    %c0_i32 = arith.constant 0 : i32
    %c0_i32_0 = arith.constant 0 : i32
    %c0_i32_1 = arith.constant 0 : i32
    %c0_i32_2 = arith.constant 0 : i32
    return %c0_i32, %c0_i32_0, %c0_i32_1 : i32, i32, i32
  }
  func.func @transform_2(%arg0: i32) -> (i32, i32, i32) {
    %c0_i32 = arith.constant 0 : i32
    %c0_i32_0 = arith.constant 0 : i32
    %c0_i32_1 = arith.constant 0 : i32
    %c0_i32_2 = arith.constant 0 : i32
    return %c0_i32, %c0_i32_0, %c0_i32_1 : i32, i32, i32
  }
  func.func @transform_3(%arg0: i32) -> (i32, i32, i32) {
    %c0_i32 = arith.constant 0 : i32
    %c0_i32_0 = arith.constant 0 : i32
    %c0_i32_1 = arith.constant 0 : i32
    %c0_i32_2 = arith.constant 0 : i32
    return %c0_i32, %c0_i32_0, %c0_i32_1 : i32, i32, i32
  }
  func.func @transform_4(%arg0: i32) -> (i32, i32) {
    %c0_i32 = arith.constant 0 : i32
    %c0_i32_0 = arith.constant 0 : i32
    %c0_i32_1 = arith.constant 0 : i32
    return %c0_i32, %c0_i32_0 : i32, i32
  }
  func.func @transform_5(%arg0: i32) -> (i32, i32, i32) {
    %c0_i32 = arith.constant 0 : i32
    %c0_i32_0 = arith.constant 0 : i32
    %c0_i32_1 = arith.constant 0 : i32
    %c0_i32_2 = arith.constant 0 : i32
    return %c0_i32, %c0_i32_0, %c0_i32_1 : i32, i32, i32
  }
  func.func @transform_6(%arg0: i32) -> (i32, i32) {
    %c0_i32 = arith.constant 0 : i32
    %c0_i32_0 = arith.constant 0 : i32
    %c0_i32_1 = arith.constant 0 : i32
    return %c0_i32, %c0_i32_0 : i32, i32
  }
  func.func @transform_7(%arg0: i32) -> (i32, i32, i32) {
    %c0_i32 = arith.constant 0 : i32
    %c0_i32_0 = arith.constant 0 : i32
    %c0_i32_1 = arith.constant 0 : i32
    return %arg0, %c0_i32, %c0_i32_0 : i32, i32, i32
  }
}

</mosaic_0001>

<bundles_post_ra>
// kernel: tpu_custom_call.1
= control target key start
LH: loop header
LB: loop body
LE: loop exit
PB: predicated region body
PF: predicated region fallthrough
CT: control target
= control target key end

     0   :  { %12 = vsyncpa [#allocation5], 0  ;;  %s12014_s0 = inlined_call_operand.vmem [shape: f32[2,16,16,4], index: 0, kind: input, shape index: {}]   ;;  %s12015_s1 = inlined_call_operand.vmem [shape: f32[16,16,4], index: 1, kind: input, shape index: {}]   ;;  %s12016_s2 = inlined_call_operand.vmem [shape: f32[16,16,4], index: 2, kind: input, shape index: {}]   ;;  %s12017_s3 = inlined_call_operand.vmem [shape: f32[9,4,8], index: 3, kind: input, shape index: {}]   ;;  %s12018_s4 = inlined_call_operand.vmem [shape: f32[1,8], index: 4, kind: input, shape index: {}]   ;;  %s12019_s5 = inlined_call_operand.vmem [shape: f32[9,8,8], index: 5, kind: input, shape index: {}]   ;;  %s12020_s6 = inlined_call_operand.vmem [shape: f32[8,1], index: 6, kind: input, shape index: {}]   ;;  %s12021_s7 = inlined_call_operand.hbm [shape: f32[2,8,256], index: 7, kind: output, shape index: {}]  }
   0x1   :  { %14 = vsyncpa [#allocation5 + $0x1], 0  ;;  %s8495_s24 = smov 0   ;;  %s8497_s25 = smov 0  }
   0x2   :  { %s8499_s26 = smov 0   ;;  %s8501_s27 = smov 0  }
   0x3 LB: > { %s8516_s28 = sadd.s32 4294967295, %s8450_s27   ;;  %s6525_s29 = sadd.s32 4294967294, %s8450_s27   ;;  %s8450_s27 = sphi %s8501_s27, %s12371_s27   ;;  %s8446_s26 = sphi %s8499_s26, %s12370_s26   ;;  %s8442_s25 = sphi %s8497_s25, %s12369_s25   ;;  %s8438_s24 = sphi %s8495_s24, %s12368_s24  }
   0x4   : > { %s8520_s30 = sadd.s32 1, %s8450_s27   ;;  %s179_s8 = sadd.s32 1, %s8446_s26 }
   0x5   : > { %s176_s9 = ssub.s32 %s8450_s27, %s8520_s30  ;;  %p189_p0 = scmp.ne.s32.totalorder %s8446_s26, %s8442_s25 }
   0x6   : > { %p177_p1 = scmp.eq.s32.totalorder %s176_s9, 0  ;;  %p190_p2 = scmp.eq.s32.totalorder %s8516_s28, 1 }
   0x7   : > { %p195_p3 = scmp.ne.s32.totalorder %s8442_s25, %s8438_s24  ;;  %p196_p4 = scmp.eq.s32.totalorder %s6525_s29, 1 }
   0x8   : > { %s8531_s10 = scalar_select %p177_p1, %s8446_s26, %s179_s8  }
   0x9   : > { %p8533_p5 = por %p190_p2, %p189_p0  ;;  %p8537_p6 = por %p196_p4, %p195_p3 }
   0xa   : > { %p6528_p7 = scmp.ge.s32.totalorder %s8450_s27, 1  ;;  %p240_p8 = scmp.lt.s32.totalorder %s8450_s27, 3 }
   0xc   : > { %p241_p9 = pnand %p6528_p7, %p240_p8 }
   0xe   : > { %244 = sbr.rel (%p241_p9) target bundleno = 1780 (0x6f4), region = 48 }
  0x13   : > { %p272_p10 = scmp.lt.s32.totalorder %s8516_s28, 1  ;;  %vm309_vm0 = vcmask 31744   ;;  %vm692_vm1 = vcmask 25600   ;;  %v12022_v0 = vmov 0.0   ;;  %vm941_vm2 = vcmask 1043456   ;;  %s269_s29 = sand.u32 1, %s8442_s25  }
  0x14   : > { %727 = vst.msk [vmem:[#allocation2 + $0x120] sm:$0xff] %vm309_vm0, %v12022_v0  ;;  %728 = vst.msk [vmem:[#allocation2 + $0x128] sm:$0xff] %vm309_vm0, %v12022_v0  ;;  %vm4488_vm3 = vcmask 64512   ;;  %vm4491_vm4 = vcmask 58368   ;;  %s6529_s8 = sshll.u32 %s269_s29, 4  ;;  %s8454_s20 = smov [#allocation4]  }
  0x15   : > { %730 = vst.msk [vmem:[#allocation2 + $0x138] sm:$0xff] %vm309_vm0, %v12022_v0  ;;  %731 = vst.msk [vmem:[#allocation2 + $0x140] sm:$0xff] %vm309_vm0, %v12022_v0  ;;  %s273_s13 = scalar_select %p272_p10, %s8516_s28, 1 }
  0x16   : > { %733 = vst.msk [vmem:[#allocation2 + $0x150] sm:$0xff] %vm309_vm0, %v12022_v0  ;;  %734 = vst.msk [vmem:[#allocation2 + $0x158] sm:$0xff] %vm309_vm0, %v12022_v0 }
  0x17   : > { %736 = vst.msk [vmem:[#allocation2 + $0x168] sm:$0xff] %vm309_vm0, %v12022_v0  ;;  %737 = vst.msk [vmem:[#allocation2 + $0x170] sm:$0xff] %vm309_vm0, %v12022_v0  ;;  %s7148_s14 = sshll.u32 %s273_s13, 8 }
  0x18   : > { %739 = vst.msk [vmem:[#allocation2 + $0x180] sm:$0xff] %vm309_vm0, %v12022_v0  ;;  %740 = vst.msk [vmem:[#allocation2 + $0x188] sm:$0xff] %vm309_vm0, %v12022_v0  ;;  %s8658_s17 = scalar_lea.vmem %s12014_s0, %s7148_s14 }
  0x19   : > { %690 = vst.msk [vmem:[#allocation2] sm:$0xff] %vm309_vm0, %v12022_v0  ;;  %691 = vst.msk [vmem:[#allocation2 + $0x8] sm:$0xff] %vm309_vm0, %v12022_v0  ;;  %v8661_v1 = vld [vmem:[%s8658_s17] sm:$0xff]  ;;  %v8664_v2 = vld [vmem:[%s8658_s17 + $0x8] sm:$0xff] }
  0x1a   : > { %694 = vst.msk [vmem:[#allocation2 + $0x18] sm:$0xff] %vm309_vm0, %v12022_v0  ;;  %695 = vst.msk [vmem:[#allocation2 + $0x20] sm:$0xff] %vm309_vm0, %v12022_v0  ;;  %v8667_v3 = vld [vmem:[%s8658_s17 + $0x10] sm:$0xff]  ;;  %v8670_v4 = vld [vmem:[%s8658_s17 + $0x18] sm:$0xff]  ;;  %v310_v5 = vsel %vm309_vm0, %v8661_v1, 0.0  ;;  %v311_v6 = vsel %vm309_vm0, %v8664_v2, 0.0 }
  0x1b   : > { %697 = vst.msk [vmem:[#allocation2 + $0x30] sm:$0xff] %vm309_vm0, %v12022_v0  ;;  %698 = vst.msk [vmem:[#allocation2 + $0x38] sm:$0xff] %vm309_vm0, %v12022_v0  ;;  %v313_v7 = vsel %vm309_vm0, %v8667_v3, 0.0  ;;  %v8679_v8 = vld [vmem:[%s8658_s17 + $0x20] sm:$0xff]  ;;  %v312_v9 = vadd.f32 %v311_v6, %v310_v5  ;;  %v315_v10 = vsel %vm309_vm0, %v8670_v4, 0.0  ;;  %v8684_v11 = vld [vmem:[%s8658_s17 + $0x28] sm:$0xff] }
  0x1c   : > { %700 = vst.msk [vmem:[#allocation2 + $0x48] sm:$0xff] %vm309_vm0, %v12022_v0  ;;  %701 = vst.msk [vmem:[#allocation2 + $0x50] sm:$0xff] %vm309_vm0, %v12022_v0  ;;  %v317_v13 = vsel %vm309_vm0, %v8679_v8, 0.0  ;;  %v8689_v14 = vld [vmem:[%s8658_s17 + $0x30] sm:$0xff]  ;;  %v319_v16 = vsel %vm309_vm0, %v8684_v11, 0.0  ;;  %v8694_v17 = vld [vmem:[%s8658_s17 + $0x38] sm:$0xff] }
  0x1d   : > { %703 = vst.msk [vmem:[#allocation2 + $0x60] sm:$0xff] %vm309_vm0, %v12022_v0  ;;  %704 = vst.msk [vmem:[#allocation2 + $0x68] sm:$0xff] %vm309_vm0, %v12022_v0  ;;  %v314_v12 = vadd.f32 %v313_v7, %v312_v9  ;;  %v321_v19 = vsel %vm309_vm0, %v8689_v14, 0.0  ;;  %v8699_v20 = vld [vmem:[%s8658_s17 + $0x40] sm:$0xff]  ;;  %v323_v22 = vsel %vm309_vm0, %v8694_v17, 0.0  ;;  %v8704_v23 = vld [vmem:[%s8658_s17 + $0x48] sm:$0xff] }
  0x1e   : > { %706 = vst.msk [vmem:[#allocation2 + $0x78] sm:$0xff] %vm309_vm0, %v12022_v0  ;;  %707 = vst.msk [vmem:[#allocation2 + $0x80] sm:$0xff] %vm309_vm0, %v12022_v0  ;;  %v325_v25 = vsel %vm309_vm0, %v8699_v20, 0.0  ;;  %v8709_v26 = vld [vmem:[%s8658_s17 + $0x50] sm:$0xff]  ;;  %v327_v28 = vsel %vm309_vm0, %v8704_v23, 0.0  ;;  %v8714_v29 = vld [vmem:[%s8658_s17 + $0x58] sm:$0xff] }
  0x1f   : > { %709 = vst.msk [vmem:[#allocation2 + $0x90] sm:$0xff] %vm309_vm0, %v12022_v0  ;;  %710 = vst.msk [vmem:[#allocation2 + $0x98] sm:$0xff] %vm309_vm0, %v12022_v0  ;;  %v316_v15 = vadd.f32 %v315_v10, %v314_v12  ;;  %v329_v31 = vsel %vm309_vm0, %v8709_v26, 0.0  ;;  %v8719_v32 = vld [vmem:[%s8658_s17 + $0x60] sm:$0xff]  ;;  %v331_v34 = vsel %vm309_vm0, %v8714_v29, 0.0  ;;  %v8724_v35 = vld [vmem:[%s8658_s17 + $0x68] sm:$0xff] }
  0x20   : > { %712 = vst.msk [vmem:[#allocation2 + $0xa8] sm:$0xff] %vm309_vm0, %v12022_v0  ;;  %713 = vst.msk [vmem:[#allocation2 + $0xb0] sm:$0xff] %vm309_vm0, %v12022_v0  ;;  %v333_v37 = vsel %vm309_vm0, %v8719_v32, 0.0  ;;  %v8729_v38 = vld [vmem:[%s8658_s17 + $0x70] sm:$0xff]  ;;  %v335_v40 = vsel %vm309_vm0, %v8724_v35, 0.0  ;;  %v8734_v41 = vld [vmem:[%s8658_s17 + $0x78] sm:$0xff] }
  0x21   : > { %715 = vst.msk [vmem:[#allocation2 + $0xc0] sm:$0xff] %vm309_vm0, %v12022_v0  ;;  %716 = vst.msk [vmem:[#allocation2 + $0xc8] sm:$0xff] %vm309_vm0, %v12022_v0  ;;  %v318_v18 = vadd.f32 %v317_v13, %v316_v15  ;;  %v337_v43 = vsel %vm309_vm0, %v8729_v38, 0.0  ;;  %v8739_v44 = vld [vmem:[%s8658_s17 + $0x80] sm:$0xff]  ;;  %v339_v46 = vsel %vm309_vm0, %v8734_v41, 0.0  ;;  %v8744_v47 = vld [vmem:[%s8658_s17 + $0x88] sm:$0xff] }
  0x22   : > { %718 = vst.msk [vmem:[#allocation2 + $0xd8] sm:$0xff] %vm309_vm0, %v12022_v0  ;;  %719 = vst.msk [vmem:[#allocation2 + $0xe0] sm:$0xff] %vm309_vm0, %v12022_v0  ;;  %v341_v49 = vsel %vm309_vm0, %v8739_v44, 0.0  ;;  %v8749_v50 = vld [vmem:[%s8658_s17 + $0x90] sm:$0xff]  ;;  %v343_v52 = vsel %vm309_vm0, %v8744_v47, 0.0  ;;  %v8754_v53 = vld [vmem:[%s8658_s17 + $0x98] sm:$0xff] }
  0x23   : > { %721 = vst.msk [vmem:[#allocation2 + $0xf0] sm:$0xff] %vm309_vm0, %v12022_v0  ;;  %722 = vst.msk [vmem:[#allocation2 + $0xf8] sm:$0xff] %vm309_vm0, %v12022_v0  ;;  %v320_v21 = vadd.f32 %v319_v16, %v318_v18  ;;  %v345_v55 = vsel %vm309_vm0, %v8749_v50, 0.0  ;;  %v8759_v56 = vld [vmem:[%s8658_s17 + $0xa0] sm:$0xff]  ;;  %v347_v58 = vsel %vm309_vm0, %v8754_v53, 0.0  ;;  %v8764_v59 = vld [vmem:[%s8658_s17 + $0xa8] sm:$0xff] }
  0x24   : > { %724 = vst.msk [vmem:[#allocation2 + $0x108] sm:$0xff] %vm309_vm0, %v12022_v0  ;;  %725 = vst.msk [vmem:[#allocation2 + $0x110] sm:$0xff] %vm309_vm0, %v12022_v0  ;;  %v349_v61 = vsel %vm309_vm0, %v8759_v56, 0.0  ;;  %v8769_v62 = vld [vmem:[%s8658_s17 + $0xb0] sm:$0xff]  ;;  %v351_v5 = vsel %vm309_vm0, %v8764_v59, 0.0  ;;  %v8774_v6 = vld [vmem:[%s8658_s17 + $0xb8] sm:$0xff] }
  0x25   : > { %742 = vst.msk [vmem:[#allocation2 + $0x198] sm:$0xff] %vm309_vm0, %v12022_v0  ;;  %743 = vst.msk [vmem:[#allocation2 + $0x1a0] sm:$0xff] %vm309_vm0, %v12022_v0  ;;  %v322_v24 = vadd.f32 %v321_v19, %v320_v21  ;;  %v353_v9 = vsel %vm309_vm0, %v8769_v62, 0.0  ;;  %v8779_v10 = vld [vmem:[%s8658_s17 + $0xc0] sm:$0xff]  ;;  %v355_v13 = vsel %vm309_vm0, %v8774_v6, 0.0  ;;  %v8784_v15 = vld [vmem:[%s8658_s17 + $0xc8] sm:$0xff] }
  0x26   : > { %729 = vst.msk [vmem:[#allocation2 + $0x130] sm:$0x3] %vm692_vm1, %v12022_v0  ;;  %732 = vst.msk [vmem:[#allocation2 + $0x148] sm:$0x3] %vm692_vm1, %v12022_v0  ;;  %v357_v18 = vsel %vm309_vm0, %v8779_v10, 0.0  ;;  %v8789_v19 = vld [vmem:[%s8658_s17 + $0xd0] sm:$0xff] }
  0x27   : > { %735 = vst.msk [vmem:[#allocation2 + $0x160] sm:$0x3] %vm692_vm1, %v12022_v0  ;;  %738 = vst.msk [vmem:[#allocation2 + $0x178] sm:$0x3] %vm692_vm1, %v12022_v0  ;;  %v324_v27 = vadd.f32 %v323_v22, %v322_v24  ;;  %v359_v22 = vsel %vm309_vm0, %v8784_v15, 0.0  ;;  %v8794_v24 = vld [vmem:[%s8658_s17 + $0xd8] sm:$0xff] }
  0x28   : > { %741 = vst.msk [vmem:[#allocation2 + $0x190] sm:$0x3] %vm692_vm1, %v12022_v0  ;;  %693 = vst.msk [vmem:[#allocation2 + $0x10] sm:$0x3] %vm692_vm1, %v12022_v0 }
  0x29   : > { %696 = vst.msk [vmem:[#allocation2 + $0x28] sm:$0x3] %vm692_vm1, %v12022_v0  ;;  %699 = vst.msk [vmem:[#allocation2 + $0x40] sm:$0x3] %vm692_vm1, %v12022_v0  ;;  %v326_v30 = vadd.f32 %v325_v25, %v324_v27  ;;  %v361_v27 = vsel %vm309_vm0, %v8789_v19, 0.0 }
  0x2a   : > { %702 = vst.msk [vmem:[#allocation2 + $0x58] sm:$0x3] %vm692_vm1, %v12022_v0  ;;  %705 = vst.msk [vmem:[#allocation2 + $0x70] sm:$0x3] %vm692_vm1, %v12022_v0 }
  0x2b   : > { %708 = vst.msk [vmem:[#allocation2 + $0x88] sm:$0x3] %vm692_vm1, %v12022_v0  ;;  %711 = vst.msk [vmem:[#allocation2 + $0xa0] sm:$0x3] %vm692_vm1, %v12022_v0  ;;  %v328_v33 = vadd.f32 %v327_v28, %v326_v30  ;;  %v8799_v28 = vld [vmem:[%s8658_s17 + $0xe0] sm:$0xff] }
  0x2c   : > { %714 = vst.msk [vmem:[#allocation2 + $0xb8] sm:$0x3] %vm692_vm1, %v12022_v0  ;;  %717 = vst.msk [vmem:[#allocation2 + $0xd0] sm:$0x3] %vm692_vm1, %v12022_v0 }
  0x2d   : > { %720 = vst.msk [vmem:[#allocation2 + $0xe8] sm:$0x3] %vm692_vm1, %v12022_v0  ;;  %723 = vst.msk [vmem:[#allocation2 + $0x100] sm:$0x3] %vm692_vm1, %v12022_v0  ;;  %v330_v36 = vadd.f32 %v329_v31, %v328_v33  ;;  %v363_v31 = vsel %vm309_vm0, %v8794_v24, 0.0  ;;  %v8804_v33 = vld [vmem:[%s8658_s17 + $0xe8] sm:$0xff] }
  0x2e   : > { %726 = vst.msk [vmem:[#allocation2 + $0x118] sm:$0x3] %vm692_vm1, %v12022_v0  ;;  %744 = vst.msk [vmem:[#allocation2 + $0x1a8] sm:$0x3] %vm692_vm1, %v12022_v0 }
  0x2f   : > { %v332_v39 = vadd.f32 %v331_v34, %v330_v36  ;;  %v365_v36 = vsel %vm309_vm0, %v8799_v28, 0.0 }
  0x31   : > { %v334_v42 = vadd.f32 %v333_v37, %v332_v39  ;;  %v8809_v37 = vld [vmem:[%s8658_s17 + $0xf0] sm:$0xff] }
  0x33   : > { %v336_v45 = vadd.f32 %v335_v40, %v334_v42  ;;  %v367_v40 = vsel %vm309_vm0, %v8804_v33, 0.0  ;;  %v8814_v42 = vld [vmem:[%s8658_s17 + $0xf8] sm:$0xff] }
  0x35   : > { %v338_v48 = vadd.f32 %v337_v43, %v336_v45  ;;  %v369_v45 = vsel %vm309_vm0, %v8809_v37, 0.0 }
  0x37   : > { %v340_v51 = vadd.f32 %v339_v46, %v338_v48  ;;  %v371_v48 = vsel %vm309_vm0, %v8814_v42, 0.0 }
  0x39   : > { %v342_v54 = vadd.f32 %v341_v49, %v340_v51 }
  0x3b   : > { %v344_v57 = vadd.f32 %v343_v52, %v342_v54 }
  0x3d   : > { %v346_v60 = vadd.f32 %v345_v55, %v344_v57 }
  0x3f   : > { %v348_v63 = vadd.f32 %v347_v58, %v346_v60 }
  0x41   : > { %v350_v7 = vadd.f32 %v349_v61, %v348_v63 }
  0x43   : > { %v352_v12 = vadd.f32 %v351_v5, %v350_v7 }
  0x45   : > { %v354_v16 = vadd.f32 %v353_v9, %v352_v12 }
  0x47   : > { %v356_v21 = vadd.f32 %v355_v13, %v354_v16 }
  0x49   : > { %v358_v25 = vadd.f32 %v357_v18, %v356_v21 }
  0x4b   : > { %v360_v30 = vadd.f32 %v359_v22, %v358_v25 }
  0x4d   : > { %v362_v34 = vadd.f32 %v361_v27, %v360_v30 }
  0x4f   : > { %v364_v39 = vadd.f32 %v363_v31, %v362_v34 }
  0x51   : > { %v366_v43 = vadd.f32 %v365_v36, %v364_v39 }
  0x53   : > { %v368_v46 = vadd.f32 %v367_v40, %v366_v43 }
  0x55   : > { %v370_v49 = vadd.f32 %v369_v45, %v368_v46 }
  0x57   : > { %v372_v51 = vadd.f32 %v371_v48, %v370_v49 }
  0x59   : > { %373 = vadd.xlane.f32.xlu0 %v372_v51 }
  0xe2   : > { %v374_v52 = vpop.xlane.xlu0 %373 }
  0xe3   : > { %v375_v54 = vrot.slane %v374_v52, 4 }
  0xe5   : > { %v376_v55 = vadd.f32 %v375_v54, %v374_v52 }
  0xe7   : > { %v377_v57 = vrot.slane %v376_v55, 2 }
  0xe9   : > { %v378_v58 = vadd.f32 %v377_v57, %v376_v55 }
  0xeb   : > { %v379_v60 = vrot.slane %v378_v58, 1 }
  0xed   : > { %v380_v61 = vadd.f32 %v379_v60, %v378_v58 }
  0xef   : > { %8203 = vpush %v380_v61 }
 0x120   : > { %s8204_s18 = spop %8203 }
 0x121   : > { %s384_s19 = smul.f32 0.0009765625, %s8204_s18  ;;  %s6452_s18 = scalar_lea.sflag [#allocation5], %s269_s29 }
 0x123   : > { %v8820_v63 = vstv %s384_s19 }
 0x124   : > { %v8824_v5 = vsub.f32 %v8661_v1, %v8820_v63  ;;  %v8828_v7 = vsub.f32 %v8664_v2, %v8820_v63  ;;  %v8832_v9 = vsub.f32 %v8667_v3, %v8820_v63  ;;  %v8836_v12 = vsub.f32 %v8670_v4, %v8820_v63 }
 0x125   : > { %v8844_v1 = vsub.f32 %v8679_v8, %v8820_v63  ;;  %v8850_v3 = vsub.f32 %v8684_v11, %v8820_v63  ;;  %v8858_v25 = vsub.f32 %v8689_v14, %v8820_v63  ;;  %v8865_v11 = vsub.f32 %v8694_v17, %v8820_v63 }
 0x126   : > { %v418_v13 = vmul.f32 %v8824_v5, %v8824_v5  ;;  %v419_v16 = vmul.f32 %v8828_v7, %v8828_v7  ;;  %v420_v2 = vmul.f32 %v8832_v9, %v8832_v9  ;;  %v421_v4 = vmul.f32 %v8836_v12, %v8836_v12 }
 0x127   : > { %v422_v8 = vmul.f32 %v8844_v1, %v8844_v1  ;;  %v423_v31 = vmul.f32 %v8850_v3, %v8850_v3  ;;  %v8872_v14 = vsub.f32 %v8699_v20, %v8820_v63  ;;  %v424_v39 = vmul.f32 %v8858_v25, %v8858_v25 }
 0x128   : > { %v450_v18 = vsel %vm309_vm0, %v418_v13, 0.0  ;;  %v451_v21 = vsel %vm309_vm0, %v419_v16, 0.0  ;;  %v453_v27 = vsel %vm309_vm0, %v420_v2, 0.0  ;;  %v455_v34 = vsel %vm309_vm0, %v421_v4, 0.0 }
 0x129   : > { %v452_v22 = vadd.f32 %v451_v21, %v450_v18  ;;  %v457_v40 = vsel %vm309_vm0, %v422_v8, 0.0  ;;  %v8879_v17 = vsub.f32 %v8704_v23, %v8820_v63  ;;  %v425_v45 = vmul.f32 %v8865_v11, %v8865_v11 }
 0x12a   : > { %v459_v46 = vsel %vm309_vm0, %v423_v31, 0.0  ;;  %v8886_v20 = vsub.f32 %v8709_v26, %v8820_v63  ;;  %v426_v49 = vmul.f32 %v8872_v14, %v8872_v14  ;;  %v461_v51 = vsel %vm309_vm0, %v424_v39, 0.0 }
 0x12b   : > { %v454_v30 = vadd.f32 %v453_v27, %v452_v22  ;;  %v8893_v23 = vsub.f32 %v8714_v29, %v8820_v63  ;;  %v427_v54 = vmul.f32 %v8879_v17, %v8879_v17  ;;  %v463_v55 = vsel %vm309_vm0, %v425_v45, 0.0 }
 0x12c   : > { %v8900_v26 = vsub.f32 %v8719_v32, %v8820_v63  ;;  %v428_v58 = vmul.f32 %v8886_v20, %v8886_v20  ;;  %v465_v60 = vsel %vm309_vm0, %v426_v49, 0.0  ;;  %v8907_v29 = vsub.f32 %v8724_v35, %v8820_v63 }
 0x12d   : > { %v456_v36 = vadd.f32 %v455_v34, %v454_v30  ;;  %v429_v13 = vmul.f32 %v8893_v23, %v8893_v23  ;;  %v467_v16 = vsel %vm309_vm0, %v427_v54, 0.0  ;;  %v8914_v32 = vsub.f32 %v8729_v38, %v8820_v63 }
 0x12e   : > { %v430_v4 = vmul.f32 %v8900_v26, %v8900_v26  ;;  %v469_v18 = vsel %vm309_vm0, %v428_v58, 0.0  ;;  %v8921_v35 = vsub.f32 %v8734_v41, %v8820_v63  ;;  %v431_v22 = vmul.f32 %v8907_v29, %v8907_v29 }
 0x12f   : > { %v458_v43 = vadd.f32 %v457_v40, %v456_v36  ;;  %v471_v8 = vsel %vm309_vm0, %v429_v13, 0.0  ;;  %v8928_v38 = vsub.f32 %v8739_v44, %v8820_v63  ;;  %v432_v30 = vmul.f32 %v8914_v32, %v8914_v32 }
 0x130   : > { %v473_v31 = vsel %vm309_vm0, %v430_v4, 0.0  ;;  %v8935_v41 = vsub.f32 %v8744_v47, %v8820_v63  ;;  %v433_v36 = vmul.f32 %v8921_v35, %v8921_v35  ;;  %v475_v39 = vsel %vm309_vm0, %v431_v22, 0.0 }
 0x131   : > { %v460_v48 = vadd.f32 %v459_v46, %v458_v43  ;;  %v8942_v44 = vsub.f32 %v8749_v50, %v8820_v63  ;;  %v434_v43 = vmul.f32 %v8928_v38, %v8928_v38  ;;  %v477_v45 = vsel %vm309_vm0, %v432_v30, 0.0 }
 0x132   : > { %v8949_v47 = vsub.f32 %v8754_v53, %v8820_v63  ;;  %v479_v49 = vsel %vm309_vm0, %v433_v36, 0.0  ;;  %v8956_v50 = vsub.f32 %v8759_v56, %v8820_v63  ;;  %v8963_v53 = vsub.f32 %v8764_v59, %v8820_v63 }
 0x133   : > { %v462_v52 = vadd.f32 %v461_v51, %v460_v48  ;;  %v435_v48 = vmul.f32 %v8935_v41, %v8935_v41  ;;  %v481_v54 = vsel %vm309_vm0, %v434_v43, 0.0  ;;  %v8970_v56 = vsub.f32 %v8769_v62, %v8820_v63 }
 0x134   : > { %v8977_v59 = vsub.f32 %v8774_v6, %v8820_v63  ;;  %v8984_v62 = vsub.f32 %v8779_v10, %v8820_v63  ;;  %v8991_v6 = vsub.f32 %v8784_v15, %v8820_v63  ;;  %v8998_v10 = vsub.f32 %v8789_v19, %v8820_v63 }
 0x135   : > { %v464_v57 = vadd.f32 %v463_v55, %v462_v52  ;;  %v436_v52 = vmul.f32 %v8942_v44, %v8942_v44  ;;  %v483_v58 = vsel %vm309_vm0, %v435_v48, 0.0  ;;  %v9005_v15 = vsub.f32 %v8794_v24, %v8820_v63 }
 0x136   : > { %v9012_v19 = vsub.f32 %v8799_v28, %v8820_v63  ;;  %v9019_v24 = vsub.f32 %v8804_v33, %v8820_v63  ;;  %v9026_v28 = vsub.f32 %v8809_v37, %v8820_v63  ;;  %v9033_v33 = vsub.f32 %v8814_v42, %v8820_v63 }
 0x137   : > { %v466_v61 = vadd.f32 %v465_v60, %v464_v57  ;;  %v437_v57 = vmul.f32 %v8949_v47, %v8949_v47  ;;  %v485_v13 = vsel %vm309_vm0, %v436_v52, 0.0 }
 0x138   : > { %v448_v37 = vmul.f32 %v9026_v28, %v9026_v28 }
 0x139   : > { %v468_v2 = vadd.f32 %v467_v16, %v466_v61  ;;  %v438_v61 = vmul.f32 %v8956_v50, %v8956_v50  ;;  %v487_v4 = vsel %vm309_vm0, %v437_v57, 0.0 }
 0x13a   : > { %v509_v42 = vsel %vm309_vm0, %v448_v37, 0.0 }
 0x13b   : > { %v470_v21 = vadd.f32 %v469_v18, %v468_v2  ;;  %v439_v2 = vmul.f32 %v8963_v53, %v8963_v53  ;;  %v489_v22 = vsel %vm309_vm0, %v438_v61, 0.0 }
 0x13d   : > { %v472_v27 = vadd.f32 %v471_v8, %v470_v21  ;;  %v440_v21 = vmul.f32 %v8970_v56, %v8970_v56  ;;  %v491_v30 = vsel %vm309_vm0, %v439_v2, 0.0 }
 0x13f   : > { %v474_v34 = vadd.f32 %v473_v31, %v472_v27  ;;  %v441_v27 = vmul.f32 %v8977_v59, %v8977_v59  ;;  %v493_v36 = vsel %vm309_vm0, %v440_v21, 0.0 }
 0x141   : > { %v476_v40 = vadd.f32 %v475_v39, %v474_v34  ;;  %v442_v34 = vmul.f32 %v8984_v62, %v8984_v62  ;;  %v495_v43 = vsel %vm309_vm0, %v441_v27, 0.0 }
 0x143   : > { %v478_v46 = vadd.f32 %v477_v45, %v476_v40  ;;  %v443_v40 = vmul.f32 %v8991_v6, %v8991_v6  ;;  %v497_v48 = vsel %vm309_vm0, %v442_v34, 0.0 }
 0x145   : > { %v480_v51 = vadd.f32 %v479_v49, %v478_v46  ;;  %v444_v46 = vmul.f32 %v8998_v10, %v8998_v10  ;;  %v499_v52 = vsel %vm309_vm0, %v443_v40, 0.0 }
 0x147   : > { %v482_v55 = vadd.f32 %v481_v54, %v480_v51  ;;  %v445_v51 = vmul.f32 %v9005_v15, %v9005_v15  ;;  %v501_v57 = vsel %vm309_vm0, %v444_v46, 0.0  ;;  %v811_v46 = vld [vmem:[#allocation2 + $0x1] sm:$0xff] }
 0x148   : > { %7755 = vmatprep.mubr.msk.f32.mxu0 %vm309_vm0, %v811_v46  ;;  %v591_v46 = vld [vmem:[%s12015_s1 + $0xe8] sm:$0xff] }
 0x149   : > { %v484_v60 = vadd.f32 %v483_v58, %v482_v55  ;;  %v446_v55 = vmul.f32 %v9012_v19, %v9012_v19  ;;  %v503_v61 = vsel %vm309_vm0, %v445_v51, 0.0  ;;  %v779_v51 = vld [vmem:[#allocation2 + $0x8] sm:$0xff] }
 0x14b   : > { %v486_v16 = vadd.f32 %v485_v13, %v484_v60  ;;  %v447_v60 = vmul.f32 %v9019_v24, %v9019_v24 }
 0x14d   : > { %v488_v18 = vadd.f32 %v487_v4, %v486_v16  ;;  %v505_v16 = vsel %vm309_vm0, %v446_v55, 0.0  ;;  %v449_v4 = vmul.f32 %v9033_v33, %v9033_v33 }
 0x14f   : > { %v490_v8 = vadd.f32 %v489_v22, %v488_v18  ;;  %v507_v18 = vsel %vm309_vm0, %v447_v60, 0.0  ;;  %v511_v22 = vsel %vm309_vm0, %v449_v4, 0.0 }
 0x151   : > { %v492_v31 = vadd.f32 %v491_v30, %v490_v8 }
 0x153   : > { %v494_v39 = vadd.f32 %v493_v36, %v492_v31 }
 0x155   : > { %v496_v45 = vadd.f32 %v495_v43, %v494_v39  ;;  %v6532_v43 = vld [vmem:[%s12017_s3 + $0x4] sm:$0xf] }
 0x156   : > { %7753 = vmatprep.subr.msk.mxu0 %vm941_vm2, %v6532_v43 }
 0x157   : > { %v498_v49 = vadd.f32 %v497_v48, %v496_v45  ;;  %v810_v45 = vld [vmem:[%s12017_s3] sm:$0xf]  ;;  %7754 = vmatpush3.msk.msra.mxu0 %vm941_vm2, %v6532_v43  ;;  %v589_v43 = vld [vmem:[%s12015_s1 + $0xd8] sm:$0xff] }
 0x158   : > { %7803 = vmatprep.subr.msk.mxu1 %vm941_vm2, %v810_v45  ;;  %v778_v48 = vld [vmem:[#allocation2] sm:$0xff] }
 0x159   : > { %v500_v54 = vadd.f32 %v499_v52, %v498_v49  ;;  %v812_v49 = vld [vmem:[#allocation2 + $0x9] sm:$0xff]  ;;  %7804 = vmatpush3.msk.msra.mxu1 %vm941_vm2, %v810_v45  ;;  %7805 = vmatprep.mubr.msk.f32.mxu1 %vm309_vm0, %v778_v48 }
 0x15a   : > { %v6599_v52 = vld [vmem:[%s12017_s3 + $0x8] sm:$0xf]  ;;  %7756 = vmatmul.mubr.msk.f32.vlgmr.msra.gmra.mxu0 %vm309_vm0, %v812_v49  ;;  %7806 = vmatmul.mubr.msk.f32.vlgmr.msra.gmra.mxu1 %vm309_vm0, %v779_v51  ;;  %v592_v48 = vld [vmem:[%s12015_s1 + $0xf0] sm:$0xff] }
 0x15b   : > { %v502_v58 = vadd.f32 %v501_v57, %v500_v54  ;;  %7853 = vmatprep.subr.msk.mxu0 %vm941_vm2, %v6599_v52  ;;  %v6633_v57 = vld [vmem:[%s12017_s3 + $0xc] sm:$0xf]  ;;  %v640_v51 = vld [vmem:[%s12016_s2 + $0x70] sm:$0xff] }
 0x15c   : > { %7854 = vmatpush3.msk.msra.mxu0 %vm941_vm2, %v6599_v52  ;;  %7903 = vmatprep.subr.msk.mxu1 %vm941_vm2, %v6633_v57  ;;  %v641_v52 = vld [vmem:[%s12016_s2 + $0x78] sm:$0xff] }
 0x15d   : > { %v504_v13 = vadd.f32 %v503_v61, %v502_v58  ;;  %v9072_v58 = vld [vmem:[%s12017_s3 + $0x10] sm:$0xf]  ;;  %7904 = vmatpush3.msk.msra.mxu1 %vm941_vm2, %v6633_v57  ;;  %v574_v61 = vld [vmem:[%s12015_s1 + $0x60] sm:$0xff] }
 0x15e   : > { %12105 = vst [vmem:[#allocation7_spill] sm:$0xff] %v9072_v58  ;;  %7953 = vmatprep.subr.msk.mxu0 %vm941_vm2, %v9072_v58 }
 0x15f   : > { %v506_v2 = vadd.f32 %v505_v16, %v504_v13  ;;  %v575_v13 = vld [vmem:[%s12015_s1 + $0x68] sm:$0xff] }
 0x161   : > { %v508_v21 = vadd.f32 %v507_v18, %v506_v2  ;;  %v576_v18 = vld [vmem:[%s12015_s1 + $0x70] sm:$0xff] }
 0x163   : > { %v510_v63 = vadd.f32 %v509_v42, %v508_v21  ;;  %v577_v21 = vld [vmem:[%s12015_s1 + $0x78] sm:$0xff] }
 0x165   : > { %v512_v8 = vadd.f32 %v511_v22, %v510_v63  ;;  %v580_v22 = vld [vmem:[%s12015_s1 + $0x90] sm:$0xff] }
 0x167   : > { %513 = vadd.xlane.f32.xlu0 %v512_v8  ;;  %v581_v8 = vld [vmem:[%s12015_s1 + $0x98] sm:$0xff] }
 0x1f0   : > { %v514_v27 = vpop.xlane.xlu0 %513 }
 0x1f1   : > { %v515_v30 = vrot.slane %v514_v27, 4 }
 0x1f3   : > { %v516_v31 = vadd.f32 %v515_v30, %v514_v27 }
 0x1f5   : > { %v517_v34 = vrot.slane %v516_v31, 2 }
 0x1f7   : > { %v518_v36 = vadd.f32 %v517_v34, %v516_v31  ;;  %v584_v31 = vld [vmem:[%s12015_s1 + $0xb0] sm:$0xff]  ;;  %v585_v34 = vld [vmem:[%s12015_s1 + $0xb8] sm:$0xff] }
 0x1f9   : > { %v519_v39 = vrot.slane %v518_v36, 1 }
 0x1fb   : > { %v520_v40 = vadd.f32 %v519_v39, %v518_v36 }
 0x1fd   : > { %8205 = vpush %v520_v40  ;;  %v588_v40 = vld [vmem:[%s12015_s1 + $0xd0] sm:$0xff] }
 0x22e   : > { %s8206_s9 = spop %8205 }
 0x22f   : > { %s524_s13 = smul.f32 0.0009765625, %s8206_s9  ;;  %s7149_s9 = sshll.u32 %s8516_s28, 8 }
 0x230   : > { %s6464_s17 = scalar_lea.hbm %s12021_s7, %s7149_s9  ;;  %s8394_s28 = sshll.u32 %s8454_s20, 4  ;;  %s8395_s28 = int_to_ptr.vmem [resolvable:$false] %s8394_s28 }
 0x231   : > { %s525_s14 = sadd.f32 1e-05, %s524_s13  ;;  %s271_s13 = scalar_lea.vmem [#allocation4], %s6529_s8 }
 0x232   : > { %s8396_s21 = scalar_lea.vmem %s8395_s28, 512 }
 0x233   : > { %v526_v54 = vstv %s525_s14  ;;  %s6466_s14 = sshll.u32 %s271_s13, 4  ;;  %s6467_s14 = int_to_ptr.vmem [resolvable:$true] %s6466_s14 }
 0x234   : > { %8252 = vrsqrt.f32 %v526_v54  ;;  %v642_v54 = vld [vmem:[%s12016_s2 + $0x80] sm:$0xff]  ;;  %p8397_p0 = scmp.lt.s32.totalorder %s6467_s14, %s8395_s28 }
 0x241   : > { %v8253_v55 = vpop.eup %8252 }
 0x242   : > { %8207 = vpush %v8253_v55 }
 0x273   : > { %s8208_s19 = spop %8207 }
 0x274   : > { %v9077_v60 = vstv %s8208_s19  ;;  %s8390_s19 = scalar_lea.vmem %s6467_s14, 256 }
 0x275   : > { %v9087_v37 = vmul.f32 %v9077_v60, %v8886_v20  ;;  %v9091_v16 = vmul.f32 %v9077_v60, %v8893_v23  ;;  %v542_v2 = vmul.f32 %v9077_v60, %v8900_v26  ;;  %v543_v4 = vmul.f32 %v9077_v60, %v8907_v29  ;;  %v578_v20 = vld [vmem:[%s12015_s1 + $0x80] sm:$0xff]  ;;  %v579_v23 = vld [vmem:[%s12015_s1 + $0x88] sm:$0xff]  ;;  %p8391_p11 = scmp.ne.s32.totalorder %s6467_s14, %s8390_s19  ;;  %p8398_p1 = scmp.lt.s32.totalorder %s8396_s21, %s8390_s19 }
 0x276   : > { %v544_v26 = vmul.f32 %v9077_v60, %v8914_v32  ;;  %v545_v29 = vmul.f32 %v9077_v60, %v8921_v35  ;;  %v546_v42 = vmul.f32 %v9077_v60, %v8928_v38  ;;  %v547_v63 = vmul.f32 %v9077_v60, %v8935_v41  ;;  %v582_v32 = vld [vmem:[%s12015_s1 + $0xa0] sm:$0xff]  ;;  %v583_v35 = vld [vmem:[%s12015_s1 + $0xa8] sm:$0xff] }
 0x277   : > { %v548_v38 = vmul.f32 %v9077_v60, %v8942_v44  ;;  %v549_v41 = vmul.f32 %v9077_v60, %v8949_v47  ;;  %v550_v27 = vmul.f32 %v9077_v60, %v8956_v50  ;;  %v551_v30 = vmul.f32 %v9077_v60, %v8963_v53  ;;  %v586_v44 = vld [vmem:[%s12015_s1 + $0xc0] sm:$0xff]  ;;  %v587_v47 = vld [vmem:[%s12015_s1 + $0xc8] sm:$0xff]  ;;  %p8392_p12 = pnand %p8391_p11, %p8533_p5  ;;  %p8399_p2 = por %p8398_p1, %p8397_p0 }
 0x278   : > { %v552_v50 = vmul.f32 %v9077_v60, %v8970_v56  ;;  %v553_v53 = vmul.f32 %v9077_v60, %v8977_v59  ;;  %v554_v36 = vmul.f32 %v9077_v60, %v8984_v62  ;;  %v555_v39 = vmul.f32 %v9077_v60, %v8991_v6  ;;  %v590_v56 = vld [vmem:[%s12015_s1 + $0xe0] sm:$0xff] }
 0x279   : > { %v556_v59 = vmul.f32 %v9077_v60, %v8998_v10  ;;  %v557_v62 = vmul.f32 %v9077_v60, %v9005_v15  ;;  %v558_v6 = vmul.f32 %v9077_v60, %v9012_v19  ;;  %v559_v45 = vmul.f32 %v9077_v60, %v9019_v24  ;;  %v593_v10 = vld [vmem:[%s12015_s1 + $0xf8] sm:$0xff]  ;;  %p8393_p13 = pneg %p8392_p12 }
 0x27a   : > { %v560_v15 = vmul.f32 %v9077_v60, %v9026_v28  ;;  %v561_v19 = vmul.f32 %v9077_v60, %v9033_v33  ;;  %v9187_v49 = vmul.f32 %v574_v61, %v542_v2  ;;  %v9189_v24 = vmul.f32 %v575_v13, %v543_v4  ;;  %v643_v61 = vld [vmem:[%s12016_s2 + $0x88] sm:$0xff]  ;;  %v644_v13 = vld [vmem:[%s12016_s2 + $0x90] sm:$0xff]  ;;  %v645_v2 = vld [vmem:[%s12016_s2 + $0x98] sm:$0xff] }
 0x27b   : > { %v608_v28 = vmul.f32 %v576_v18, %v544_v26  ;;  %v609_v55 = vmul.f32 %v577_v21, %v545_v29  ;;  %v610_v57 = vmul.f32 %v578_v20, %v546_v42  ;;  %v611_v33 = vmul.f32 %v579_v23, %v547_v63  ;;  %v646_v18 = vld [vmem:[%s12016_s2 + $0xa0] sm:$0xff]  ;;  %v647_v21 = vld [vmem:[%s12016_s2 + $0xa8] sm:$0xff]  ;;  %v648_v20 = vld [vmem:[%s12016_s2 + $0xb0] sm:$0xff]  ;;  %p8400_p3 = pnand %p8399_p2, %p8393_p13 }
 0x27c   : > { %12106 = vst [vmem:[#allocation8_spill] sm:$0xff] %v9189_v24  ;;  %v612_v4 = vmul.f32 %v580_v22, %v548_v38  ;;  %v613_v0 = vmul.f32 %v581_v8, %v549_v41  ;;  %v614_v58 = vmul.f32 %v582_v32, %v550_v27  ;;  %v615_v24 = vmul.f32 %v583_v35, %v551_v30  ;;  %v649_v63 = vld [vmem:[%s12016_s2 + $0xb8] sm:$0xff]  ;;  %v650_v22 = vld [vmem:[%s12016_s2 + $0xc0] sm:$0xff]  ;;  %v651_v8 = vld [vmem:[%s12016_s2 + $0xc8] sm:$0xff] }
 0x27d   : > { %v616_v23 = vmul.f32 %v584_v31, %v552_v50  ;;  %v617_v26 = vmul.f32 %v585_v34, %v553_v53  ;;  %v618_v29 = vmul.f32 %v586_v44, %v554_v36  ;;  %v619_v42 = vmul.f32 %v587_v47, %v555_v39  ;;  %v652_v27 = vld [vmem:[%s12016_s2 + $0xd0] sm:$0xff]  ;;  %v653_v30 = vld [vmem:[%s12016_s2 + $0xd8] sm:$0xff]  ;;  %v654_v31 = vld [vmem:[%s12016_s2 + $0xe0] sm:$0xff] }
 0x27e   : > { %v620_v32 = vmul.f32 %v588_v40, %v556_v59  ;;  %v621_v35 = vmul.f32 %v589_v43, %v557_v62  ;;  %v622_v38 = vmul.f32 %v590_v56, %v558_v6  ;;  %v623_v41 = vmul.f32 %v591_v46, %v559_v45  ;;  %v655_v53 = vld [vmem:[%s12016_s2 + $0xe8] sm:$0xff]  ;;  %v656_v36 = vld [vmem:[%s12016_s2 + $0xf0] sm:$0xff]  ;;  %v657_v39 = vld [vmem:[%s12016_s2 + $0xf8] sm:$0xff] }
 0x27f   : > { %v624_v34 = vmul.f32 %v592_v48, %v560_v15  ;;  %v625_v44 = vmul.f32 %v593_v10, %v561_v19  ;;  %v672_v47 = vadd.f32 %v640_v51, %v608_v28  ;;  %v673_v50 = vadd.f32 %v641_v52, %v609_v55  ;;  %v626_v28 = vld [vmem:[%s12016_s2] sm:$0xff]  ;;  %v627_v55 = vld [vmem:[%s12016_s2 + $0x8] sm:$0xff] }
 0x280   : > { %v674_v40 = vadd.f32 %v642_v54, %v610_v57  ;;  %v675_v43 = vadd.f32 %v643_v61, %v611_v33  ;;  %v676_v56 = vadd.f32 %v644_v13, %v612_v4  ;;  %v677_v59 = vadd.f32 %v645_v2, %v613_v0  ;;  %v562_v0 = vld [vmem:[%s12015_s1] sm:$0xff]  ;;  %v564_v57 = vld [vmem:[%s12015_s1 + $0x10] sm:$0xff]  ;;  %v565_v33 = vld [vmem:[%s12015_s1 + $0x18] sm:$0xff] }
 0x281   : > { %v678_v62 = vadd.f32 %v646_v18, %v614_v58  ;;  %v679_v6 = vadd.f32 %v647_v21, %v615_v24  ;;  %v680_v45 = vadd.f32 %v648_v20, %v616_v23  ;;  %v681_v46 = vadd.f32 %v649_v63, %v617_v26  ;;  %760 = vst.msk [vmem:[#allocation2 + $0xc1] sm:$0xff] %vm309_vm0, %v672_v47  ;;  %v563_v58 = vld [vmem:[%s12015_s1 + $0x8] sm:$0xff]  ;;  %v566_v61 = vld [vmem:[%s12015_s1 + $0x20] sm:$0xff]  ;;  %v568_v20 = vld [vmem:[%s12015_s1 + $0x30] sm:$0xff] }
 0x282   : > { %761 = vst.msk [vmem:[#allocation2 + $0xc9] sm:$0xff] %vm309_vm0, %v673_v50  ;;  %v682_v48 = vadd.f32 %v650_v22, %v618_v29  ;;  %v683_v10 = vadd.f32 %v651_v8, %v619_v42  ;;  %v684_v15 = vadd.f32 %v652_v27, %v620_v32  ;;  %v685_v19 = vadd.f32 %v653_v30, %v621_v35  ;;  %v567_v21 = vld [vmem:[%s12015_s1 + $0x28] sm:$0xff]  ;;  %v630_v23 = vld [vmem:[%s12016_s2 + $0x20] sm:$0xff]  ;;  %v632_v35 = vld [vmem:[%s12016_s2 + $0x30] sm:$0xff] }
 0x283   : > { %762 = vst.msk [vmem:[#allocation2 + $0xd9] sm:$0xff] %vm309_vm0, %v674_v40  ;;  %763 = vst.msk [vmem:[#allocation2 + $0xe1] sm:$0xff] %vm309_vm0, %v675_v43  ;;  %v686_v24 = vadd.f32 %v654_v31, %v622_v38  ;;  %v687_v51 = vadd.f32 %v655_v53, %v623_v41  ;;  %v688_v52 = vadd.f32 %v656_v36, %v624_v34  ;;  %v572_v27 = vld [vmem:[%s12015_s1 + $0x50] sm:$0xff]  ;;  %v573_v30 = vld [vmem:[%s12015_s1 + $0x58] sm:$0xff] }
 0x284   : > { %764 = vst.msk [vmem:[#allocation2 + $0xf1] sm:$0xff] %vm309_vm0, %v676_v56  ;;  %765 = vst.msk [vmem:[#allocation2 + $0xf9] sm:$0xff] %vm309_vm0, %v677_v59  ;;  %v689_v54 = vadd.f32 %v657_v39, %v625_v44  ;;  %v530_v13 = vmul.f32 %v9077_v60, %v8824_v5  ;;  %v531_v2 = vmul.f32 %v9077_v60, %v8828_v7  ;;  %v569_v5 = vld [vmem:[%s12015_s1 + $0x38] sm:$0xff]  ;;  %v628_v7 = vld [vmem:[%s12016_s2 + $0x10] sm:$0xff] }
 0x285   : > { %768 = vst.msk [vmem:[#allocation2 + $0x121] sm:$0xff] %vm309_vm0, %v680_v45  ;;  %769 = vst.msk [vmem:[#allocation2 + $0x129] sm:$0xff] %vm309_vm0, %v681_v46  ;;  %v532_v4 = vmul.f32 %v9077_v60, %v8832_v9  ;;  %v533_v18 = vmul.f32 %v9077_v60, %v8836_v12  ;;  %v629_v9 = vld [vmem:[%s12016_s2 + $0x18] sm:$0xff]  ;;  %v534_v12 = vmul.f32 %v9077_v60, %v8844_v1  ;;  %v631_v1 = vld [vmem:[%s12016_s2 + $0x28] sm:$0xff] }
 0x286   : > { %766 = vst.msk [vmem:[#allocation2 + $0x109] sm:$0xff] %vm309_vm0, %v678_v62  ;;  %767 = vst.msk [vmem:[#allocation2 + $0x111] sm:$0xff] %vm309_vm0, %v679_v6  ;;  %v535_v26 = vmul.f32 %v9077_v60, %v8850_v3  ;;  %v536_v29 = vmul.f32 %v9077_v60, %v8858_v25  ;;  %v537_v42 = vmul.f32 %v9077_v60, %v8865_v11  ;;  %v633_v3 = vld [vmem:[%s12016_s2 + $0x38] sm:$0xff]  ;;  %v570_v50 = vld [vmem:[%s12015_s1 + $0x40] sm:$0xff] }
 0x287   : > { %770 = vst.msk [vmem:[#allocation2 + $0x139] sm:$0xff] %vm309_vm0, %v682_v48  ;;  %771 = vst.msk [vmem:[#allocation2 + $0x141] sm:$0xff] %vm309_vm0, %v683_v10  ;;  %v594_v63 = vmul.f32 %v562_v0, %v530_v13  ;;  %v595_v22 = vmul.f32 %v563_v58, %v531_v2  ;;  %v596_v8 = vmul.f32 %v564_v57, %v532_v4  ;;  %v638_v53 = vld [vmem:[%s12016_s2 + $0x60] sm:$0xff]  ;;  %v639_v36 = vld [vmem:[%s12016_s2 + $0x68] sm:$0xff] }
 0x288   : > { %772 = vst.msk [vmem:[#allocation2 + $0x151] sm:$0xff] %vm309_vm0, %v684_v15  ;;  %773 = vst.msk [vmem:[#allocation2 + $0x159] sm:$0xff] %vm309_vm0, %v685_v19  ;;  %v597_v32 = vmul.f32 %v565_v33, %v533_v18  ;;  %v598_v25 = vmul.f32 %v566_v61, %v534_v12  ;;  %v599_v38 = vmul.f32 %v567_v21, %v535_v26  ;;  %v571_v59 = vld [vmem:[%s12015_s1 + $0x48] sm:$0xff]  ;;  %v636_v62 = vld [vmem:[%s12016_s2 + $0x50] sm:$0xff] }
 0x289   : > { %774 = vst.msk [vmem:[#allocation2 + $0x169] sm:$0xff] %vm309_vm0, %v686_v24  ;;  %775 = vst.msk [vmem:[#allocation2 + $0x171] sm:$0xff] %vm309_vm0, %v687_v51  ;;  %v600_v41 = vmul.f32 %v568_v20, %v536_v29  ;;  %v601_v11 = vmul.f32 %v569_v5, %v537_v42  ;;  %v658_v31 = vadd.f32 %v626_v28, %v594_v63  ;;  %v637_v6 = vld [vmem:[%s12016_s2 + $0x58] sm:$0xff]  ;;  %v634_v15 = vld [vmem:[%s12016_s2 + $0x40] sm:$0xff] }
 0x28a   : > { %776 = vst.msk [vmem:[#allocation2 + $0x181] sm:$0xff] %vm309_vm0, %v688_v52  ;;  %777 = vst.msk [vmem:[#allocation2 + $0x189] sm:$0xff] %vm309_vm0, %v689_v54  ;;  %v659_v34 = vadd.f32 %v627_v55, %v595_v22  ;;  %v660_v44 = vadd.f32 %v628_v7, %v596_v8  ;;  %v661_v47 = vadd.f32 %v629_v9, %v597_v32  ;;  %v9474_v8 = vld [vmem:[%s12017_s3 + $0x14] sm:$0xf] }
 0x28b   : > { %v662_v39 = vadd.f32 %v630_v23, %v598_v25  ;;  %v663_v40 = vadd.f32 %v631_v1, %v599_v38  ;;  %v664_v43 = vadd.f32 %v632_v35, %v600_v41  ;;  %v665_v56 = vadd.f32 %v633_v3, %v601_v11  ;;  %746 = vst.msk [vmem:[#allocation2 + $0x19] sm:$0xff] %vm309_vm0, %v658_v31  ;;  %v9498_v25 = vld [vmem:[#allocation2 + $0xc1] sm:$0xff]  ;;  %v9506_v41 = vld [vmem:[#allocation2 + $0xc9] sm:$0xff] }
 0x28c   : > { %747 = vst.msk [vmem:[#allocation2 + $0x21] sm:$0xff] %vm309_vm0, %v659_v34  ;;  %748 = vst.msk [vmem:[#allocation2 + $0x31] sm:$0xff] %vm309_vm0, %v660_v44  ;;  %v538_v45 = vmul.f32 %v9077_v60, %v8872_v14  ;;  %v539_v46 = vmul.f32 %v9077_v60, %v8879_v17  ;;  %v604_v48 = vmul.f32 %v572_v27, %v9087_v37  ;;  %v635_v14 = vld [vmem:[%s12016_s2 + $0x48] sm:$0xff]  ;;  %8003 = vmatprep.subr.msk.mxu1 %vm941_vm2, %v9474_v8  ;;  %v9500_v38 = vld [vmem:[#allocation2 + $0xc0] sm:$0xff] }
 0x28d   : > { %749 = vst.msk [vmem:[#allocation2 + $0x39] sm:$0xff] %vm309_vm0, %v661_v47  ;;  %v605_v10 = vmul.f32 %v573_v30, %v9091_v16  ;;  %750 = vst.msk [vmem:[#allocation2 + $0x49] sm:$0xff] %vm309_vm0, %v662_v39  ;;  %v670_v17 = vadd.f32 %v638_v53, %v9187_v49  ;;  %v12107_v60 = vld [vmem:[#allocation8_spill] sm:$0xff]  ;;  %v9514_v27 = vld [vmem:[#allocation2 + $0xd9] sm:$0xff] }
 0x28e   : > { %751 = vst.msk [vmem:[#allocation2 + $0x51] sm:$0xff] %vm309_vm0, %v663_v40  ;;  %752 = vst.msk [vmem:[#allocation2 + $0x61] sm:$0xff] %vm309_vm0, %v664_v43  ;;  %v671_v37 = vadd.f32 %v639_v36, %v12107_v60  ;;  %v602_v16 = vmul.f32 %v570_v50, %v538_v45  ;;  %v603_v19 = vmul.f32 %v571_v59, %v539_v46  ;;  %v9508_v11 = vld [vmem:[#allocation2 + $0xc8] sm:$0xff]  ;;  %v9516_v30 = vld [vmem:[#allocation2 + $0xd8] sm:$0xff] }
 0x28f   : > { %753 = vst.msk [vmem:[#allocation2 + $0x69] sm:$0xff] %vm309_vm0, %v665_v56  ;;  %v668_v0 = vadd.f32 %v636_v62, %v604_v48  ;;  %v669_v58 = vadd.f32 %v637_v6, %v605_v10  ;;  %758 = vst.msk [vmem:[#allocation2 + $0xa9] sm:$0xff] %vm309_vm0, %v670_v17  ;;  %v9522_v31 = vld [vmem:[#allocation2 + $0xe1] sm:$0xff]  ;;  %v9530_v44 = vld [vmem:[#allocation2 + $0xf1] sm:$0xff] }
 0x290   : > { %759 = vst.msk [vmem:[#allocation2 + $0xb1] sm:$0xff] %vm309_vm0, %v671_v37  ;;  %v666_v24 = vadd.f32 %v634_v15, %v602_v16  ;;  %v667_v51 = vadd.f32 %v635_v14, %v603_v19  ;;  %12117 = vst [vmem:[#allocation17_spill] sm:$0xff] %v9500_v38  ;;  %v9524_v34 = vld [vmem:[#allocation2 + $0xe0] sm:$0xff]  ;;  %v9532_v47 = vld [vmem:[#allocation2 + $0xf0] sm:$0xff] }
 0x291   : > { %756 = vst.msk [vmem:[#allocation2 + $0x91] sm:$0xff] %vm309_vm0, %v668_v0  ;;  %757 = vst.msk [vmem:[#allocation2 + $0x99] sm:$0xff] %vm309_vm0, %v669_v58  ;;  %v9538_v50 = vld [vmem:[#allocation2 + $0xf9] sm:$0xff]  ;;  %v9546_v36 = vld [vmem:[#allocation2 + $0x109] sm:$0xff] }
 0x292   : > { %754 = vst.msk [vmem:[#allocation2 + $0x79] sm:$0xff] %vm309_vm0, %v666_v24  ;;  %755 = vst.msk [vmem:[#allocation2 + $0x81] sm:$0xff] %vm309_vm0, %v667_v51  ;;  %v9379_v49 = vld [vmem:[#allocation2 + $0x19] sm:$0xff]  ;;  %v9548_v39 = vld [vmem:[#allocation2 + $0x108] sm:$0xff]  ;;  %v7757_v51 = vpop.f32.mrf.mxu0 }
 0x293   : > { %v9381_v52 = vld [vmem:[#allocation2 + $0x18] sm:$0xff]  ;;  %v9383_v54 = vld [vmem:[#allocation2 + $0x21] sm:$0xff]  ;;  %7758 = vmatprep.mubr.msk.f32.mxu0 %vm309_vm0, %v9379_v49  ;;  %v9397_v57 = vld [vmem:[#allocation2 + $0x30] sm:$0xff]  ;;  %12118 = vst [vmem:[#allocation18_spill] sm:$0xff] %v9508_v11 }
 0x294   : > { %7808 = vmatprep.mubr.msk.f32.mxu1 %vm309_vm0, %v9381_v52  ;;  %v9389_v28 = vld [vmem:[#allocation2 + $0x20] sm:$0xff]  ;;  %7759 = vmatmul.mubr.msk.f32.gmra.mxu0 %vm309_vm0, %v9383_v54  ;;  %v9395_v55 = vld [vmem:[#allocation2 + $0x31] sm:$0xff]  ;;  %v9411_v13 = vld [vmem:[#allocation2 + $0x49] sm:$0xff]  ;;  %12119 = vst [vmem:[#allocation19_spill] sm:$0xff] %v9516_v30 }
 0x295   : > { %7809 = vmatmul.mubr.msk.f32.gmra.mxu1 %vm309_vm0, %v9389_v28  ;;  %7761 = vmatprep.mubr.msk.f32.mxu0 %vm309_vm0, %v9395_v55  ;;  %v9403_v33 = vld [vmem:[#allocation2 + $0x39] sm:$0xff]  ;;  %v9413_v2 = vld [vmem:[#allocation2 + $0x48] sm:$0xff]  ;;  %v9419_v4 = vld [vmem:[#allocation2 + $0x51] sm:$0xff]  ;;  %12120 = vst [vmem:[#allocation20_spill] sm:$0xff] %v9524_v34 }
 0x296   : > { %7811 = vmatprep.mubr.msk.f32.mxu1 %vm309_vm0, %v9397_v57  ;;  %v9405_v61 = vld [vmem:[#allocation2 + $0x38] sm:$0xff]  ;;  %v9421_v18 = vld [vmem:[#allocation2 + $0x50] sm:$0xff]  ;;  %v9427_v21 = vld [vmem:[#allocation2 + $0x61] sm:$0xff]  ;;  %12121 = vst [vmem:[#allocation21_spill] sm:$0xff] %v9532_v47 }
 0x297   : > { %12108 = vst [vmem:[#allocation8_spill] sm:$0xff] %v9421_v18  ;;  %v9429_v20 = vld [vmem:[#allocation2 + $0x60] sm:$0xff]  ;;  %v9435_v5 = vld [vmem:[#allocation2 + $0x69] sm:$0xff]  ;;  %v9490_v35 = vld [vmem:[#allocation2 + $0xb1] sm:$0xff] }
 0x298   : > { %7762 = vmatmul.mubr.msk.f32.gmra.mxu0 %vm309_vm0, %v9403_v33  ;;  %12109 = vst [vmem:[#allocation9_spill] sm:$0xff] %v9429_v20  ;;  %v9437_v7 = vld [vmem:[#allocation2 + $0x68] sm:$0xff]  ;;  %v9459_v29 = vld [vmem:[#allocation2 + $0x91] sm:$0xff]  ;;  %v9467_v63 = vld [vmem:[#allocation2 + $0x99] sm:$0xff] }
 0x299   : > { %7812 = vmatmul.mubr.msk.f32.gmra.mxu1 %vm309_vm0, %v9405_v61  ;;  %7764 = vmatprep.mubr.msk.f32.mxu0 %vm309_vm0, %v9411_v13  ;;  %12110 = vst [vmem:[#allocation10_spill] sm:$0xff] %v9437_v7  ;;  %v9443_v9 = vld [vmem:[#allocation2 + $0x79] sm:$0xff]  ;;  %v9451_v23 = vld [vmem:[#allocation2 + $0x81] sm:$0xff]  ;;  %v9461_v42 = vld [vmem:[#allocation2 + $0x90] sm:$0xff] }
 0x29a   : > { %7814 = vmatprep.mubr.msk.f32.mxu1 %vm309_vm0, %v9413_v2  ;;  %v9445_v12 = vld [vmem:[#allocation2 + $0x78] sm:$0xff]  ;;  %v9453_v26 = vld [vmem:[#allocation2 + $0x80] sm:$0xff]  ;;  %12113 = vst [vmem:[#allocation13_spill] sm:$0xff] %v9461_v42  ;;  %v9480_v32 = vld [vmem:[#allocation2 + $0xa9] sm:$0xff] }
 0x29b   : > { %12111 = vst [vmem:[#allocation11_spill] sm:$0xff] %v9445_v12  ;;  %12112 = vst [vmem:[#allocation12_spill] sm:$0xff] %v9453_v26  ;;  %v9469_v22 = vld [vmem:[#allocation2 + $0x98] sm:$0xff]  ;;  %v9482_v1 = vld [vmem:[#allocation2 + $0xa8] sm:$0xff] }
 0x29c   : > { %7765 = vmatmul.mubr.msk.f32.gmra.mxu0 %vm309_vm0, %v9419_v4  ;;  %12114 = vst [vmem:[#allocation14_spill] sm:$0xff] %v9469_v22  ;;  %12115 = vst [vmem:[#allocation15_spill] sm:$0xff] %v9482_v1  ;;  %v9492_v3 = vld [vmem:[#allocation2 + $0xb0] sm:$0xff]  ;;  %v9540_v53 = vld [vmem:[#allocation2 + $0xf8] sm:$0xff] }
 0x29d   : > { %7815 = vmatmul.mubr.msk.f32.gmra.mxu1 %vm309_vm0, %v9421_v18  ;;  %7767 = vmatprep.mubr.msk.f32.mxu0 %vm309_vm0, %v9427_v21  ;;  %12116 = vst [vmem:[#allocation16_spill] sm:$0xff] %v9492_v3  ;;  %12122 = vst [vmem:[#allocation22_spill] sm:$0xff] %v9540_v53  ;;  %v9554_v40 = vld [vmem:[#allocation2 + $0x111] sm:$0xff]  ;;  %v9562_v56 = vld [vmem:[#allocation2 + $0x121] sm:$0xff] }
 0x29e   : > { %7817 = vmatprep.mubr.msk.f32.mxu1 %vm309_vm0, %v9429_v20  ;;  %12123 = vst [vmem:[#allocation23_spill] sm:$0xff] %v9548_v39  ;;  %v9556_v43 = vld [vmem:[#allocation2 + $0x110] sm:$0xff]  ;;  %v9564_v59 = vld [vmem:[#allocation2 + $0x120] sm:$0xff]  ;;  %v9572_v6 = vld [vmem:[#allocation2 + $0x128] sm:$0xff] }
 0x29f   : > { %12124 = vst [vmem:[#allocation24_spill] sm:$0xff] %v9556_v43  ;;  %12125 = vst [vmem:[#allocation25_spill] sm:$0xff] %v9564_v59  ;;  %v9570_v62 = vld [vmem:[#allocation2 + $0x129] sm:$0xff]  ;;  %v9578_v45 = vld [vmem:[#allocation2 + $0x139] sm:$0xff] }
 0x2a0   : > { %7768 = vmatmul.mubr.msk.f32.gmra.mxu0 %vm309_vm0, %v9435_v5  ;;  %12126 = vst [vmem:[#allocation26_spill] sm:$0xff] %v9572_v6  ;;  %v9580_v46 = vld [vmem:[#allocation2 + $0x138] sm:$0xff]  ;;  %v9586_v48 = vld [vmem:[#allocation2 + $0x141] sm:$0xff]  ;;  %v9596_v14 = vld [vmem:[#allocation2 + $0x150] sm:$0xff] }
 0x2a1   : > { %7818 = vmatmul.mubr.msk.f32.gmra.mxu1 %vm309_vm0, %v9437_v7  ;;  %7770 = vmatprep.mubr.msk.f32.mxu0 %vm309_vm0, %v9443_v9  ;;  %12127 = vst [vmem:[#allocation27_spill] sm:$0xff] %v9580_v46  ;;  %v9588_v10 = vld [vmem:[#allocation2 + $0x140] sm:$0xff]  ;;  %v9594_v15 = vld [vmem:[#allocation2 + $0x151] sm:$0xff]  ;;  %12130 = vst [vmem:[#allocation30_spill] sm:$0xff] %v9596_v14 }
 0x2a2   : > { %7820 = vmatprep.mubr.msk.f32.mxu1 %vm309_vm0, %v9445_v12  ;;  %12128 = vst [vmem:[#allocation28_spill] sm:$0xff] %v9588_v10  ;;  %12129 = vst [vmem:[#allocation29_spill] sm:$0xff] %v9594_v15  ;;  %v9602_v17 = vld [vmem:[#allocation2 + $0x159] sm:$0xff]  ;;  %v9610_v37 = vld [vmem:[#allocation2 + $0x169] sm:$0xff] }
 0x2a3   : > { %12131 = vst [vmem:[#allocation31_spill] sm:$0xff] %v9602_v17  ;;  %v9604_v60 = vld [vmem:[#allocation2 + $0x158] sm:$0xff]  ;;  %12133 = vst [vmem:[#allocation33_spill] sm:$0xff] %v9610_v37  ;;  %v9612_v16 = vld [vmem:[#allocation2 + $0x168] sm:$0xff] }
 0x2a4   : > { %7771 = vmatmul.mubr.msk.f32.gmra.mxu0 %vm309_vm0, %v9451_v23  ;;  %12132 = vst [vmem:[#allocation32_spill] sm:$0xff] %v9604_v60  ;;  %12134 = vst [vmem:[#allocation34_spill] sm:$0xff] %v9612_v16  ;;  %v1494_v19 = vld [vmem:[#allocation2 + $0x2] sm:$0xff]  ;;  %v9618_v0 = vld [vmem:[#allocation2 + $0x171] sm:$0xff] }
 0x2a5   : > { %7821 = vmatmul.mubr.msk.f32.gmra.mxu1 %vm309_vm0, %v9453_v26  ;;  %7773 = vmatprep.mubr.msk.f32.mxu0 %vm309_vm0, %v9459_v29  ;;  %12135 = vst [vmem:[#allocation35_spill] sm:$0xff] %v9618_v0  ;;  %v9620_v58 = vld [vmem:[#allocation2 + $0x170] sm:$0xff] }
 0x2a6   : > { %7823 = vmatprep.mubr.msk.f32.mxu1 %vm309_vm0, %v9461_v42  ;;  %v1495_v24 = vld [vmem:[#allocation2 + $0xa] sm:$0xff] }
 0x2a8   : > { %7774 = vmatmul.mubr.msk.f32.gmra.mxu0 %vm309_vm0, %v9467_v63 }
 0x2a9   : > { %7824 = vmatmul.mubr.msk.f32.gmra.mxu1 %vm309_vm0, %v9469_v22  ;;  %7776 = vmatprep.mubr.msk.f32.mxu0 %vm309_vm0, %v9480_v32 }
 0x2aa   : > { %7826 = vmatprep.mubr.msk.f32.mxu1 %vm309_vm0, %v9482_v1 }
 0x2ac   : > { %7777 = vmatmul.mubr.msk.f32.gmra.mxu0 %vm309_vm0, %v9490_v35 }
 0x2ad   : > { %7827 = vmatmul.mubr.msk.f32.gmra.mxu1 %vm309_vm0, %v9492_v3  ;;  %7779 = vmatprep.mubr.msk.f32.mxu0 %vm309_vm0, %v9498_v25 }
 0x2ae   : > { %7829 = vmatprep.mubr.msk.f32.mxu1 %vm309_vm0, %v9500_v38 }
 0x2b0   : > { %7780 = vmatmul.mubr.msk.f32.gmra.mxu0 %vm309_vm0, %v9506_v41 }
 0x2b1   : > { %7830 = vmatmul.mubr.msk.f32.gmra.mxu1 %vm309_vm0, %v9508_v11  ;;  %7782 = vmatprep.mubr.msk.f32.mxu0 %vm309_vm0, %v9514_v27 }
 0x2b2   : > { %7832 = vmatprep.mubr.msk.f32.mxu1 %vm309_vm0, %v9516_v30 }
 0x2b4   : > { %7783 = vmatmul.mubr.msk.f32.gmra.mxu0 %vm309_vm0, %v9522_v31 }
 0x2b5   : > { %7833 = vmatmul.mubr.msk.f32.gmra.mxu1 %vm309_vm0, %v9524_v34  ;;  %7785 = vmatprep.mubr.msk.f32.mxu0 %vm309_vm0, %v9530_v44 }
 0x2b6   : > { %7835 = vmatprep.mubr.msk.f32.mxu1 %vm309_vm0, %v9532_v47 }
 0x2b8   : > { %7786 = vmatmul.mubr.msk.f32.gmra.mxu0 %vm309_vm0, %v9538_v50 }
 0x2b9   : > { %7836 = vmatmul.mubr.msk.f32.gmra.mxu1 %vm309_vm0, %v9540_v53  ;;  %7788 = vmatprep.mubr.msk.f32.mxu0 %vm309_vm0, %v9546_v36 }
 0x2ba   : > { %7838 = vmatprep.mubr.msk.f32.mxu1 %vm309_vm0, %v9548_v39 }
 0x2bc   : > { %7789 = vmatmul.mubr.msk.f32.gmra.mxu0 %vm309_vm0, %v9554_v40 }
 0x2bd   : > { %7839 = vmatmul.mubr.msk.f32.gmra.mxu1 %vm309_vm0, %v9556_v43  ;;  %7791 = vmatprep.mubr.msk.f32.mxu0 %vm309_vm0, %v9562_v56 }
 0x2be   : > { %7841 = vmatprep.mubr.msk.f32.mxu1 %vm309_vm0, %v9564_v59 }
 0x2c0   : > { %7792 = vmatmul.mubr.msk.f32.gmra.mxu0 %vm309_vm0, %v9570_v62 }
 0x2c1   : > { %7842 = vmatmul.mubr.msk.f32.gmra.mxu1 %vm309_vm0, %v9572_v6  ;;  %7794 = vmatprep.mubr.msk.f32.mxu0 %vm309_vm0, %v9578_v45 }
 0x2c2   : > { %7844 = vmatprep.mubr.msk.f32.mxu1 %vm309_vm0, %v9580_v46 }
 0x2c4   : > { %7795 = vmatmul.mubr.msk.f32.gmra.mxu0 %vm309_vm0, %v9586_v48 }
 0x2c5   : > { %7845 = vmatmul.mubr.msk.f32.gmra.mxu1 %vm309_vm0, %v9588_v10  ;;  %7797 = vmatprep.mubr.msk.f32.mxu0 %vm309_vm0, %v9594_v15  ;;  %v9634_v15 = vld [vmem:[#allocation2 + $0x1a] sm:$0xff] }
 0x2c6   : > { %7847 = vmatprep.mubr.msk.f32.mxu1 %vm309_vm0, %v9596_v14 }
 0x2c8   : > { %7798 = vmatmul.mubr.msk.f32.gmra.mxu0 %vm309_vm0, %v9602_v17 }
 0x2c9   : > { %7848 = vmatmul.mubr.msk.f32.gmra.mxu1 %vm309_vm0, %v9604_v60  ;;  %7800 = vmatprep.mubr.msk.f32.mxu0 %vm309_vm0, %v9610_v37  ;;  %v7807_v37 = vpop.f32.mrf.mxu1 }
 0x2ca   : > { %7850 = vmatprep.mubr.msk.f32.mxu1 %vm309_vm0, %v9612_v16  ;;  %v9629_v17 = vadd.f32 %v7807_v37, %v7757_v51  ;;  %v9664_v37 = vld [vmem:[#allocation2 + $0x32] sm:$0xff] }
 0x2cb   : > { %v9682_v51 = vld [vmem:[#allocation2 + $0x52] sm:$0xff] }
 0x2cc   : > { %7801 = vmatmul.mubr.msk.f32.gmra.mxu0 %vm309_vm0, %v9618_v0  ;;  %12136 = vst [vmem:[#allocation36_spill] sm:$0xff] %v9629_v17  ;;  %v9639_v0 = vld [vmem:[%s12017_s3 + $0x18] sm:$0xf]  ;;  %v9694_v17 = vld [vmem:[#allocation2 + $0x6a] sm:$0xff] }
 0x2cd   : > { %7851 = vmatmul.mubr.msk.f32.gmra.mxu1 %vm309_vm0, %v9620_v58  ;;  %7855 = vmatprep.mubr.msk.f32.mxu0 %vm309_vm0, %v1494_v19  ;;  %v12137_v19 = vld [vmem:[#allocation7_spill] sm:$0xff] }
 0x2ce   : > { %7905 = vmatprep.mubr.msk.f32.mxu1 %vm309_vm0, %v9381_v52  ;;  %v9644_v52 = vld [vmem:[%s12017_s3 + $0x1c] sm:$0xf] }
 0x2d0   : > { %7856 = vmatmul.mubr.msk.f32.vlgmr.msra.gmra.mxu0 %vm309_vm0, %v1495_v24  ;;  %v9676_v24 = vld [vmem:[#allocation2 + $0x4a] sm:$0xff] }
 0x2d1   : > { %7906 = vmatmul.mubr.msk.f32.vlgmr.msra.gmra.mxu1 %vm309_vm0, %v9389_v28  ;;  %7954 = vmatpush3.msk.msra.mxu0 %vm941_vm2, %v12137_v19  ;;  %v9654_v28 = vld [vmem:[#allocation2 + $0x22] sm:$0xff] }
 0x2d2   : > { %7858 = vmatprep.mubr.msk.f32.mxu0 %vm309_vm0, %v9634_v15  ;;  %7908 = vmatprep.mubr.msk.f32.mxu1 %vm309_vm0, %v9397_v57  ;;  %v9688_v19 = vld [vmem:[#allocation2 + $0x62] sm:$0xff] }
 0x2d3   : > { %8004 = vmatpush3.msk.msra.mxu1 %vm941_vm2, %v9474_v8  ;;  %8053 = vmatprep.subr.msk.mxu0 %vm941_vm2, %v9639_v0  ;;  %v9670_v8 = vld [vmem:[#allocation2 + $0x3a] sm:$0xff] }
 0x2d4   : > { %8103 = vmatprep.subr.msk.mxu1 %vm941_vm2, %v9644_v52  ;;  %7859 = vmatmul.mubr.msk.f32.gmra.mxu0 %vm309_vm0, %v9654_v28 }
 0x2d5   : > { %7909 = vmatmul.mubr.msk.f32.gmra.mxu1 %vm309_vm0, %v9405_v61  ;;  %7861 = vmatprep.mubr.msk.f32.mxu0 %vm309_vm0, %v9664_v37 }
 0x2d6   : > { %7911 = vmatprep.mubr.msk.f32.mxu1 %vm309_vm0, %v9413_v2 }
 0x2d8   : > { %7862 = vmatmul.mubr.msk.f32.gmra.mxu0 %vm309_vm0, %v9670_v8 }
 0x2d9   : > { %7912 = vmatmul.mubr.msk.f32.gmra.mxu1 %vm309_vm0, %v9421_v18  ;;  %7864 = vmatprep.mubr.msk.f32.mxu0 %vm309_vm0, %v9676_v24  ;;  %v9822_v18 = vld [vmem:[#allocation2 + $0x180] sm:$0xff] }
 0x2da   : > { %7914 = vmatprep.mubr.msk.f32.mxu1 %vm309_vm0, %v9429_v20  ;;  %v9700_v20 = vld [vmem:[#allocation2 + $0x7a] sm:$0xff]  ;;  %12138 = vst [vmem:[#allocation7_spill] sm:$0xff] %v9822_v18 }
 0x2dc   : > { %7865 = vmatmul.mubr.msk.f32.gmra.mxu0 %vm309_vm0, %v9682_v51 }
 0x2dd   : > { %7915 = vmatmul.mubr.msk.f32.gmra.mxu1 %vm309_vm0, %v9437_v7  ;;  %7867 = vmatprep.mubr.msk.f32.mxu0 %vm309_vm0, %v9688_v19  ;;  %v9706_v7 = vld [vmem:[#allocation2 + $0x82] sm:$0xff] }
 0x2de   : > { %7917 = vmatprep.mubr.msk.f32.mxu1 %vm309_vm0, %v9445_v12  ;;  %v9712_v12 = vld [vmem:[#allocation2 + $0x92] sm:$0xff] }
 0x2e0   : > { %7868 = vmatmul.mubr.msk.f32.gmra.mxu0 %vm309_vm0, %v9694_v17 }
 0x2e1   : > { %7918 = vmatmul.mubr.msk.f32.gmra.mxu1 %vm309_vm0, %v9453_v26  ;;  %7870 = vmatprep.mubr.msk.f32.mxu0 %vm309_vm0, %v9700_v20  ;;  %v9718_v26 = vld [vmem:[#allocation2 + $0x9a] sm:$0xff] }
 0x2e2   : > { %7920 = vmatprep.mubr.msk.f32.mxu1 %vm309_vm0, %v9461_v42  ;;  %v9724_v42 = vld [vmem:[#allocation2 + $0xaa] sm:$0xff] }
 0x2e4   : > { %7871 = vmatmul.mubr.msk.f32.gmra.mxu0 %vm309_vm0, %v9706_v7 }
 0x2e5   : > { %7921 = vmatmul.mubr.msk.f32.gmra.mxu1 %vm309_vm0, %v9469_v22  ;;  %7873 = vmatprep.mubr.msk.f32.mxu0 %vm309_vm0, %v9712_v12  ;;  %v9730_v22 = vld [vmem:[#allocation2 + $0xb2] sm:$0xff] }
 0x2e6   : > { %7923 = vmatprep.mubr.msk.f32.mxu1 %vm309_vm0, %v9482_v1  ;;  %v9736_v1 = vld [vmem:[#allocation2 + $0xc2] sm:$0xff] }
 0x2e8   : > { %7874 = vmatmul.mubr.msk.f32.gmra.mxu0 %vm309_vm0, %v9718_v26 }
 0x2e9   : > { %7924 = vmatmul.mubr.msk.f32.gmra.mxu1 %vm309_vm0, %v9492_v3  ;;  %7876 = vmatprep.mubr.msk.f32.mxu0 %vm309_vm0, %v9724_v42  ;;  %v9742_v3 = vld [vmem:[#allocation2 + $0xca] sm:$0xff] }
 0x2ea   : > { %7926 = vmatprep.mubr.msk.f32.mxu1 %vm309_vm0, %v9500_v38  ;;  %v9748_v38 = vld [vmem:[#allocation2 + $0xda] sm:$0xff] }
 0x2ec   : > { %7877 = vmatmul.mubr.msk.f32.gmra.mxu0 %vm309_vm0, %v9730_v22 }
 0x2ed   : > { %7927 = vmatmul.mubr.msk.f32.gmra.mxu1 %vm309_vm0, %v9508_v11  ;;  %7879 = vmatprep.mubr.msk.f32.mxu0 %vm309_vm0, %v9736_v1  ;;  %v9754_v11 = vld [vmem:[#allocation2 + $0xe2] sm:$0xff] }
 0x2ee   : > { %7929 = vmatprep.mubr.msk.f32.mxu1 %vm309_vm0, %v9516_v30  ;;  %v9760_v30 = vld [vmem:[#allocation2 + $0xf2] sm:$0xff] }
 0x2f0   : > { %7880 = vmatmul.mubr.msk.f32.gmra.mxu0 %vm309_vm0, %v9742_v3 }
 0x2f1   : > { %7930 = vmatmul.mubr.msk.f32.gmra.mxu1 %vm309_vm0, %v9524_v34  ;;  %7882 = vmatprep.mubr.msk.f32.mxu0 %vm309_vm0, %v9748_v38  ;;  %v9766_v34 = vld [vmem:[#allocation2 + $0xfa] sm:$0xff] }
 0x2f2   : > { %7932 = vmatprep.mubr.msk.f32.mxu1 %vm309_vm0, %v9532_v47  ;;  %v9772_v47 = vld [vmem:[#allocation2 + $0x10a] sm:$0xff] }
 0x2f4   : > { %7883 = vmatmul.mubr.msk.f32.gmra.mxu0 %vm309_vm0, %v9754_v11 }
 0x2f5   : > { %7933 = vmatmul.mubr.msk.f32.gmra.mxu1 %vm309_vm0, %v9540_v53  ;;  %7885 = vmatprep.mubr.msk.f32.mxu0 %vm309_vm0, %v9760_v30  ;;  %v9778_v53 = vld [vmem:[#allocation2 + $0x112] sm:$0xff] }
 0x2f6   : > { %7935 = vmatprep.mubr.msk.f32.mxu1 %vm309_vm0, %v9548_v39  ;;  %v9784_v39 = vld [vmem:[#allocation2 + $0x122] sm:$0xff] }
 0x2f8   : > { %7886 = vmatmul.mubr.msk.f32.gmra.mxu0 %vm309_vm0, %v9766_v34 }
 0x2f9   : > { %7936 = vmatmul.mubr.msk.f32.gmra.mxu1 %vm309_vm0, %v9556_v43  ;;  %7888 = vmatprep.mubr.msk.f32.mxu0 %vm309_vm0, %v9772_v47  ;;  %v9790_v43 = vld [vmem:[#allocation2 + $0x12a] sm:$0xff] }
 0x2fa   : > { %7938 = vmatprep.mubr.msk.f32.mxu1 %vm309_vm0, %v9564_v59  ;;  %v9796_v59 = vld [vmem:[#allocation2 + $0x13a] sm:$0xff] }
 0x2fc   : > { %7889 = vmatmul.mubr.msk.f32.gmra.mxu0 %vm309_vm0, %v9778_v53 }
 0x2fd   : > { %7939 = vmatmul.mubr.msk.f32.gmra.mxu1 %vm309_vm0, %v9572_v6  ;;  %7891 = vmatprep.mubr.msk.f32.mxu0 %vm309_vm0, %v9784_v39  ;;  %v9802_v6 = vld [vmem:[#allocation2 + $0x142] sm:$0xff] }
 0x2fe   : > { %7941 = vmatprep.mubr.msk.f32.mxu1 %vm309_vm0, %v9580_v46  ;;  %v9808_v46 = vld [vmem:[#allocation2 + $0x152] sm:$0xff] }
 0x300   : > { %7892 = vmatmul.mubr.msk.f32.gmra.mxu0 %vm309_vm0, %v9790_v43 }
 0x301   : > { %7942 = vmatmul.mubr.msk.f32.gmra.mxu1 %vm309_vm0, %v9588_v10  ;;  %7894 = vmatprep.mubr.msk.f32.mxu0 %vm309_vm0, %v9796_v59  ;;  %v9814_v10 = vld [vmem:[#allocation2 + $0x15a] sm:$0xff] }
 0x302   : > { %7944 = vmatprep.mubr.msk.f32.mxu1 %vm309_vm0, %v9596_v14  ;;  %v9820_v14 = vld [vmem:[#allocation2 + $0x16a] sm:$0xff] }
 0x304   : > { %7895 = vmatmul.mubr.msk.f32.gmra.mxu0 %vm309_vm0, %v9802_v6 }
 0x305   : > { %7945 = vmatmul.mubr.msk.f32.gmra.mxu1 %vm309_vm0, %v9604_v60  ;;  %7897 = vmatprep.mubr.msk.f32.mxu0 %vm309_vm0, %v9808_v46  ;;  %v9828_v60 = vld [vmem:[#allocation2 + $0x172] sm:$0xff] }
 0x306   : > { %7947 = vmatprep.mubr.msk.f32.mxu1 %vm309_vm0, %v9612_v16  ;;  %v9830_v16 = vld [vmem:[#allocation2 + $0x188] sm:$0xff] }
 0x308   : > { %7898 = vmatmul.mubr.msk.f32.gmra.mxu0 %vm309_vm0, %v9814_v10 }
 0x309   : > { %7948 = vmatmul.mubr.msk.f32.gmra.mxu1 %vm309_vm0, %v9620_v58  ;;  %7900 = vmatprep.mubr.msk.f32.mxu0 %vm309_vm0, %v9820_v14 }
 0x30a   : > { %7950 = vmatprep.mubr.msk.f32.mxu1 %vm309_vm0, %v9822_v18  ;;  %v9847_v18 = vld [vmem:[%s12017_s3 + $0x20] sm:$0xf] }
 0x30c   : > { %7901 = vmatmul.mubr.msk.f32.gmra.mxu0 %vm309_vm0, %v9828_v60 }
 0x30d   : > { %7951 = vmatmul.mubr.msk.f32.gmra.mxu1 %vm309_vm0, %v9830_v16  ;;  %7955 = vmatprep.mubr.msk.f32.mxu0 %vm309_vm0, %v9379_v49  ;;  %v12139_v49 = vld [vmem:[#allocation29_spill] sm:$0xff] }
 0x30e   : > { %8005 = vmatprep.mubr.msk.f32.mxu1 %vm309_vm0, %v9634_v15  ;;  %v9995_v15 = vpop.f32.mrf.mxu0 }
 0x310   : > { %7956 = vmatmul.mubr.msk.f32.vlgmr.msra.gmra.mxu0 %vm309_vm0, %v9383_v54  ;;  %v12140_v54 = vld [vmem:[#allocation31_spill] sm:$0xff] }
 0x311   : > { %8006 = vmatmul.mubr.msk.f32.vlgmr.msra.gmra.mxu1 %vm309_vm0, %v9654_v28  ;;  %8054 = vmatpush3.msk.msra.mxu0 %vm941_vm2, %v9639_v0  ;;  %v12147_v28 = vld [vmem:[#allocation10_spill] sm:$0xff] }
 0x312   : > { %7958 = vmatprep.mubr.msk.f32.mxu0 %vm309_vm0, %v9395_v55  ;;  %8008 = vmatprep.mubr.msk.f32.mxu1 %vm309_vm0, %v9664_v37 }
 0x313   : > { %8104 = vmatpush3.msk.msra.mxu1 %vm941_vm2, %v9644_v52  ;;  %8153 = vmatprep.subr.msk.mxu0 %vm941_vm2, %v9847_v18 }
 0x314   : > { %7959 = vmatmul.mubr.msk.f32.gmra.mxu0 %vm309_vm0, %v9403_v33 }
 0x315   : > { %8009 = vmatmul.mubr.msk.f32.gmra.mxu1 %vm309_vm0, %v9670_v8  ;;  %7961 = vmatprep.mubr.msk.f32.mxu0 %vm309_vm0, %v9411_v13 }
 0x316   : > { %8011 = vmatprep.mubr.msk.f32.mxu1 %vm309_vm0, %v9676_v24 }
 0x318   : > { %7962 = vmatmul.mubr.msk.f32.gmra.mxu0 %vm309_vm0, %v9419_v4 }
 0x319   : > { %8012 = vmatmul.mubr.msk.f32.gmra.mxu1 %vm309_vm0, %v9682_v51  ;;  %7964 = vmatprep.mubr.msk.f32.mxu0 %vm309_vm0, %v9427_v21 }
 0x31a   : > { %8014 = vmatprep.mubr.msk.f32.mxu1 %vm309_vm0, %v9688_v19 }
 0x31c   : > { %7965 = vmatmul.mubr.msk.f32.gmra.mxu0 %vm309_vm0, %v9435_v5 }
 0x31d   : > { %8015 = vmatmul.mubr.msk.f32.gmra.mxu1 %vm309_vm0, %v9694_v17  ;;  %7967 = vmatprep.mubr.msk.f32.mxu0 %vm309_vm0, %v9443_v9 }
 0x31e   : > { %8017 = vmatprep.mubr.msk.f32.mxu1 %vm309_vm0, %v9700_v20 }
 0x320   : > { %7968 = vmatmul.mubr.msk.f32.gmra.mxu0 %vm309_vm0, %v9451_v23 }
 0x321   : > { %8018 = vmatmul.mubr.msk.f32.gmra.mxu1 %vm309_vm0, %v9706_v7  ;;  %7970 = vmatprep.mubr.msk.f32.mxu0 %vm309_vm0, %v9459_v29 }
 0x322   : > { %8020 = vmatprep.mubr.msk.f32.mxu1 %vm309_vm0, %v9712_v12 }
 0x324   : > { %7971 = vmatmul.mubr.msk.f32.gmra.mxu0 %vm309_vm0, %v9467_v63 }
 0x325   : > { %8021 = vmatmul.mubr.msk.f32.gmra.mxu1 %vm309_vm0, %v9718_v26  ;;  %7973 = vmatprep.mubr.msk.f32.mxu0 %vm309_vm0, %v9480_v32 }
 0x326   : > { %8023 = vmatprep.mubr.msk.f32.mxu1 %vm309_vm0, %v9724_v42 }
 0x328   : > { %7974 = vmatmul.mubr.msk.f32.gmra.mxu0 %vm309_vm0, %v9490_v35 }
 0x329   : > { %8024 = vmatmul.mubr.msk.f32.gmra.mxu1 %vm309_vm0, %v9730_v22  ;;  %7976 = vmatprep.mubr.msk.f32.mxu0 %vm309_vm0, %v9498_v25 }
 0x32a   : > { %8026 = vmatprep.mubr.msk.f32.mxu1 %vm309_vm0, %v9736_v1 }
 0x32c   : > { %7977 = vmatmul.mubr.msk.f32.gmra.mxu0 %vm309_vm0, %v9506_v41 }
 0x32d   : > { %8027 = vmatmul.mubr.msk.f32.gmra.mxu1 %vm309_vm0, %v9742_v3  ;;  %7979 = vmatprep.mubr.msk.f32.mxu0 %vm309_vm0, %v9514_v27 }
 0x32e   : > { %8029 = vmatprep.mubr.msk.f32.mxu1 %vm309_vm0, %v9748_v38 }
 0x330   : > { %7980 = vmatmul.mubr.msk.f32.gmra.mxu0 %vm309_vm0, %v9522_v31 }
 0x331   : > { %8030 = vmatmul.mubr.msk.f32.gmra.mxu1 %vm309_vm0, %v9754_v11  ;;  %7982 = vmatprep.mubr.msk.f32.mxu0 %vm309_vm0, %v9530_v44 }
 0x332   : > { %8032 = vmatprep.mubr.msk.f32.mxu1 %vm309_vm0, %v9760_v30 }
 0x334   : > { %7983 = vmatmul.mubr.msk.f32.gmra.mxu0 %vm309_vm0, %v9538_v50 }
 0x335   : > { %8033 = vmatmul.mubr.msk.f32.gmra.mxu1 %vm309_vm0, %v9766_v34  ;;  %7985 = vmatprep.mubr.msk.f32.mxu0 %vm309_vm0, %v9546_v36 }
 0x336   : > { %8035 = vmatprep.mubr.msk.f32.mxu1 %vm309_vm0, %v9772_v47 }
 0x338   : > { %7986 = vmatmul.mubr.msk.f32.gmra.mxu0 %vm309_vm0, %v9554_v40 }
 0x339   : > { %8036 = vmatmul.mubr.msk.f32.gmra.mxu1 %vm309_vm0, %v9778_v53  ;;  %7988 = vmatprep.mubr.msk.f32.mxu0 %vm309_vm0, %v9562_v56  ;;  %v12141_v53 = vld [vmem:[#allocation33_spill] sm:$0xff] }
 0x33a   : > { %8038 = vmatprep.mubr.msk.f32.mxu1 %vm309_vm0, %v9784_v39 }
 0x33c   : > { %7989 = vmatmul.mubr.msk.f32.gmra.mxu0 %vm309_vm0, %v9570_v62 }
 0x33d   : > { %8039 = vmatmul.mubr.msk.f32.gmra.mxu1 %vm309_vm0, %v9790_v43  ;;  %7991 = vmatprep.mubr.msk.f32.mxu0 %vm309_vm0, %v9578_v45  ;;  %v12142_v43 = vld [vmem:[#allocation35_spill] sm:$0xff] }
 0x33e   : > { %8041 = vmatprep.mubr.msk.f32.mxu1 %vm309_vm0, %v9796_v59  ;;  %v9967_v59 = vld [vmem:[#allocation2 + $0x181] sm:$0xff] }
 0x340   : > { %7992 = vmatmul.mubr.msk.f32.gmra.mxu0 %vm309_vm0, %v9586_v48 }
 0x341   : > { %8042 = vmatmul.mubr.msk.f32.gmra.mxu1 %vm309_vm0, %v9802_v6  ;;  %7994 = vmatprep.mubr.msk.f32.mxu0 %vm309_vm0, %v12139_v49  ;;  %v9969_v6 = vld [vmem:[#allocation2 + $0x182] sm:$0xff] }
 0x342   : > { %8044 = vmatprep.mubr.msk.f32.mxu1 %vm309_vm0, %v9808_v46  ;;  %12143 = vst [vmem:[#allocation29_spill] sm:$0xff] %v9969_v6  ;;  %v9975_v46 = vld [vmem:[#allocation2 + $0x189] sm:$0xff] }
 0x344   : > { %7995 = vmatmul.mubr.msk.f32.gmra.mxu0 %vm309_vm0, %v12140_v54 }
 0x345   : > { %8045 = vmatmul.mubr.msk.f32.gmra.mxu1 %vm309_vm0, %v9814_v10  ;;  %7997 = vmatprep.mubr.msk.f32.mxu0 %vm309_vm0, %v12141_v53  ;;  %v9977_v10 = vld [vmem:[#allocation2 + $0x18a] sm:$0xff] }
 0x346   : > { %8047 = vmatprep.mubr.msk.f32.mxu1 %vm309_vm0, %v9820_v14  ;;  %12144 = vst [vmem:[#allocation31_spill] sm:$0xff] %v9977_v10  ;;  %v9997_v14 = vpop.f32.mrf.mxu1 }
 0x348   : > { %7998 = vmatmul.mubr.msk.f32.gmra.mxu0 %vm309_vm0, %v12142_v43 }
 0x349   : > { %8048 = vmatmul.mubr.msk.f32.gmra.mxu1 %vm309_vm0, %v9828_v60  ;;  %8000 = vmatprep.mubr.msk.f32.mxu0 %vm309_vm0, %v9967_v59  ;;  %v12145_v60 = vld [vmem:[#allocation8_spill] sm:$0xff] }
 0x34a   : > { %8050 = vmatprep.mubr.msk.f32.mxu1 %vm309_vm0, %v9969_v6  ;;  %v12167_v6 = vld [vmem:[#allocation32_spill] sm:$0xff] }
 0x34c   : > { %8001 = vmatmul.mubr.msk.f32.gmra.mxu0 %vm309_vm0, %v9975_v46 }
 0x34d   : > { %8051 = vmatmul.mubr.msk.f32.gmra.mxu1 %vm309_vm0, %v9977_v10  ;;  %8055 = vmatprep.mubr.msk.f32.mxu0 %vm309_vm0, %v9397_v57  ;;  %v12165_v10 = vld [vmem:[#allocation28_spill] sm:$0xff] }
 0x34e   : > { %8105 = vmatprep.mubr.msk.f32.mxu1 %vm309_vm0, %v9395_v55 }
 0x350   : > { %8056 = vmatmul.mubr.msk.f32.vlgmr.msra.gmra.mxu0 %vm309_vm0, %v9405_v61  ;;  %v12146_v61 = vld [vmem:[#allocation9_spill] sm:$0xff] }
 0x351   : > { %8106 = vmatmul.mubr.msk.f32.vlgmr.msra.gmra.mxu1 %vm309_vm0, %v9403_v33  ;;  %8154 = vmatpush3.msk.msra.mxu0 %vm941_vm2, %v9847_v18 }
 0x352   : > { %8058 = vmatprep.mubr.msk.f32.mxu0 %vm309_vm0, %v9413_v2  ;;  %8108 = vmatprep.mubr.msk.f32.mxu1 %vm309_vm0, %v9411_v13 }
 0x354   : > { %v7760_v55 = vpop.f32.mrf.mxu0  ;;  %8059 = vmatmul.mubr.msk.f32.gmra.mxu0 %vm309_vm0, %v12145_v60 }
 0x355   : > { %v7810_v57 = vpop.f32.mrf.mxu1  ;;  %8109 = vmatmul.mubr.msk.f32.gmra.mxu1 %vm309_vm0, %v9419_v4  ;;  %8061 = vmatprep.mubr.msk.f32.mxu0 %vm309_vm0, %v12146_v61 }
 0x356   : > { %v10005_v33 = vadd.f32 %v7810_v57, %v7760_v55  ;;  %8111 = vmatprep.mubr.msk.f32.mxu1 %vm309_vm0, %v9427_v21  ;;  %v1021_v2 = vpop.f32.mrf.mxu0  ;;  %v12148_v55 = vld [vmem:[#allocation11_spill] sm:$0xff] }
 0x357   : > { %v1345_v18 = vpop.f32.mrf.mxu1 }
 0x358   : > { %v10011_v0 = vadd.f32 %v1345_v18, %v1021_v2  ;;  %v7763_v13 = vpop.f32.mrf.mxu0  ;;  %8062 = vmatmul.mubr.msk.f32.gmra.mxu0 %vm309_vm0, %v12147_v28  ;;  %v12149_v18 = vld [vmem:[#allocation12_spill] sm:$0xff] }
 0x359   : > { %v7813_v52 = vpop.f32.mrf.mxu1  ;;  %8112 = vmatmul.mubr.msk.f32.gmra.mxu1 %vm309_vm0, %v9435_v5  ;;  %8064 = vmatprep.mubr.msk.f32.mxu0 %vm309_vm0, %v12148_v55 }
 0x35a   : > { %v10017_v4 = vadd.f32 %v7813_v52, %v7763_v13  ;;  %8114 = vmatprep.mubr.msk.f32.mxu1 %vm309_vm0, %v9443_v9  ;;  %v1031_v21 = vpop.f32.mrf.mxu0  ;;  %v12150_v13 = vld [vmem:[#allocation13_spill] sm:$0xff] }
 0x35b   : > { %v1355_v57 = vpop.f32.mrf.mxu1 }
 0x35c   : > { %v10023_v60 = vadd.f32 %v1355_v57, %v1031_v21  ;;  %v7766_v61 = vpop.f32.mrf.mxu0  ;;  %8065 = vmatmul.mubr.msk.f32.gmra.mxu0 %vm309_vm0, %v12149_v18  ;;  %v12151_v57 = vld [vmem:[#allocation14_spill] sm:$0xff] }
 0x35d   : > { %v7816_v2 = vpop.f32.mrf.mxu1  ;;  %8115 = vmatmul.mubr.msk.f32.gmra.mxu1 %vm309_vm0, %v9451_v23  ;;  %8067 = vmatprep.mubr.msk.f32.mxu0 %vm309_vm0, %v12150_v13 }
 0x35e   : > { %v10029_v5 = vadd.f32 %v7816_v2, %v7766_v61  ;;  %8117 = vmatprep.mubr.msk.f32.mxu1 %vm309_vm0, %v9459_v29  ;;  %v1041_v9 = vpop.f32.mrf.mxu0  ;;  %v12152_v61 = vld [vmem:[#allocation15_spill] sm:$0xff] }
 0x35f   : > { %v1365_v52 = vpop.f32.mrf.mxu1 }
 0x360   : > { %v10035_v28 = vadd.f32 %v1365_v52, %v1041_v9  ;;  %v7769_v55 = vpop.f32.mrf.mxu0  ;;  %8068 = vmatmul.mubr.msk.f32.gmra.mxu0 %vm309_vm0, %v12151_v57  ;;  %v12153_v52 = vld [vmem:[#allocation16_spill] sm:$0xff] }
 0x361   : > { %v7819_v21 = vpop.f32.mrf.mxu1  ;;  %8118 = vmatmul.mubr.msk.f32.gmra.mxu1 %vm309_vm0, %v9467_v63  ;;  %8070 = vmatprep.mubr.msk.f32.mxu0 %vm309_vm0, %v12152_v61 }
 0x362   : > { %v10041_v23 = vadd.f32 %v7819_v21, %v7769_v55  ;;  %8120 = vmatprep.mubr.msk.f32.mxu1 %vm309_vm0, %v9480_v32  ;;  %v1051_v29 = vpop.f32.mrf.mxu0  ;;  %v12154_v55 = vld [vmem:[#allocation17_spill] sm:$0xff] }
 0x363   : > { %v1375_v2 = vpop.f32.mrf.mxu1 }
 0x364   : > { %v10047_v18 = vadd.f32 %v1375_v2, %v1051_v29  ;;  %v7772_v13 = vpop.f32.mrf.mxu0  ;;  %8071 = vmatmul.mubr.msk.f32.gmra.mxu0 %vm309_vm0, %v12153_v52  ;;  %v12155_v2 = vld [vmem:[#allocation18_spill] sm:$0xff] }
 0x365   : > { %v7822_v9 = vpop.f32.mrf.mxu1  ;;  %8121 = vmatmul.mubr.msk.f32.gmra.mxu1 %vm309_vm0, %v9490_v35  ;;  %8073 = vmatprep.mubr.msk.f32.mxu0 %vm309_vm0, %v12154_v55 }
 0x366   : > { %v10053_v63 = vadd.f32 %v7822_v9, %v7772_v13  ;;  %8123 = vmatprep.mubr.msk.f32.mxu1 %vm309_vm0, %v9498_v25  ;;  %v1061_v32 = vpop.f32.mrf.mxu0  ;;  %v12156_v13 = vld [vmem:[#allocation19_spill] sm:$0xff] }
 0x367   : > { %v1385_v21 = vpop.f32.mrf.mxu1 }
 0x368   : > { %v10059_v57 = vadd.f32 %v1385_v21, %v1061_v32  ;;  %v7775_v61 = vpop.f32.mrf.mxu0  ;;  %8074 = vmatmul.mubr.msk.f32.gmra.mxu0 %vm309_vm0, %v12155_v2  ;;  %v12157_v21 = vld [vmem:[#allocation20_spill] sm:$0xff] }
 0x369   : > { %v7825_v29 = vpop.f32.mrf.mxu1  ;;  %8124 = vmatmul.mubr.msk.f32.gmra.mxu1 %vm309_vm0, %v9506_v41  ;;  %8076 = vmatprep.mubr.msk.f32.mxu0 %vm309_vm0, %v12156_v13 }
 0x36a   : > { %v10065_v35 = vadd.f32 %v7825_v29, %v7775_v61  ;;  %8126 = vmatprep.mubr.msk.f32.mxu1 %vm309_vm0, %v9514_v27  ;;  %v1071_v25 = vpop.f32.mrf.mxu0  ;;  %v12158_v61 = vld [vmem:[#allocation21_spill] sm:$0xff] }
 0x36b   : > { %v1395_v9 = vpop.f32.mrf.mxu1 }
 0x36c   : > { %v10071_v52 = vadd.f32 %v1395_v9, %v1071_v25  ;;  %v7778_v55 = vpop.f32.mrf.mxu0  ;;  %8077 = vmatmul.mubr.msk.f32.gmra.mxu0 %vm309_vm0, %v12157_v21  ;;  %v12159_v9 = vld [vmem:[#allocation22_spill] sm:$0xff] }
 0x36d   : > { %v7828_v32 = vpop.f32.mrf.mxu1  ;;  %8127 = vmatmul.mubr.msk.f32.gmra.mxu1 %vm309_vm0, %v9522_v31  ;;  %8079 = vmatprep.mubr.msk.f32.mxu0 %vm309_vm0, %v12158_v61 }
 0x36e   : > { %v10077_v41 = vadd.f32 %v7828_v32, %v7778_v55  ;;  %8129 = vmatprep.mubr.msk.f32.mxu1 %vm309_vm0, %v9530_v44  ;;  %v1081_v27 = vpop.f32.mrf.mxu0  ;;  %v12160_v55 = vld [vmem:[#allocation23_spill] sm:$0xff] }
 0x36f   : > { %v1405_v29 = vpop.f32.mrf.mxu1 }
 0x370   : > { %v10083_v2 = vadd.f32 %v1405_v29, %v1081_v27  ;;  %v7781_v13 = vpop.f32.mrf.mxu0  ;;  %8080 = vmatmul.mubr.msk.f32.gmra.mxu0 %vm309_vm0, %v12159_v9  ;;  %v12161_v27 = vld [vmem:[#allocation24_spill] sm:$0xff]  ;;  %v12162_v29 = vld [vmem:[#allocation25_spill] sm:$0xff] }
 0x371   : > { %v7831_v25 = vpop.f32.mrf.mxu1  ;;  %8130 = vmatmul.mubr.msk.f32.gmra.mxu1 %vm309_vm0, %v9538_v50  ;;  %8082 = vmatprep.mubr.msk.f32.mxu0 %vm309_vm0, %v12160_v55  ;;  %v12163_v55 = vld [vmem:[#allocation26_spill] sm:$0xff] }
 0x372   : > { %v10089_v31 = vadd.f32 %v7831_v25, %v7781_v13  ;;  %8132 = vmatprep.mubr.msk.f32.mxu1 %vm309_vm0, %v9546_v36  ;;  %v10095_v44 = vpop.f32.mrf.mxu0 }
 0x373   : > { %v10097_v32 = vpop.f32.mrf.mxu1 }
 0x374   : > { %v7784_v21 = vpop.f32.mrf.mxu0  ;;  %8083 = vmatmul.mubr.msk.f32.gmra.mxu0 %vm309_vm0, %v12161_v27 }
 0x375   : > { %v7834_v61 = vpop.f32.mrf.mxu1  ;;  %8133 = vmatmul.mubr.msk.f32.gmra.mxu1 %vm309_vm0, %v9554_v40  ;;  %8085 = vmatprep.mubr.msk.f32.mxu0 %vm309_vm0, %v12162_v29 }
 0x376   : > { %v10103_v50 = vadd.f32 %v7834_v61, %v7784_v21  ;;  %8135 = vmatprep.mubr.msk.f32.mxu1 %vm309_vm0, %v9562_v56  ;;  %v10109_v36 = vpop.f32.mrf.mxu0  ;;  %v12164_v21 = vld [vmem:[#allocation27_spill] sm:$0xff] }
 0x377   : > { %v10111_v13 = vpop.f32.mrf.mxu1 }
 0x378   : > { %v7787_v25 = vpop.f32.mrf.mxu0  ;;  %8086 = vmatmul.mubr.msk.f32.gmra.mxu0 %vm309_vm0, %v12163_v55 }
 0x379   : > { %v7837_v9 = vpop.f32.mrf.mxu1  ;;  %8136 = vmatmul.mubr.msk.f32.gmra.mxu1 %vm309_vm0, %v9570_v62  ;;  %8088 = vmatprep.mubr.msk.f32.mxu0 %vm309_vm0, %v12164_v21 }
 0x37a   : > { %v10117_v40 = vadd.f32 %v7837_v9, %v7787_v25  ;;  %8138 = vmatprep.mubr.msk.f32.mxu1 %vm309_vm0, %v9578_v45  ;;  %v10123_v56 = vpop.f32.mrf.mxu0  ;;  %v12166_v25 = vld [vmem:[#allocation30_spill] sm:$0xff] }
 0x37b   : > { %v10125_v61 = vpop.f32.mrf.mxu1 }
 0x37c   : > { %v7790_v27 = vpop.f32.mrf.mxu0  ;;  %8089 = vmatmul.mubr.msk.f32.gmra.mxu0 %vm309_vm0, %v12165_v10  ;;  %v12169_v10 = vld [vmem:[#allocation34_spill] sm:$0xff] }
 0x37d   : > { %v7840_v29 = vpop.f32.mrf.mxu1  ;;  %8139 = vmatmul.mubr.msk.f32.gmra.mxu1 %vm309_vm0, %v9586_v48  ;;  %8091 = vmatprep.mubr.msk.f32.mxu0 %vm309_vm0, %v12166_v25 }
 0x37e   : > { %v10131_v62 = vadd.f32 %v7840_v29, %v7790_v27  ;;  %8141 = vmatprep.mubr.msk.f32.mxu1 %vm309_vm0, %v12139_v49  ;;  %v10137_v45 = vpop.f32.mrf.mxu0 }
 0x37f   : > { %v10139_v9 = vpop.f32.mrf.mxu1 }
 0x380   : > { %v7793_v55 = vpop.f32.mrf.mxu0  ;;  %8092 = vmatmul.mubr.msk.f32.gmra.mxu0 %vm309_vm0, %v12167_v6  ;;  %v12172_v6 = vld [vmem:[#allocation7_spill] sm:$0xff] }
 0x381   : > { %v7843_v21 = vpop.f32.mrf.mxu1  ;;  %8142 = vmatmul.mubr.msk.f32.gmra.mxu1 %vm309_vm0, %v12140_v54  ;;  %8094 = vmatprep.mubr.msk.f32.mxu0 %vm309_vm0, %v12169_v10  ;;  %v3475_v10 = vld [vmem:[#allocation2 + $0x199] sm:$0xff] }
 0x382   : > { %v10145_v48 = vadd.f32 %v7843_v21, %v7793_v55  ;;  %8144 = vmatprep.mubr.msk.f32.mxu1 %vm309_vm0, %v12141_v53  ;;  %v10151_v49 = vpop.f32.mrf.mxu0  ;;  %v3085_v21 = vld [vmem:[#allocation2 + $0x198] sm:$0xff] }
 0x383   : > { %12170 = vst [vmem:[#allocation35_spill] sm:$0xff] %v10151_v49  ;;  %v10153_v27 = vpop.f32.mrf.mxu1 }
 0x384   : > { %12168 = vst [vmem:[#allocation33_spill] sm:$0xff] %v10145_v48  ;;  %12171 = vst [vmem:[#allocation8_spill] sm:$0xff] %v10153_v27  ;;  %v7796_v29 = vpop.f32.mrf.mxu0  ;;  %8095 = vmatmul.mubr.msk.f32.gmra.mxu0 %vm309_vm0, %v9620_v58 }
 0x385   : > { %v7846_v25 = vpop.f32.mrf.mxu1  ;;  %8145 = vmatmul.mubr.msk.f32.gmra.mxu1 %vm309_vm0, %v12142_v43  ;;  %8097 = vmatprep.mubr.msk.f32.mxu0 %vm309_vm0, %v12172_v6  ;;  %v3086_v43 = vld [vmem:[#allocation2 + $0x1a0] sm:$0xff] }
 0x386   : > { %v10159_v54 = vadd.f32 %v7846_v25, %v7796_v29  ;;  %8147 = vmatprep.mubr.msk.f32.mxu1 %vm309_vm0, %v9967_v59  ;;  %v1141_v53 = vpop.f32.mrf.mxu0  ;;  %v3476_v59 = vld [vmem:[#allocation2 + $0x1a1] sm:$0xff] }
 0x387   : > { %v1465_v55 = vpop.f32.mrf.mxu1 }
 0x388   : > { %v10165_v48 = vadd.f32 %v1465_v55, %v1141_v53  ;;  %v7799_v27 = vpop.f32.mrf.mxu0  ;;  %8098 = vmatmul.mubr.msk.f32.gmra.mxu0 %vm309_vm0, %v9830_v16 }
 0x389   : > { %v7849_v49 = vpop.f32.mrf.mxu1  ;;  %8148 = vmatmul.mubr.msk.f32.gmra.mxu1 %vm309_vm0, %v9975_v46  ;;  %8100 = vmatprep.mubr.msk.f32.mxu0 %vm309_vm0, %v3085_v21 }
 0x38a   : > { %v10171_v58 = vadd.f32 %v7849_v49, %v7799_v27  ;;  %8150 = vmatprep.mubr.msk.f32.mxu1 %vm309_vm0, %v3475_v10  ;;  %v1151_v29 = vpop.f32.mrf.mxu0 }
 0x38b   : > { %v1475_v25 = vpop.f32.mrf.mxu1 }
 0x38c   : > { %v10175_v6 = vadd.f32 %v1475_v25, %v1151_v29  ;;  %v7802_v53 = vpop.f32.mrf.mxu0  ;;  %8101 = vmatmul.mubr.msk.f32.gmra.mxu0 %vm309_vm0, %v3086_v43  ;;  %v1336_v29 = vadd.f32 %v9997_v14, %v9995_v15  ;;  %v12174_v43 = vld [vmem:[#allocation36_spill] sm:$0xff] }
 0x38d   : > { %v7852_v55 = vpop.f32.mrf.mxu1  ;;  %8151 = vmatmul.mubr.msk.f32.gmra.mxu1 %vm309_vm0, %v3476_v59  ;;  %8155 = vmatprep.mubr.msk.f32.mxu0 %vm309_vm0, %v9664_v37 }
 0x38e   : > { %v10179_v16 = vadd.f32 %v7852_v55, %v7802_v53  ;;  %v1161_v46 = vpop.f32.mrf.mxu0 }
 0x38f   : > { %v1485_v49 = vpop.f32.mrf.mxu1 }
 0x390   : > { %v10183_v27 = vadd.f32 %v1485_v49, %v1161_v46  ;;  %v7857_v21 = vpop.f32.mrf.mxu0  ;;  %8156 = vmatmul.mubr.msk.f32.vlgmr.msra.gmra.mxu0 %vm309_vm0, %v9670_v8 }
 0x391   : > { %v7907_v10 = vpop.f32.mrf.mxu1  ;;  %v1853_v25 = vadd.f32 %v7857_v21, %v12174_v43  ;;  %8158 = vmatprep.mubr.msk.f32.mxu0 %vm309_vm0, %v9676_v24 }
 0x392   : > { %12173 = vst [vmem:[#allocation9_spill] sm:$0xff] %v10183_v27  ;;  %v1693_v59 = vpop.f32.mrf.mxu0 }
 0x393   : > { %v2083_v53 = vpop.f32.mrf.mxu1  ;;  %v10192_v37 = vadd.f32 %v7907_v10, %v1853_v25  ;;  %v1852_v55 = vadd.f32 %v1693_v59, %v1336_v29 }
 0x394   : > { %v7860_v46 = vpop.f32.mrf.mxu0  ;;  %8159 = vmatmul.mubr.msk.f32.gmra.mxu0 %vm309_vm0, %v9682_v51 }
 0x395   : > { %v7910_v49 = vpop.f32.mrf.mxu1  ;;  %v10196_v27 = vadd.f32 %v2083_v53, %v1852_v55  ;;  %v1855_v8 = vadd.f32 %v7860_v46, %v10005_v33  ;;  %8161 = vmatprep.mubr.msk.f32.mxu0 %vm309_vm0, %v9688_v19 }
 0x396   : > { %v1703_v15 = vpop.f32.mrf.mxu0 }
 0x397   : > { %v2093_v14 = vpop.f32.mrf.mxu1  ;;  %v10201_v24 = vadd.f32 %v7910_v49, %v1855_v8  ;;  %v1854_v21 = vadd.f32 %v1703_v15, %v10011_v0 }
 0x398   : > { %v7863_v10 = vpop.f32.mrf.mxu0  ;;  %8162 = vmatmul.mubr.msk.f32.gmra.mxu0 %vm309_vm0, %v9694_v17 }
 0x399   : > { %v7913_v29 = vpop.f32.mrf.mxu1  ;;  %v10206_v43 = vadd.f32 %v2093_v14, %v1854_v21  ;;  %v1857_v51 = vadd.f32 %v7863_v10, %v10017_v4  ;;  %8164 = vmatprep.mubr.msk.f32.mxu0 %vm309_vm0, %v9700_v20 }
 0x39a   : > { %v1713_v33 = vpop.f32.mrf.mxu0 }
 0x39b   : > { %v2103_v19 = vpop.f32.mrf.mxu1  ;;  %v10211_v25 = vadd.f32 %v7913_v29, %v1857_v51  ;;  %v1856_v59 = vadd.f32 %v1713_v33, %v10023_v60 }
 0x39c   : > { %v7866_v53 = vpop.f32.mrf.mxu0  ;;  %8165 = vmatmul.mubr.msk.f32.gmra.mxu0 %vm309_vm0, %v9706_v7 }
 0x39d   : > { %v7916_v0 = vpop.f32.mrf.mxu1  ;;  %v10216_v55 = vadd.f32 %v2103_v19, %v1856_v59  ;;  %v1859_v17 = vadd.f32 %v7866_v53, %v10029_v5  ;;  %8167 = vmatprep.mubr.msk.f32.mxu0 %vm309_vm0, %v9712_v12 }
 0x39e   : > { %v1723_v4 = vpop.f32.mrf.mxu0 }
 0x39f   : > { %v2113_v20 = vpop.f32.mrf.mxu1  ;;  %v10221_v46 = vadd.f32 %v7916_v0, %v1859_v17  ;;  %v1858_v49 = vadd.f32 %v1723_v4, %v10035_v28 }
 0x3a0   : > { %v7869_v8 = vpop.f32.mrf.mxu0  ;;  %8168 = vmatmul.mubr.msk.f32.gmra.mxu0 %vm309_vm0, %v9718_v26 }
 0x3a1   : > { %v7919_v60 = vpop.f32.mrf.mxu1  ;;  %v10226_v15 = vadd.f32 %v2113_v20, %v1858_v49  ;;  %v1861_v7 = vadd.f32 %v7869_v8, %v10041_v23  ;;  %8170 = vmatprep.mubr.msk.f32.mxu0 %vm309_vm0, %v9724_v42 }
 0x3a2   : > { %v1733_v5 = vpop.f32.mrf.mxu0 }
 0x3a3   : > { %v2123_v12 = vpop.f32.mrf.mxu1  ;;  %v10231_v14 = vadd.f32 %v7919_v60, %v1861_v7  ;;  %v1860_v21 = vadd.f32 %v1733_v5, %v10047_v18 }
 0x3a4   : > { %v7872_v10 = vpop.f32.mrf.mxu0  ;;  %8171 = vmatmul.mubr.msk.f32.gmra.mxu0 %vm309_vm0, %v9730_v22 }
 0x3a5   : > { %v7922_v28 = vpop.f32.mrf.mxu1  ;;  %v10236_v29 = vadd.f32 %v2123_v12, %v1860_v21  ;;  %v1863_v26 = vadd.f32 %v7872_v10, %v10053_v63  ;;  %8173 = vmatprep.mubr.msk.f32.mxu0 %vm309_vm0, %v9736_v1  ;;  %v3854_v12 = vld [vmem:[#allocation2 + $0x112] sm:$0xff] }
 0x3a6   : > { %v1743_v23 = vpop.f32.mrf.mxu0 }
 0x3a7   : > { %v2133_v42 = vpop.f32.mrf.mxu1  ;;  %v10241_v51 = vadd.f32 %v7922_v28, %v1863_v26  ;;  %v1862_v33 = vadd.f32 %v1743_v23, %v10059_v57  ;;  %v3856_v23 = vld [vmem:[#allocation2 + $0x12a] sm:$0xff] }
 0x3a8   : > { %v7875_v19 = vpop.f32.mrf.mxu0  ;;  %8174 = vmatmul.mubr.msk.f32.gmra.mxu0 %vm309_vm0, %v9742_v3 }
 0x3a9   : > { %v7925_v18 = vpop.f32.mrf.mxu1  ;;  %v10246_v59 = vadd.f32 %v2133_v42, %v1862_v33  ;;  %v1865_v22 = vadd.f32 %v7875_v19, %v10065_v35  ;;  %8176 = vmatprep.mubr.msk.f32.mxu0 %vm309_vm0, %v9748_v38  ;;  %v3857_v19 = vld [vmem:[#allocation2 + $0x13a] sm:$0xff] }
 0x3aa   : > { %v1753_v63 = vpop.f32.mrf.mxu0 }
 0x3ab   : > { %v2143_v1 = vpop.f32.mrf.mxu1  ;;  %v10251_v53 = vadd.f32 %v7925_v18, %v1865_v22  ;;  %v1864_v0 = vadd.f32 %v1753_v63, %v10071_v52 }
 0x3ac   : > { %v7878_v17 = vpop.f32.mrf.mxu0  ;;  %8177 = vmatmul.mubr.msk.f32.gmra.mxu0 %vm309_vm0, %v9754_v11  ;;  %v1416_v11 = vadd.f32 %v10097_v32, %v10095_v44 }
 0x3ad   : > { %v7928_v57 = vpop.f32.mrf.mxu1  ;;  %v10256_v4 = vadd.f32 %v2143_v1, %v1864_v0  ;;  %v1867_v3 = vadd.f32 %v7878_v17, %v10077_v41  ;;  %8179 = vmatprep.mubr.msk.f32.mxu0 %vm309_vm0, %v9760_v30  ;;  %v3858_v1 = vld [vmem:[#allocation2 + $0x142] sm:$0xff] }
 0x3ae   : > { %v1763_v35 = vpop.f32.mrf.mxu0 }
 0x3af   : > { %v2153_v38 = vpop.f32.mrf.mxu1  ;;  %v10261_v20 = vadd.f32 %v7928_v57, %v1867_v3  ;;  %v1866_v49 = vadd.f32 %v1763_v35, %v10083_v2  ;;  %v3859_v57 = vld [vmem:[#allocation2 + $0x152] sm:$0xff] }
 0x3b0   : > { %v7881_v8 = vpop.f32.mrf.mxu0  ;;  %8180 = vmatmul.mubr.msk.f32.gmra.mxu0 %vm309_vm0, %v9766_v34  ;;  %v1426_v34 = vadd.f32 %v10111_v13, %v10109_v36  ;;  %v1436_v36 = vadd.f32 %v10125_v61, %v10123_v56  ;;  %v1446_v56 = vadd.f32 %v10139_v9, %v10137_v45 }
 0x3b1   : > { %v7931_v52 = vpop.f32.mrf.mxu1  ;;  %v10268_v60 = vadd.f32 %v2153_v38, %v1866_v49  ;;  %v1869_v41 = vadd.f32 %v7881_v8, %v10089_v31  ;;  %8182 = vmatprep.mubr.msk.f32.mxu0 %vm309_vm0, %v9772_v47  ;;  %v3860_v8 = vld [vmem:[#allocation2 + $0x15a] sm:$0xff] }
 0x3b2   : > { %v1773_v30 = vpop.f32.mrf.mxu0 }
 0x3b3   : > { %v2163_v7 = vpop.f32.mrf.mxu1  ;;  %v10273_v5 = vadd.f32 %v7931_v52, %v1869_v41  ;;  %v1868_v2 = vadd.f32 %v1773_v30, %v1416_v11  ;;  %v3861_v41 = vld [vmem:[#allocation2 + $0x16a] sm:$0xff]  ;;  %v12175_v30 = vld [vmem:[#allocation35_spill] sm:$0xff] }
 0x3b4   : > { %v7884_v21 = vpop.f32.mrf.mxu0  ;;  %8183 = vmatmul.mubr.msk.f32.gmra.mxu0 %vm309_vm0, %v3854_v12 }
 0x3b5   : > { %v7934_v10 = vpop.f32.mrf.mxu1  ;;  %v10278_v44 = vadd.f32 %v2163_v7, %v1868_v2  ;;  %v1871_v31 = vadd.f32 %v7884_v21, %v10103_v50  ;;  %8185 = vmatprep.mubr.msk.f32.mxu0 %vm309_vm0, %v9784_v39  ;;  %v12176_v7 = vld [vmem:[#allocation8_spill] sm:$0xff]  ;;  %v12177_v2 = vld [vmem:[#allocation33_spill] sm:$0xff] }
 0x3b6   : > { %v1783_v47 = vpop.f32.mrf.mxu0  ;;  %v1456_v45 = vadd.f32 %v12176_v7, %v12175_v30 }
 0x3b7   : > { %v2173_v32 = vpop.f32.mrf.mxu1  ;;  %v10283_v28 = vadd.f32 %v7934_v10, %v1871_v31  ;;  %v1870_v26 = vadd.f32 %v1783_v47, %v1426_v34  ;;  %v3862_v31 = vld [vmem:[#allocation2 + $0x172] sm:$0xff] }
 0x3b8   : > { %v7887_v42 = vpop.f32.mrf.mxu0  ;;  %8186 = vmatmul.mubr.msk.f32.gmra.mxu0 %vm309_vm0, %v3856_v23 }
 0x3b9   : > { %v7937_v33 = vpop.f32.mrf.mxu1  ;;  %v10288_v13 = vadd.f32 %v2173_v32, %v1870_v26  ;;  %v1873_v50 = vadd.f32 %v7887_v42, %v10117_v40  ;;  %8188 = vmatprep.mubr.msk.f32.mxu0 %vm309_vm0, %v3857_v19  ;;  %v12178_v42 = vld [vmem:[#allocation29_spill] sm:$0xff] }
 0x3ba   : > { %v1793_v39 = vpop.f32.mrf.mxu0 }
 0x3bb   : > { %v2183_v18 = vpop.f32.mrf.mxu1  ;;  %v10292_v22 = vadd.f32 %v7937_v33, %v1873_v50  ;;  %v1872_v63 = vadd.f32 %v1793_v39, %v1436_v36  ;;  %v3865_v36 = vld [vmem:[#allocation2 + $0x19a] sm:$0xff] }
 0x3bc   : > { %v7890_v0 = vpop.f32.mrf.mxu0  ;;  %8189 = vmatmul.mubr.msk.f32.gmra.mxu0 %vm309_vm0, %v3858_v1  ;;  %v12179_v1 = vld [vmem:[#allocation31_spill] sm:$0xff] }
 0x3bd   : > { %v7940_v17 = vpop.f32.mrf.mxu1  ;;  %v10297_v61 = vadd.f32 %v2183_v18, %v1872_v63  ;;  %v1875_v40 = vadd.f32 %v7890_v0, %v10131_v62  ;;  %8191 = vmatprep.mubr.msk.f32.mxu0 %vm309_vm0, %v3859_v57 }
 0x3be   : > { %v1803_v3 = vpop.f32.mrf.mxu0 }
 0x3bf   : > { %v2193_v35 = vpop.f32.mrf.mxu1  ;;  %v10301_v38 = vadd.f32 %v7940_v17, %v1875_v40  ;;  %v1874_v49 = vadd.f32 %v1803_v3, %v1446_v56 }
 0x3c0   : > { %v7893_v52 = vpop.f32.mrf.mxu0  ;;  %8192 = vmatmul.mubr.msk.f32.gmra.mxu0 %vm309_vm0, %v3860_v8 }
 0x3c1   : > { %v7943_v11 = vpop.f32.mrf.mxu1  ;;  %v10306_v9 = vadd.f32 %v2193_v35, %v1874_v49  ;;  %v1877_v62 = vadd.f32 %v7893_v52, %v12177_v2  ;;  %8194 = vmatprep.mubr.msk.f32.mxu0 %vm309_vm0, %v3861_v41  ;;  %v12180_v41 = vld [vmem:[#allocation9_spill] sm:$0xff] }
 0x3c2   : > { %v1813_v12 = vpop.f32.mrf.mxu0 }
 0x3c3   : > { %v2203_v21 = vpop.f32.mrf.mxu1  ;;  %v10310_v10 = vadd.f32 %v7943_v11, %v1877_v62  ;;  %v1876_v34 = vadd.f32 %v1813_v12, %v1456_v45 }
 0x3c4   : > { %v7896_v47 = vpop.f32.mrf.mxu0  ;;  %8195 = vmatmul.mubr.msk.f32.gmra.mxu0 %vm309_vm0, %v3862_v31 }
 0x3c5   : > { %v7946_v32 = vpop.f32.mrf.mxu1  ;;  %v10313_v26 = vadd.f32 %v2203_v21, %v1876_v34  ;;  %v1879_v23 = vadd.f32 %v7896_v47, %v10159_v54  ;;  %8197 = vmatprep.mubr.msk.f32.mxu0 %vm309_vm0, %v12178_v42  ;;  %v3866_v54 = vld [vmem:[#allocation2 + $0x1a2] sm:$0xff] }
 0x3c6   : > { %v1823_v33 = vpop.f32.mrf.mxu0 }
 0x3c7   : > { %v2213_v19 = vpop.f32.mrf.mxu1  ;;  %v10318_v50 = vadd.f32 %v7946_v32, %v1879_v23  ;;  %v1878_v39 = vadd.f32 %v1823_v33, %v10165_v48 }
 0x3c8   : > { %v7899_v18 = vpop.f32.mrf.mxu0  ;;  %8198 = vmatmul.mubr.msk.f32.gmra.mxu0 %vm309_vm0, %v12179_v1 }
 0x3c9   : > { %v7949_v63 = vpop.f32.mrf.mxu1  ;;  %v10323_v0 = vadd.f32 %v2213_v19, %v1878_v39  ;;  %v1881_v17 = vadd.f32 %v7899_v18, %v10171_v58  ;;  %8200 = vmatprep.mubr.msk.f32.mxu0 %vm309_vm0, %v3865_v36 }
 0x3ca   : > { %v1833_v57 = vpop.f32.mrf.mxu0 }
 0x3cb   : > { %v2223_v56 = vpop.f32.mrf.mxu1  ;;  %v10327_v40 = vadd.f32 %v7949_v63, %v1881_v17  ;;  %v1880_v3 = vadd.f32 %v1833_v57, %v10175_v6 }
 0x3cc   : > { %v7902_v35 = vpop.f32.mrf.mxu0  ;;  %8201 = vmatmul.mubr.msk.f32.gmra.mxu0 %vm309_vm0, %v3866_v54 }
 0x3cd   : > { %v7952_v48 = vpop.f32.mrf.mxu1  ;;  %v10331_v49 = vadd.f32 %v2223_v56, %v1880_v3  ;;  %v1883_v8 = vadd.f32 %v7902_v35, %v10179_v16 }
 0x3ce   : > { %v1843_v52 = vpop.f32.mrf.mxu0 }
 0x3cf   : > { %v2233_v11 = vpop.f32.mrf.mxu1  ;;  %v10334_v58 = vadd.f32 %v7952_v48, %v1883_v8  ;;  %v1882_v30 = vadd.f32 %v1843_v52, %v12180_v41 }
 0x3d0   : > { %v7957_v7 = vpop.f32.mrf.mxu0 }
 0x3d1   : > { %v10337_v45 = vpop.f32.mrf.mxu1  ;;  %v10339_v2 = vadd.f32 %v2233_v11, %v1882_v30  ;;  %v10342_v6 = vadd.f32 %v7957_v7, %v10192_v37 }
 0x3d2   : > { %v2473_v62 = vpop.f32.mrf.mxu0 }
 0x3d3   : > { %v10344_v12 = vpop.f32.mrf.mxu1  ;;  %v10347_v21 = vadd.f32 %v2473_v62, %v10196_v27 }
 0x3d4   : > { %v7960_v16 = vpop.f32.mrf.mxu0 }
 0x3d5   : > { %v10349_v34 = vpop.f32.mrf.mxu1  ;;  %v10352_v31 = vadd.f32 %v7960_v16, %v10201_v24 }
 0x3d6   : > { %v2483_v47 = vpop.f32.mrf.mxu0 }
 0x3d7   : > { %v10354_v32 = vpop.f32.mrf.mxu1  ;;  %v10357_v23 = vadd.f32 %v2483_v47, %v10206_v43 }
 0x3d8   : > { %v7963_v37 = vpop.f32.mrf.mxu0 }
 0x3d9   : > { %v10359_v42 = vpop.f32.mrf.mxu1  ;;  %v10362_v33 = vadd.f32 %v7963_v37, %v10211_v25 }
 0x3da   : > { %v2493_v27 = vpop.f32.mrf.mxu0 }
 0x3db   : > { %v10364_v19 = vpop.f32.mrf.mxu1  ;;  %v10367_v36 = vadd.f32 %v2493_v27, %v10216_v55 }
 0x3dc   : > { %v7966_v24 = vpop.f32.mrf.mxu0 }
 0x3dd   : > { %v10369_v39 = vpop.f32.mrf.mxu1  ;;  %v10372_v18 = vadd.f32 %v7966_v24, %v10221_v46 }
 0x3de   : > { %v2503_v43 = vpop.f32.mrf.mxu0 }
 0x3df   : > { %v10374_v63 = vpop.f32.mrf.mxu1  ;;  %v10377_v1 = vadd.f32 %v2503_v43, %v10226_v15 }
 0x3e0   : > { %v7969_v25 = vpop.f32.mrf.mxu0 }
 0x3e1   : > { %v10379_v17 = vpop.f32.mrf.mxu1  ;;  %v10382_v54 = vadd.f32 %v7969_v25, %v10231_v14 }
 0x3e2   : > { %v2513_v55 = vpop.f32.mrf.mxu0 }
 0x3e3   : > { %v10384_v57 = vpop.f32.mrf.mxu1  ;;  %v10387_v56 = vadd.f32 %v2513_v55, %v10236_v29 }
 0x3e4   : > { %v7972_v46 = vpop.f32.mrf.mxu0 }
 0x3e5   : > { %v10389_v3 = vpop.f32.mrf.mxu1  ;;  %v10392_v35 = vadd.f32 %v7972_v46, %v10241_v51 }
 0x3e6   : > { %v2523_v15 = vpop.f32.mrf.mxu0 }
 0x3e7   : > { %v10394_v48 = vpop.f32.mrf.mxu1  ;;  %v10397_v8 = vadd.f32 %v2523_v15, %v10246_v59 }
 0x3e8   : > { %v7975_v14 = vpop.f32.mrf.mxu0 }
 0x3e9   : > { %v10399_v52 = vpop.f32.mrf.mxu1  ;;  %v10402_v11 = vadd.f32 %v7975_v14, %v10251_v53 }
 0x3ea   : > { %v2533_v29 = vpop.f32.mrf.mxu0 }
 0x3eb   : > { %v10404_v41 = vpop.f32.mrf.mxu1  ;;  %v10407_v30 = vadd.f32 %v2533_v29, %v10256_v4  ;;  %v12181_v29 = vmov 0.0  }
 0x3ec   : > { %v7978_v51 = vpop.f32.mrf.mxu0  ;;  %4494 = vst.msk [vmem:[#allocation3 + $0x20] sm:$0xff] %vm4488_vm3, %v12181_v29  ;;  %4489 = vst.msk [vmem:[#allocation3] sm:$0xff] %vm4488_vm3, %v12181_v29 }
 0x3ed   : > { %v10409_v7 = vpop.f32.mrf.mxu1  ;;  %v10412_v62 = vadd.f32 %v7978_v51, %v10261_v20  ;;  %4495 = vst.msk [vmem:[#allocation3 + $0x28] sm:$0x3] %vm4491_vm4, %v12181_v29  ;;  %4492 = vst.msk [vmem:[#allocation3 + $0x10] sm:$0x3] %vm4491_vm4, %v12181_v29 }
 0x3ee   : > { %v2543_v59 = vpop.f32.mrf.mxu0  ;;  %4490 = vst.msk [vmem:[#allocation3 + $0x8] sm:$0xff] %vm4488_vm3, %v12181_v29  ;;  %4493 = vst.msk [vmem:[#allocation3 + $0x18] sm:$0xff] %vm4488_vm3, %v12181_v29 }
 0x3ef   : > { %v10414_v16 = vpop.f32.mrf.mxu1  ;;  %v10417_v47 = vadd.f32 %v2543_v59, %v10268_v60  ;;  %4496 = vst.msk [vmem:[#allocation3 + $0x30] sm:$0xff] %vm4488_vm3, %v12181_v29  ;;  %4497 = vst.msk [vmem:[#allocation3 + $0x38] sm:$0xff] %vm4488_vm3, %v12181_v29 }
 0x3f0   : > { %v7981_v53 = vpop.f32.mrf.mxu0  ;;  %4498 = vst.msk [vmem:[#allocation3 + $0x40] sm:$0x3] %vm4491_vm4, %v12181_v29  ;;  %4501 = vst.msk [vmem:[#allocation3 + $0x58] sm:$0x3] %vm4491_vm4, %v12181_v29 }
 0x3f1   : > { %v10419_v37 = vpop.f32.mrf.mxu1  ;;  %v10422_v27 = vadd.f32 %v7981_v53, %v10273_v5  ;;  %4499 = vst.msk [vmem:[#allocation3 + $0x48] sm:$0xff] %vm4488_vm3, %v12181_v29  ;;  %4500 = vst.msk [vmem:[#allocation3 + $0x50] sm:$0xff] %vm4488_vm3, %v12181_v29 }
 0x3f2   : > { %v2553_v4 = vpop.f32.mrf.mxu0  ;;  %4502 = vst.msk [vmem:[#allocation3 + $0x60] sm:$0xff] %vm4488_vm3, %v12181_v29  ;;  %4503 = vst.msk [vmem:[#allocation3 + $0x68] sm:$0xff] %vm4488_vm3, %v12181_v29 }
 0x3f3   : > { %v10424_v24 = vpop.f32.mrf.mxu1  ;;  %v10427_v43 = vadd.f32 %v2553_v4, %v10278_v44  ;;  %4504 = vst.msk [vmem:[#allocation3 + $0x70] sm:$0x3] %vm4491_vm4, %v12181_v29  ;;  %4507 = vst.msk [vmem:[#allocation3 + $0x88] sm:$0x3] %vm4491_vm4, %v12181_v29 }
 0x3f4   : > { %v7984_v20 = vpop.f32.mrf.mxu0  ;;  %4505 = vst.msk [vmem:[#allocation3 + $0x78] sm:$0xff] %vm4488_vm3, %v12181_v29  ;;  %4506 = vst.msk [vmem:[#allocation3 + $0x80] sm:$0xff] %vm4488_vm3, %v12181_v29 }
 0x3f5   : > { %v10429_v25 = vpop.f32.mrf.mxu1  ;;  %v10432_v55 = vadd.f32 %v7984_v20, %v10283_v28  ;;  %4508 = vst.msk [vmem:[#allocation3 + $0x90] sm:$0xff] %vm4488_vm3, %v12181_v29  ;;  %4509 = vst.msk [vmem:[#allocation3 + $0x98] sm:$0xff] %vm4488_vm3, %v12181_v29 }
 0x3f6   : > { %v2563_v60 = vpop.f32.mrf.mxu0  ;;  %4510 = vst.msk [vmem:[#allocation3 + $0xa0] sm:$0x3] %vm4491_vm4, %v12181_v29  ;;  %4513 = vst.msk [vmem:[#allocation3 + $0xb8] sm:$0x3] %vm4491_vm4, %v12181_v29 }
 0x3f7   : > { %v10434_v46 = vpop.f32.mrf.mxu1  ;;  %v10437_v15 = vadd.f32 %v2563_v60, %v10288_v13  ;;  %4511 = vst.msk [vmem:[#allocation3 + $0xa8] sm:$0xff] %vm4488_vm3, %v12181_v29  ;;  %4512 = vst.msk [vmem:[#allocation3 + $0xb0] sm:$0xff] %vm4488_vm3, %v12181_v29 }
 0x3f8   : > { %v7987_v5 = vpop.f32.mrf.mxu0  ;;  %4514 = vst.msk [vmem:[#allocation3 + $0xc0] sm:$0xff] %vm4488_vm3, %v12181_v29  ;;  %4515 = vst.msk [vmem:[#allocation3 + $0xc8] sm:$0xff] %vm4488_vm3, %v12181_v29 }
 0x3f9   : > { %v10439_v14 = vpop.f32.mrf.mxu1  ;;  %4516 = vst.msk [vmem:[#allocation3 + $0xd0] sm:$0x3] %vm4491_vm4, %v12181_v29  ;;  %4519 = vst.msk [vmem:[#allocation3 + $0xe8] sm:$0x3] %vm4491_vm4, %v12181_v29  ;;  %v10550_v44 = vadd.f32 %v7987_v5, %v10292_v22 }
 0x3fa   : > { %4517 = vst.msk [vmem:[#allocation3 + $0xd8] sm:$0xff] %vm4488_vm3, %v12181_v29  ;;  %4518 = vst.msk [vmem:[#allocation3 + $0xe0] sm:$0xff] %vm4488_vm3, %v12181_v29  ;;  %v2573_v28 = vpop.f32.mrf.mxu0 }
 0x3fb   : > { %4520 = vst.msk [vmem:[#allocation3 + $0xf0] sm:$0xff] %vm4488_vm3, %v12181_v29  ;;  %4521 = vst.msk [vmem:[#allocation3 + $0xf8] sm:$0xff] %vm4488_vm3, %v12181_v29  ;;  %v10552_v13 = vpop.f32.mrf.mxu1  ;;  %v10555_v51 = vadd.f32 %v2573_v28, %v10297_v61 }
 0x3fc   : > { %4522 = vst.msk [vmem:[#allocation3 + $0x100] sm:$0x3] %vm4491_vm4, %v12181_v29  ;;  %4525 = vst.msk [vmem:[#allocation3 + $0x118] sm:$0x3] %vm4491_vm4, %v12181_v29  ;;  %v7990_v59 = vpop.f32.mrf.mxu0 }
 0x3fd   : > { %4523 = vst.msk [vmem:[#allocation3 + $0x108] sm:$0xff] %vm4488_vm3, %v12181_v29  ;;  %4524 = vst.msk [vmem:[#allocation3 + $0x110] sm:$0xff] %vm4488_vm3, %v12181_v29  ;;  %v10557_v53 = vpop.f32.mrf.mxu1  ;;  %v10560_v4 = vadd.f32 %v7990_v59, %v10301_v38 }
 0x3fe   : > { %4526 = vst.msk [vmem:[#allocation3 + $0x120] sm:$0xff] %vm4488_vm3, %v12181_v29  ;;  %4527 = vst.msk [vmem:[#allocation3 + $0x128] sm:$0xff] %vm4488_vm3, %v12181_v29  ;;  %v2583_v20 = vpop.f32.mrf.mxu0 }
 0x3ff   : > { %4528 = vst.msk [vmem:[#allocation3 + $0x130] sm:$0x3] %vm4491_vm4, %v12181_v29  ;;  %4531 = vst.msk [vmem:[#allocation3 + $0x148] sm:$0x3] %vm4491_vm4, %v12181_v29  ;;  %v10562_v60 = vpop.f32.mrf.mxu1 }
 0x400   : > { %4529 = vst.msk [vmem:[#allocation3 + $0x138] sm:$0xff] %vm4488_vm3, %v12181_v29  ;;  %4530 = vst.msk [vmem:[#allocation3 + $0x140] sm:$0xff] %vm4488_vm3, %v12181_v29  ;;  %v7993_v22 = vpop.f32.mrf.mxu0 }
 0x401   : > { %4532 = vst.msk [vmem:[#allocation3 + $0x150] sm:$0xff] %vm4488_vm3, %v12181_v29  ;;  %4533 = vst.msk [vmem:[#allocation3 + $0x158] sm:$0xff] %vm4488_vm3, %v12181_v29  ;;  %v10567_v5 = vpop.f32.mrf.mxu1 }
 0x402   : > { %4534 = vst.msk [vmem:[#allocation3 + $0x160] sm:$0x3] %vm4491_vm4, %v12181_v29  ;;  %4537 = vst.msk [vmem:[#allocation3 + $0x178] sm:$0x3] %vm4491_vm4, %v12181_v29  ;;  %v2593_v61 = vpop.f32.mrf.mxu0 }
 0x403   : > { %4535 = vst.msk [vmem:[#allocation3 + $0x168] sm:$0xff] %vm4488_vm3, %v12181_v29  ;;  %4536 = vst.msk [vmem:[#allocation3 + $0x170] sm:$0xff] %vm4488_vm3, %v12181_v29  ;;  %v10572_v28 = vpop.f32.mrf.mxu1 }
 0x404   : > { %4538 = vst.msk [vmem:[#allocation3 + $0x180] sm:$0xff] %vm4488_vm3, %v12181_v29  ;;  %4539 = vst.msk [vmem:[#allocation3 + $0x188] sm:$0xff] %vm4488_vm3, %v12181_v29  ;;  %v7996_v38 = vpop.f32.mrf.mxu0 }
 0x405   : > { %4540 = vst.msk [vmem:[#allocation3 + $0x190] sm:$0x3] %vm4491_vm4, %v12181_v29  ;;  %4543 = vst.msk [vmem:[#allocation3 + $0x1a8] sm:$0x3] %vm4491_vm4, %v12181_v29  ;;  %v10577_v59 = vpop.f32.mrf.mxu1 }
 0x406   : > { %4541 = vst.msk [vmem:[#allocation3 + $0x198] sm:$0xff] %vm4488_vm3, %v12181_v29  ;;  %4542 = vst.msk [vmem:[#allocation3 + $0x1a0] sm:$0xff] %vm4488_vm3, %v12181_v29  ;;  %v10565_v29 = vadd.f32 %v2583_v20, %v10306_v9  ;;  %v2603_v9 = vpop.f32.mrf.mxu0 }
 0x407   : > { %12182 = vst [vmem:[#allocation10_spill] sm:$0xff] %v10552_v13  ;;  %12183 = vst [vmem:[#allocation11_spill] sm:$0xff] %v10557_v53  ;;  %v10570_v13 = vadd.f32 %v7993_v22, %v10310_v10  ;;  %v10575_v53 = vadd.f32 %v2593_v61, %v10313_v26  ;;  %v10582_v20 = vpop.f32.mrf.mxu1 }
 0x408   : > { %12184 = vst [vmem:[#allocation12_spill] sm:$0xff] %v10562_v60  ;;  %12185 = vst [vmem:[#allocation13_spill] sm:$0xff] %v10567_v5  ;;  %v10580_v60 = vadd.f32 %v7996_v38, %v10318_v50  ;;  %v10585_v5 = vadd.f32 %v2603_v9, %v10323_v0  ;;  %v7999_v10 = vpop.f32.mrf.mxu0 }
 0x409   : > { %12186 = vst [vmem:[#allocation14_spill] sm:$0xff] %v10572_v28  ;;  %12187 = vst [vmem:[#allocation15_spill] sm:$0xff] %v10577_v59  ;;  %v10587_v22 = vpop.f32.mrf.mxu1  ;;  %v10590_v28 = vadd.f32 %v7999_v10, %v10327_v40 }
 0x40a   : > { %12188 = vst [vmem:[#allocation16_spill] sm:$0xff] %v10582_v20  ;;  %12189 = vst [vmem:[#allocation17_spill] sm:$0xff] %v10585_v5  ;;  %v2613_v26 = vpop.f32.mrf.mxu0 }
 0x40b   : > { %12190 = vst [vmem:[#allocation18_spill] sm:$0xff] %v10587_v22  ;;  %v10592_v61 = vpop.f32.mrf.mxu1  ;;  %v10595_v59 = vadd.f32 %v2613_v26, %v10331_v49 }
 0x40c   : > { %12191 = vst [vmem:[#allocation19_spill] sm:$0xff] %v10592_v61  ;;  %v8002_v50 = vpop.f32.mrf.mxu0 }
 0x40d   : > { %12192 = vst [vmem:[#allocation20_spill] sm:$0xff] %v10595_v59  ;;  %v10597_v38 = vpop.f32.mrf.mxu1  ;;  %v10600_v20 = vadd.f32 %v8002_v50, %v10334_v58 }
 0x40e   : > { %12193 = vst [vmem:[#allocation21_spill] sm:$0xff] %v10597_v38  ;;  %v2623_v0 = vpop.f32.mrf.mxu0 }
 0x40f   : > { %12194 = vst [vmem:[#allocation22_spill] sm:$0xff] %v10600_v20  ;;  %v3013_v9 = vpop.f32.mrf.mxu1  ;;  %v2662_v5 = vadd.f32 %v2623_v0, %v10339_v2 }
 0x410   : > { %v10603_v22 = vpop.f32.mrf.mxu0 }
 0x411   : > { %v10605_v40 = vpop.f32.mrf.mxu1  ;;  %v10607_v10 = vadd.f32 %v3013_v9, %v2662_v5 }
 0x412   : > { %12195 = vst [vmem:[#allocation23_spill] sm:$0xff] %v10605_v40  ;;  %v10609_v61 = vpop.f32.mrf.mxu0 }
 0x413   : > { %12196 = vst [vmem:[#allocation24_spill] sm:$0xff] %v10607_v10  ;;  %v10611_v49 = vpop.f32.mrf.mxu1 }
 0x414   : > { %12197 = vst [vmem:[#allocation25_spill] sm:$0xff] %v10611_v49  ;;  %v10613_v26 = vpop.f32.mrf.mxu0 }
 0x415   : > { %v10615_v38 = vpop.f32.mrf.mxu1 }
 0x416   : > { %12198 = vst [vmem:[#allocation26_spill] sm:$0xff] %v10615_v38  ;;  %v10617_v58 = vpop.f32.mrf.mxu0 }
 0x417   : > { %v10619_v50 = vpop.f32.mrf.mxu1 }
 0x418   : > { %12199 = vst [vmem:[#allocation27_spill] sm:$0xff] %v10619_v50  ;;  %v10621_v20 = vpop.f32.mrf.mxu0 }
 0x419   : > { %12200 = vst [vmem:[#allocation28_spill] sm:$0xff] %v10621_v20  ;;  %v10623_v2 = vpop.f32.mrf.mxu1 }
 0x41a   : > { %12201 = vst [vmem:[#allocation30_spill] sm:$0xff] %v10623_v2  ;;  %v10625_v0 = vpop.f32.mrf.mxu0 }
 0x41b   : > { %12202 = vst [vmem:[#allocation32_spill] sm:$0xff] %v10625_v0  ;;  %v10627_v5 = vpop.f32.mrf.mxu1 }
 0x41c   : > { %12203 = vst [vmem:[#allocation34_spill] sm:$0xff] %v10627_v5  ;;  %v10629_v9 = vpop.f32.mrf.mxu0 }
 0x41d   : > { %12204 = vst [vmem:[#allocation7_spill] sm:$0xff] %v10629_v9  ;;  %v10631_v59 = vpop.f32.mrf.mxu1 }
 0x41e   : > { %12205 = vst [vmem:[#allocation36_spill] sm:$0xff] %v10631_v59  ;;  %v10633_v49 = vpop.f32.mrf.mxu0 }
 0x41f   : > { %12206 = vst [vmem:[#allocation35_spill] sm:$0xff] %v10633_v49  ;;  %v10635_v10 = vpop.f32.mrf.mxu1 }
 0x420   : > { %12207 = vst [vmem:[#allocation8_spill] sm:$0xff] %v10635_v10  ;;  %v10637_v38 = vpop.f32.mrf.mxu0 }
 0x421   : > { %12208 = vst [vmem:[#allocation33_spill] sm:$0xff] %v10637_v38  ;;  %v10639_v40 = vpop.f32.mrf.mxu1 }
 0x422   : > { %12209 = vst [vmem:[#allocation29_spill] sm:$0xff] %v10639_v40  ;;  %v10641_v50 = vpop.f32.mrf.mxu0 }
 0x423   : > { %12210 = vst [vmem:[#allocation31_spill] sm:$0xff] %v10641_v50  ;;  %v10643_v20 = vpop.f32.mrf.mxu1 }
 0x424   : > { %12211 = vst [vmem:[#allocation9_spill] sm:$0xff] %v10643_v20  ;;  %v10645_v2 = vpop.f32.mrf.mxu0 }
 0x425   : > { %12212 = vst [vmem:[#allocation37_spill] sm:$0xff] %v10645_v2  ;;  %v10649_v5 = vpop.f32.mrf.mxu1 }
 0x426   : > { %v10647_v0 = vpop.f32.mrf.mxu0  ;;  %12214 = vst [vmem:[#allocation39_spill] sm:$0xff] %v10649_v5 }
 0x427   : > { %12213 = vst [vmem:[#allocation38_spill] sm:$0xff] %v10647_v0  ;;  %v10655_v49 = vpop.f32.mrf.mxu1 }
 0x428   : > { %v10651_v9 = vpop.f32.mrf.mxu0  ;;  %12217 = vst [vmem:[#allocation42_spill] sm:$0xff] %v10655_v49 }
 0x429   : > { %12215 = vst [vmem:[#allocation40_spill] sm:$0xff] %v10651_v9  ;;  %v10661_v40 = vpop.f32.mrf.mxu1 }
 0x42a   : > { %v10653_v59 = vpop.f32.mrf.mxu0  ;;  %12220 = vst [vmem:[#allocation45_spill] sm:$0xff] %v10661_v40 }
 0x42b   : > { %12216 = vst [vmem:[#allocation41_spill] sm:$0xff] %v10653_v59  ;;  %v10667_v2 = vpop.f32.mrf.mxu1 }
 0x42c   : > { %v10657_v10 = vpop.f32.mrf.mxu0  ;;  %12223 = vst [vmem:[#allocation48_spill] sm:$0xff] %v10667_v2 }
 0x42d   : > { %12218 = vst [vmem:[#allocation43_spill] sm:$0xff] %v10657_v10  ;;  %v10673_v9 = vpop.f32.mrf.mxu1 }
 0x42e   : > { %v10659_v38 = vpop.f32.mrf.mxu0 }
 0x42f   : > { %12219 = vst [vmem:[#allocation44_spill] sm:$0xff] %v10659_v38  ;;  %v10679_v10 = vpop.f32.mrf.mxu1 }
 0x430   : > { %v10663_v50 = vpop.f32.mrf.mxu0 }
 0x431   : > { %12221 = vst [vmem:[#allocation46_spill] sm:$0xff] %v10663_v50  ;;  %v10685_v50 = vpop.f32.mrf.mxu1 }
 0x432   : > { %v10665_v20 = vpop.f32.mrf.mxu0 }
 0x433   : > { %12222 = vst [vmem:[#allocation47_spill] sm:$0xff] %v10665_v20 }
 0x434   : > { %v10669_v0 = vpop.f32.mrf.mxu0 }
 0x435   : > { %12224 = vst [vmem:[#allocation49_spill] sm:$0xff] %v10669_v0  ;;  %v10691_v0 = vpop.f32.mrf.mxu1 }
 0x436   : > { %v10671_v5 = vpop.f32.mrf.mxu0  ;;  %12232 = vst [vmem:[#allocation57_spill] sm:$0xff] %v10691_v0 }
 0x437   : > { %12225 = vst [vmem:[#allocation50_spill] sm:$0xff] %v10671_v5  ;;  %v10707_v0 = vpop.f32.mrf.mxu1 }
 0x438   : > { %v10675_v59 = vpop.f32.mrf.mxu0 }
 0x439   : > { %12226 = vst [vmem:[#allocation51_spill] sm:$0xff] %v10675_v59  ;;  %v3023_v59 = vadd.f32 %v10337_v45, %v10342_v6  ;;  %v3029_v45 = vadd.f32 %v10369_v39, %v10372_v18  ;;  %v3028_v6 = vadd.f32 %v10374_v63, %v10377_v1  ;;  %v10743_v18 = vadd.f32 %v10424_v24, %v10427_v43  ;;  %v12240_v24 = vld [vmem:[#allocation17_spill] sm:$0xff]  ;;  %v12241_v43 = vld [vmem:[#allocation16_spill] sm:$0xff] }
 0x43a   : > { %v10677_v49 = vpop.f32.mrf.mxu0  ;;  %v10747_v63 = vadd.f32 %v10429_v25, %v10432_v55  ;;  %v10751_v1 = vadd.f32 %v10434_v46, %v10437_v15  ;;  %v10790_v25 = vadd.f32 %v12241_v43, %v12240_v24  ;;  %v12242_v55 = vld [vmem:[#allocation18_spill] sm:$0xff]  ;;  %v12256_v24 = vld [vmem:[#allocation33_spill] sm:$0xff] }
 0x43b   : > { %12227 = vst [vmem:[#allocation52_spill] sm:$0xff] %v10677_v49  ;;  %v10794_v46 = vadd.f32 %v12242_v55, %v10590_v28  ;;  %v12250_v28 = vld [vmem:[#allocation22_spill] sm:$0xff] }
 0x43c   : > { %v10681_v38 = vpop.f32.mrf.mxu0 }
 0x43d   : > { %12228 = vst [vmem:[#allocation53_spill] sm:$0xff] %v10681_v38  ;;  %v3022_v38 = vadd.f32 %v10344_v12, %v10347_v21  ;;  %v3031_v12 = vadd.f32 %v10379_v17, %v10382_v54  ;;  %v3414_v17 = vadd.f32 %v10603_v22, %v3023_v59  ;;  %v10754_v54 = vpop.f32.mrf.mxu1 }
 0x43e   : > { %v10683_v40 = vpop.f32.mrf.mxu0 }
 0x43f   : > { %12229 = vst [vmem:[#allocation54_spill] sm:$0xff] %v10683_v40  ;;  %v3025_v40 = vadd.f32 %v10349_v34, %v10352_v31  ;;  %v3030_v34 = vadd.f32 %v10384_v57, %v10387_v56  ;;  %v3033_v31 = vadd.f32 %v10389_v3, %v10392_v35  ;;  %v10758_v57 = vadd.f32 %v10439_v14, %v10550_v44  ;;  %v12234_v56 = vld [vmem:[#allocation10_spill] sm:$0xff]  ;;  %v12235_v35 = vld [vmem:[#allocation11_spill] sm:$0xff]  ;;  %v10800_v59 = vpop.f32.mrf.mxu1 }
 0x440   : > { %v10687_v20 = vpop.f32.mrf.mxu0  ;;  %v10762_v3 = vadd.f32 %v12234_v56, %v10555_v51  ;;  %v12243_v44 = vld [vmem:[#allocation23_spill] sm:$0xff]  ;;  %v12244_v51 = vld [vmem:[#allocation28_spill] sm:$0xff]  ;;  %v3422_v43 = vadd.f32 %v12256_v24, %v3031_v12  ;;  %v12267_v24 = vld [vmem:[#allocation29_spill] sm:$0xff] }
 0x441   : > { %12230 = vst [vmem:[#allocation55_spill] sm:$0xff] %v10687_v20  ;;  %v3024_v20 = vadd.f32 %v10354_v32, %v10357_v23  ;;  %v3032_v32 = vadd.f32 %v10394_v48, %v10397_v8  ;;  %v3035_v23 = vadd.f32 %v10399_v52, %v10402_v11  ;;  %v10766_v48 = vadd.f32 %v12235_v35, %v10560_v4  ;;  %v12236_v8 = vld [vmem:[#allocation12_spill] sm:$0xff] }
 0x442   : > { %v10689_v2 = vpop.f32.mrf.mxu0  ;;  %v10770_v52 = vadd.f32 %v12236_v8, %v10565_v29  ;;  %v12245_v4 = vld [vmem:[#allocation32_spill] sm:$0xff]  ;;  %v12254_v8 = vld [vmem:[#allocation25_spill] sm:$0xff] }
 0x443   : > { %12231 = vst [vmem:[#allocation56_spill] sm:$0xff] %v10689_v2  ;;  %v3027_v2 = vadd.f32 %v10359_v42, %v10362_v33  ;;  %v3034_v42 = vadd.f32 %v10404_v41, %v10407_v30  ;;  %v3037_v33 = vadd.f32 %v10409_v7, %v10412_v62  ;;  %v12237_v41 = vld [vmem:[#allocation13_spill] sm:$0xff]  ;;  %v12238_v7 = vld [vmem:[#allocation14_spill] sm:$0xff]  ;;  %v3415_v15 = vadd.f32 %v10617_v58, %v3024_v20  ;;  %v12252_v20 = vld [vmem:[#allocation7_spill] sm:$0xff] }
 0x444   : > { %v10693_v5 = vpop.f32.mrf.mxu0  ;;  %v10776_v30 = vadd.f32 %v12237_v41, %v10570_v13  ;;  %v10780_v62 = vadd.f32 %v12238_v7, %v10575_v53  ;;  %v3804_v13 = vadd.f32 %v12243_v44, %v3414_v17  ;;  %v3420_v58 = vadd.f32 %v12252_v20, %v3029_v45  ;;  %v12253_v17 = vld [vmem:[#allocation35_spill] sm:$0xff]  ;;  %v12255_v7 = vld [vmem:[#allocation26_spill] sm:$0xff]  ;;  %v12259_v45 = vld [vmem:[#allocation37_spill] sm:$0xff] }
 0x445   : > { %12233 = vst [vmem:[#allocation58_spill] sm:$0xff] %v10693_v5  ;;  %v3026_v5 = vadd.f32 %v10364_v19, %v10367_v36  ;;  %v10733_v19 = vadd.f32 %v10414_v16, %v10417_v47  ;;  %v10737_v36 = vadd.f32 %v10419_v37, %v10422_v27  ;;  %v3413_v16 = vadd.f32 %v10609_v61, %v3022_v38  ;;  %v12239_v37 = vld [vmem:[#allocation15_spill] sm:$0xff]  ;;  %v12248_v61 = vld [vmem:[#allocation20_spill] sm:$0xff]  ;;  %v12262_v20 = vld [vmem:[#allocation34_spill] sm:$0xff] }
 0x446   : > { %v10697_v49 = vpop.f32.mrf.mxu0  ;;  %v3416_v47 = vadd.f32 %v10613_v26, %v3025_v40  ;;  %v10786_v27 = vadd.f32 %v12239_v37, %v10580_v60  ;;  %v3418_v53 = vadd.f32 %v12244_v51, %v3027_v2  ;;  %v12246_v60 = vld [vmem:[#allocation24_spill] sm:$0xff]  ;;  %v12249_v38 = vld [vmem:[#allocation19_spill] sm:$0xff]  ;;  %v12251_v26 = vld [vmem:[#allocation21_spill] sm:$0xff]  ;;  %v3419_v35 = vadd.f32 %v12253_v17, %v3028_v6 }
 0x447   : > { %v3417_v29 = vadd.f32 %v12245_v4, %v3026_v5  ;;  %v10807_v40 = vadd.f32 %v12249_v38, %v12248_v61  ;;  %v10811_v56 = vadd.f32 %v12251_v26, %v12250_v28  ;;  %v10818_v5 = vld [vmem:[%s12018_s4] ss:$0 sm:$0xff]  ;;  %v3803_v41 = vadd.f32 %v12254_v8, %v3413_v16  ;;  %v12260_v6 = vld [vmem:[#allocation38_spill] sm:$0xff] }
 0x448   : > { %v10717_v21 = vpop.f32.mrf.mxu0  ;;  %v3806_v37 = vadd.f32 %v12255_v7, %v3416_v47  ;;  %v12258_v51 = vld [vmem:[#allocation31_spill] sm:$0xff]  ;;  %v3423_v61 = vadd.f32 %v12260_v6, %v3032_v32  ;;  %v12261_v28 = vld [vmem:[#allocation30_spill] sm:$0xff]  ;;  %v12263_v47 = vld [vmem:[#allocation36_spill] sm:$0xff] }
 0x449   : > { %v3421_v4 = vadd.f32 %v12258_v51, %v3030_v34  ;;  %v3808_v26 = vadd.f32 %v12261_v28, %v3418_v53  ;;  %v3807_v17 = vadd.f32 %v12262_v20, %v3417_v29  ;;  %v12265_v34 = vld [vmem:[#allocation40_spill] sm:$0xff] }
 0x44a   : > { %v10739_v39 = vpop.f32.mrf.mxu0  ;;  %v3426_v8 = vadd.f32 %v12265_v34, %v3035_v23  ;;  %v12271_v23 = vld [vmem:[#allocation43_spill] sm:$0xff] }
 0x44c   : > { %v10772_v11 = vpop.f32.mrf.mxu0 }
 0x44e   : > { %v3404_v14 = vpop.f32.mrf.mxu0 }
 0x44f   : > { %v10803_v22 = vadd.f32 %v3404_v14, %v12246_v60  ;;  %v12257_v14 = vld [vmem:[#allocation27_spill] sm:$0xff]  ;;  %v3424_v60 = vadd.f32 %v12259_v45, %v3033_v31  ;;  %v12266_v31 = vld [vmem:[#allocation41_spill] sm:$0xff] }
 0x450   : > { %v8157_v2 = vpop.f32.mrf.mxu0  ;;  %v3805_v44 = vadd.f32 %v12257_v14, %v3415_v15  ;;  %v12264_v15 = vld [vmem:[#allocation8_spill] sm:$0xff]  ;;  %v3425_v7 = vadd.f32 %v12266_v31, %v3034_v42  ;;  %v3812_v14 = vadd.f32 %v12267_v24, %v3422_v43  ;;  %v3428_v42 = vadd.f32 %v12271_v23, %v3037_v33  ;;  %v12275_v33 = vld [vmem:[#allocation46_spill] sm:$0xff] }
 0x451   : > { %12247 = vst [vmem:[#allocation10_spill] sm:$0xff] %v10803_v22  ;;  %v4194_v55 = vadd.f32 %v8157_v2, %v3804_v13  ;;  %v10829_v22 = vpop.f32.mrf.mxu1  ;;  %v3810_v13 = vadd.f32 %v12263_v47, %v3420_v58  ;;  %v3809_v2 = vadd.f32 %v12264_v15, %v3419_v35  ;;  %v12270_v35 = vld [vmem:[#allocation42_spill] sm:$0xff]  ;;  %v3430_v31 = vadd.f32 %v12275_v33, %v10737_v36 }
 0x452   : > { %v4034_v38 = vpop.f32.mrf.mxu0  ;;  %v10850_v6 = vadd.f32 %v12270_v35, %v3423_v61  ;;  %v12274_v61 = vld [vmem:[#allocation44_spill] sm:$0xff] }
 0x453   : > { %v10832_v16 = vadd.f32 %v10818_v5, %v4194_v55  ;;  %v4193_v12 = vadd.f32 %v4034_v38, %v3803_v41  ;;  %v12268_v55 = vld [vmem:[#allocation9_spill] sm:$0xff]  ;;  %v12269_v41 = vld [vmem:[#allocation39_spill] sm:$0xff]  ;;  %v10853_v28 = vpop.f32.mrf.mxu1  ;;  %v3427_v34 = vadd.f32 %v12274_v61, %v10733_v19 }
 0x454   : > { %v8160_v32 = vpop.f32.mrf.mxu0  ;;  %v10844_v45 = vadd.f32 %v12268_v55, %v3421_v4  ;;  %v10847_v58 = vadd.f32 %v12269_v41, %v3424_v60  ;;  %v12272_v4 = vld [vmem:[#allocation45_spill] sm:$0xff]  ;;  %v12273_v60 = vld [vmem:[#allocation48_spill] sm:$0xff] }
 0x455   : > { %v4265_v53 = vsub.f32 0.0, %v10832_v16  ;;  %v10841_v29 = vadd.f32 %v10818_v5, %v4193_v12  ;;  %v4196_v51 = vadd.f32 %v8160_v32, %v3806_v37  ;;  %v10860_v47 = vadd.f32 %v12272_v4, %v3426_v8  ;;  %v12276_v8 = vld [vmem:[#allocation47_spill] sm:$0xff]  ;;  %v12277_v55 = vld [vmem:[#allocation49_spill] sm:$0xff]  ;;  %v3754_v36 = vpop.f32.mrf.mxu1 }
 0x456   : > { %v4044_v38 = vpop.f32.mrf.mxu0  ;;  %v10863_v15 = vadd.f32 %v12273_v60, %v3425_v7  ;;  %v3429_v7 = vadd.f32 %v12276_v8, %v10743_v18  ;;  %v3432_v19 = vadd.f32 %v12277_v55, %v10747_v63 }
 0x457   : > { %v4298_v43 = vmul.f32 1.442695, %v4265_v53  ;;  %v4264_v20 = vsub.f32 0.0, %v10841_v29  ;;  %v10857_v12 = vadd.f32 %v10818_v5, %v4196_v51  ;;  %v4195_v37 = vadd.f32 %v4044_v38, %v3805_v44 }
 0x458   : > { %v8163_v32 = vpop.f32.mrf.mxu0  ;;  %v10874_v44 = vadd.f32 %v10673_v9, %v3428_v42  ;;  %v10885_v9 = vadd.f32 %v10685_v50, %v3430_v31  ;;  %v12278_v42 = vld [vmem:[#allocation50_spill] sm:$0xff]  ;;  %v12280_v50 = vld [vmem:[#allocation51_spill] sm:$0xff]  ;;  %v8143_v31 = vpop.f32.mrf.mxu1 }
 0x459   : > { %8254 = vpow2.f32 %v4298_v43  ;;  %v4296_v24 = vmul.f32 1.442695, %v4264_v20  ;;  %v4267_v53 = vsub.f32 0.0, %v10857_v12  ;;  %v10871_v51 = vadd.f32 %v10818_v5, %v4195_v37 }
 0x45a   : > { %v4198_v41 = vadd.f32 %v8163_v32, %v3808_v26  ;;  %v4054_v35 = vpop.f32.mrf.mxu0  ;;  %v10882_v20 = vadd.f32 %v10679_v10, %v3427_v34  ;;  %v3431_v18 = vadd.f32 %v12278_v42, %v10751_v1  ;;  %v10899_v10 = vadd.f32 %v10707_v0, %v3432_v19  ;;  %v12281_v0 = vld [vmem:[#allocation52_spill] sm:$0xff] }
 0x45b   : > { %8256 = vpow2.f32 %v4296_v24  ;;  %v4302_v23 = vmul.f32 1.442695, %v4267_v53  ;;  %v4266_v38 = vsub.f32 0.0, %v10871_v51  ;;  %v4197_v43 = vadd.f32 %v4054_v35, %v3807_v17  ;;  %v12279_v17 = vld [vmem:[#allocation57_spill] sm:$0xff] }
 0x45c   : > { %v10890_v37 = vadd.f32 %v10818_v5, %v4198_v41  ;;  %v8166_v63 = vpop.f32.mrf.mxu0  ;;  %v10896_v61 = vadd.f32 %v12279_v17, %v3429_v7  ;;  %v3434_v34 = vadd.f32 %v12280_v50, %v10758_v57  ;;  %v10909_v53 = vadd.f32 %v10754_v54, %v3431_v18  ;;  %v12282_v7 = vld [vmem:[#allocation53_spill] sm:$0xff]  ;;  %v12283_v54 = vld [vmem:[#allocation54_spill] sm:$0xff]  ;;  %v3764_v18 = vpop.f32.mrf.mxu1 }
 0x45d   : > { %8258 = vpow2.f32 %v4302_v23  ;;  %v4300_v26 = vmul.f32 1.442695, %v4266_v38  ;;  %v10893_v4 = vadd.f32 %v10818_v5, %v4197_v43  ;;  %v4200_v60 = vadd.f32 %v8166_v63, %v3810_v13 }
 0x45e   : > { %v4269_v1 = vsub.f32 0.0, %v10890_v37  ;;  %v4064_v33 = vpop.f32.mrf.mxu0  ;;  %v3433_v8 = vadd.f32 %v12281_v0, %v10762_v3  ;;  %v3436_v57 = vadd.f32 %v12282_v7, %v10766_v48  ;;  %v3435_v43 = vadd.f32 %v12283_v54, %v10770_v52  ;;  %v12284_v3 = vld [vmem:[#allocation55_spill] sm:$0xff]  ;;  %v12285_v52 = vld [vmem:[#allocation56_spill] sm:$0xff] }
 0x45f   : > { %8260 = vpow2.f32 %v4300_v26  ;;  %v4268_v32 = vsub.f32 0.0, %v10893_v4  ;;  %v10906_v24 = vadd.f32 %v10818_v5, %v4200_v60  ;;  %v4199_v13 = vadd.f32 %v4064_v33, %v3809_v2 }
 0x460   : > { %v4306_v55 = vmul.f32 1.442695, %v4269_v1  ;;  %v8169_v19 = vpop.f32.mrf.mxu0  ;;  %v10920_v2 = vadd.f32 %v10800_v59, %v3434_v34  ;;  %v3438_v42 = vadd.f32 %v12284_v3, %v10776_v30  ;;  %v10934_v59 = vadd.f32 %v10853_v28, %v3436_v57  ;;  %v12286_v28 = vld [vmem:[#allocation58_spill] sm:$0xff] }
 0x461   : > { %v4304_v41 = vmul.f32 1.442695, %v4268_v32  ;;  %v4271_v35 = vsub.f32 0.0, %v10906_v24  ;;  %v10917_v23 = vadd.f32 %v10818_v5, %v4199_v13  ;;  %v4202_v38 = vadd.f32 %v8169_v19, %v3812_v14 }
 0x462   : > { %8262 = vpow2.f32 %v4306_v55  ;;  %v4074_v48 = vpop.f32.mrf.mxu0  ;;  %v10931_v14 = vadd.f32 %v10829_v22, %v3433_v8  ;;  %v3437_v17 = vadd.f32 %v12285_v52, %v10780_v62  ;;  %v10941_v13 = vadd.f32 %v3754_v36, %v3435_v43 }
 0x463   : > { %8264 = vpow2.f32 %v4304_v41  ;;  %v4310_v63 = vmul.f32 1.442695, %v4271_v35  ;;  %v4270_v26 = vsub.f32 0.0, %v10917_v23  ;;  %v10928_v60 = vadd.f32 %v10818_v5, %v4202_v38 }
 0x464   : > { %v4201_v30 = vadd.f32 %v4074_v48, %v10844_v45  ;;  %v8172_v50 = vpop.f32.mrf.mxu0  ;;  %v10943_v22 = vadd.f32 %v8143_v31, %v3438_v42  ;;  %v3440_v0 = vadd.f32 %v12286_v28, %v10786_v27  ;;  %v8146_v45 = vpop.f32.mrf.mxu1  ;;  %v10953_v19 = vadd.f32 %v3764_v18, %v3437_v17 }
 0x465   : > { %8266 = vpow2.f32 %v4310_v63  ;;  %v4308_v34 = vmul.f32 1.442695, %v4270_v26  ;;  %v4273_v1 = vsub.f32 0.0, %v10928_v60  ;;  %v4204_v33 = vadd.f32 %v8172_v50, %v10847_v58 }
 0x466   : > { %v8255_v32 = vpop.eup %8254  ;;  %v10948_v8 = vadd.f32 %v10818_v5, %v4201_v30  ;;  %v4084_v62 = vpop.f32.mrf.mxu0  ;;  %v3439_v36 = vadd.f32 %v10697_v49, %v10790_v25  ;;  %v10961_v3 = vadd.f32 %v8146_v45, %v3440_v0 }
 0x467   : > { %v4361_v7 = vadd.f32 1.0, %v8255_v32  ;;  %8268 = vpow2.f32 %v4308_v34  ;;  %v4314_v57 = vmul.f32 1.442695, %v4273_v1  ;;  %v10951_v55 = vadd.f32 %v10818_v5, %v4204_v33  ;;  %v3774_v25 = vpop.f32.mrf.mxu1 }
 0x468   : > { %v8257_v58 = vpop.eup %8256  ;;  %v4272_v31 = vsub.f32 0.0, %v10948_v8  ;;  %v4203_v27 = vadd.f32 %v4084_v62, %v10850_v6  ;;  %v8175_v41 = vpop.f32.mrf.mxu0  ;;  %v10969_v52 = vadd.f32 %v3774_v25, %v3439_v36  ;;  %v3442_v33 = vadd.f32 %v10717_v21, %v10794_v46 }
 0x469   : > { %8270 = vrcp.f32 %v4361_v7  ;;  %v4360_v35 = vadd.f32 1.0, %v8257_v58  ;;  %v4275_v38 = vsub.f32 0.0, %v10951_v55  ;;  %v4206_v54 = vadd.f32 %v8175_v41, %v10860_v47  ;;  %v8149_v45 = vpop.f32.mrf.mxu1 }
 0x46a   : > { %v8259_v43 = vpop.eup %8258  ;;  %8272 = vpow2.f32 %v4314_v57  ;;  %v4312_v42 = vmul.f32 1.442695, %v4272_v31  ;;  %v10964_v48 = vadd.f32 %v10818_v5, %v4203_v27  ;;  %v4094_v49 = vpop.f32.mrf.mxu0 }
 0x46b   : > { %8274 = vrcp.f32 %v4360_v35  ;;  %v4363_v18 = vadd.f32 1.0, %v8259_v43  ;;  %v4318_v6 = vmul.f32 1.442695, %v4275_v38  ;;  %v10967_v63 = vadd.f32 %v10818_v5, %v4206_v54 }
 0x46c   : > { %v8261_v26 = vpop.eup %8260  ;;  %8276 = vpow2.f32 %v4312_v42  ;;  %v4274_v47 = vsub.f32 0.0, %v10964_v48  ;;  %v4205_v17 = vadd.f32 %v4094_v49, %v10863_v15  ;;  %v8178_v30 = vpop.f32.mrf.mxu0  ;;  %v10991_v38 = vadd.f32 %v8149_v45, %v3442_v33 }
 0x46d   : > { %8278 = vrcp.f32 %v4363_v18  ;;  %v4362_v50 = vadd.f32 1.0, %v8261_v26  ;;  %v4277_v34 = vsub.f32 0.0, %v10967_v63  ;;  %v4208_v1 = vadd.f32 %v8178_v30, %v10874_v44 }
 0x46e   : > { %8280 = vpow2.f32 %v4318_v6  ;;  %v4316_v32 = vmul.f32 1.442695, %v4274_v47  ;;  %v10978_v28 = vadd.f32 %v10818_v5, %v4205_v17  ;;  %v4104_v0 = vpop.f32.mrf.mxu0  ;;  %v3441_v44 = vadd.f32 %v10739_v39, %v10807_v40  ;;  %v3784_v40 = vpop.f32.mrf.mxu1 }
 0x46f   : > { %v8263_v62 = vpop.eup %8262  ;;  %8282 = vrcp.f32 %v4362_v50  ;;  %v4322_v15 = vmul.f32 1.442695, %v4277_v34  ;;  %v10981_v7 = vadd.f32 %v10818_v5, %v4208_v1  ;;  %v4207_v57 = vadd.f32 %v4104_v0, %v10882_v20 }
 0x470   : > { %v8265_v58 = vpop.eup %8264  ;;  %v4365_v21 = vadd.f32 1.0, %v8263_v62  ;;  %8284 = vpow2.f32 %v4316_v32  ;;  %v4276_v46 = vsub.f32 0.0, %v10978_v28  ;;  %v8181_v36 = vpop.f32.mrf.mxu0  ;;  %v10995_v18 = vadd.f32 %v3784_v40, %v3441_v44 }
 0x471   : > { %v4364_v31 = vadd.f32 1.0, %v8265_v58  ;;  %8286 = vpow2.f32 %v4322_v15  ;;  %v4279_v27 = vsub.f32 0.0, %v10981_v7  ;;  %v10989_v41 = vadd.f32 %v10818_v5, %v4207_v57  ;;  %v8152_v62 = vpop.f32.mrf.mxu1 }
 0x472   : > { %v8267_v35 = vpop.eup %8266  ;;  %8288 = vrcp.f32 %v4365_v21  ;;  %v4320_v20 = vmul.f32 1.442695, %v4276_v46  ;;  %v4210_v54 = vadd.f32 %v8181_v36, %v10885_v9  ;;  %v4114_v39 = vpop.f32.mrf.mxu0  ;;  %v3444_v34 = vadd.f32 %v10772_v11, %v10811_v56 }
 0x473   : > { %8290 = vrcp.f32 %v4364_v31  ;;  %v4367_v43 = vadd.f32 1.0, %v8267_v35  ;;  %v4326_v42 = vmul.f32 1.442695, %v4279_v27  ;;  %v4278_v49 = vsub.f32 0.0, %v10989_v41 }
 0x474   : > { %v8269_v25 = vpop.eup %8268  ;;  %8292 = vpow2.f32 %v4320_v20  ;;  %v10998_v6 = vadd.f32 %v10818_v5, %v4210_v54  ;;  %v4209_v26 = vadd.f32 %v4114_v39, %v10896_v61  ;;  %v8184_v47 = vpop.f32.mrf.mxu0  ;;  %v11021_v31 = vadd.f32 %v8152_v62, %v3444_v34  ;;  %v11026_v54 = vld [vmem:[%s12019_s5 + $0x8] sm:$0xff] }
 0x475   : > { %8294 = vrcp.f32 %v4367_v43  ;;  %v4366_v17 = vadd.f32 1.0, %v8269_v25  ;;  %v4324_v9 = vmul.f32 1.442695, %v4278_v49  ;;  %v4212_v30 = vadd.f32 %v8184_v47, %v10899_v10  ;;  %7479 = vmatprep.mubr.msk.f32.mxu1 %vm4488_vm3, %v11026_v54 }
 0x476   : > { %v8271_v50 = vpop.eup %8270  ;;  %8296 = vpow2.f32 %v4326_v42  ;;  %v4281_v1 = vsub.f32 0.0, %v10998_v6  ;;  %v11006_v33 = vadd.f32 %v10818_v5, %v4209_v26  ;;  %v4124_v32 = vpop.f32.mrf.mxu0 }
 0x477   : > { %v8273_v0 = vpop.eup %8272  ;;  %v4457_v61 = vmul.f32 %v8271_v50, %v10832_v16  ;;  %8298 = vrcp.f32 %v4366_v17  ;;  %v11010_v45 = vadd.f32 %v10818_v5, %v4212_v30  ;;  %v4211_v10 = vadd.f32 %v4124_v32, %v10909_v53 }
 0x478   : > { %v8275_v15 = vpop.eup %8274  ;;  %v4369_v57 = vadd.f32 1.0, %v8273_v0  ;;  %8300 = vpow2.f32 %v4324_v9  ;;  %v4330_v11 = vmul.f32 1.442695, %v4281_v1  ;;  %v4280_v56 = vsub.f32 0.0, %v11006_v33  ;;  %v8187_v58 = vpop.f32.mrf.mxu0 }
 0x479   : > { %v8277_v44 = vpop.eup %8276  ;;  %4546 = vst.msk [vmem:[#allocation3 + $0x21] sm:$0xff] %vm4488_vm3, %v4457_v61  ;;  %v4456_v21 = vmul.f32 %v8275_v15, %v10841_v29  ;;  %v4283_v16 = vsub.f32 0.0, %v11010_v45  ;;  %v11018_v46 = vadd.f32 %v10818_v5, %v4211_v10  ;;  %v4214_v36 = vadd.f32 %v8187_v58, %v10920_v2 }
 0x47a   : > { %v8279_v53 = vpop.eup %8278  ;;  %8302 = vrcp.f32 %v4369_v57  ;;  %v4368_v27 = vadd.f32 1.0, %v8277_v44  ;;  %v4328_v35 = vmul.f32 1.442695, %v4280_v56  ;;  %v4134_v20 = vpop.f32.mrf.mxu0 }
 0x47b   : > { %v8281_v29 = vpop.eup %8280  ;;  %4545 = vst.msk [vmem:[#allocation3 + $0x19] sm:$0xff] %vm4488_vm3, %v4456_v21  ;;  %v4459_v39 = vmul.f32 %v8279_v53, %v10857_v12  ;;  %8304 = vpow2.f32 %v4330_v11  ;;  %v4334_v40 = vmul.f32 1.442695, %v4283_v16  ;;  %v4282_v2 = vsub.f32 0.0, %v11018_v46  ;;  %v11040_v12 = vld [vmem:[%s12019_s5] sm:$0xff] }
 0x47c   : > { %v8283_v43 = vpop.eup %8282  ;;  %8306 = vrcp.f32 %v4368_v27  ;;  %v4371_v42 = vadd.f32 1.0, %v8281_v29  ;;  %v11034_v49 = vadd.f32 %v10818_v5, %v4214_v36  ;;  %v4213_v25 = vadd.f32 %v4134_v20, %v10931_v14  ;;  %v8190_v26 = vpop.f32.mrf.mxu0  ;;  %7513 = vmatprep.mubr.msk.f32.mxu0 %vm4488_vm3, %v11040_v12 }
 0x47d   : > { %v8285_v47 = vpop.eup %8284  ;;  %4548 = vst.msk [vmem:[#allocation3 + $0x39] sm:$0xff] %vm4488_vm3, %v4459_v39  ;;  %v4458_v17 = vmul.f32 %v8283_v43, %v10871_v51  ;;  %8308 = vpow2.f32 %v4328_v35  ;;  %v4332_v9 = vmul.f32 1.442695, %v4282_v2  ;;  %v4216_v30 = vadd.f32 %v8190_v26, %v10934_v59  ;;  %v3794_v39 = vpop.f32.mrf.mxu1 }
 0x47e   : > { %v8287_v50 = vpop.eup %8286  ;;  %8310 = vrcp.f32 %v4371_v42  ;;  %v4370_v14 = vadd.f32 1.0, %v8285_v47  ;;  %v4285_v34 = vsub.f32 0.0, %v11034_v49  ;;  %v11049_v1 = vadd.f32 %v10818_v5, %v4213_v25  ;;  %v4144_v32 = vpop.f32.mrf.mxu0 }
 0x47f   : > { %v8289_v0 = vpop.eup %8288  ;;  %4547 = vst.msk [vmem:[#allocation3 + $0x31] sm:$0xff] %vm4488_vm3, %v4458_v17  ;;  %v4373_v51 = vadd.f32 1.0, %v8287_v50  ;;  %8312 = vpow2.f32 %v4334_v40  ;;  %v11053_v62 = vadd.f32 %v10818_v5, %v4216_v30  ;;  %v4215_v59 = vadd.f32 %v4144_v32, %v10941_v13 }
 0x480   : > { %v8291_v61 = vpop.eup %8290  ;;  %v4461_v10 = vmul.f32 %v8289_v0, %v10890_v37  ;;  %8314 = vrcp.f32 %v4370_v14  ;;  %v4338_v15 = vmul.f32 1.442695, %v4285_v34  ;;  %v4284_v57 = vsub.f32 0.0, %v11049_v1  ;;  %v8193_v11 = vpop.f32.mrf.mxu0 }
 0x481   : > { %v8293_v56 = vpop.eup %8292  ;;  %v4460_v58 = vmul.f32 %v8291_v61, %v10893_v4  ;;  %8316 = vrcp.f32 %v4373_v51  ;;  %v4287_v44 = vsub.f32 0.0, %v11053_v62  ;;  %v11061_v21 = vadd.f32 %v10818_v5, %v4215_v59 }
 0x482   : > { %v8295_v16 = vpop.eup %8294  ;;  %4550 = vst.msk [vmem:[#allocation3 + $0x51] sm:$0xff] %vm4488_vm3, %v4461_v10  ;;  %v4372_v13 = vadd.f32 1.0, %v8293_v56  ;;  %8318 = vpow2.f32 %v4332_v9  ;;  %v4336_v37 = vmul.f32 1.442695, %v4284_v57  ;;  %v4218_v36 = vadd.f32 %v8193_v11, %v10943_v22  ;;  %v4154_v53 = vpop.f32.mrf.mxu0 }
 0x483   : > { %v8297_v27 = vpop.eup %8296  ;;  %4549 = vst.msk [vmem:[#allocation3 + $0x49] sm:$0xff] %vm4488_vm3, %v4460_v58  ;;  %v4463_v4 = vmul.f32 %v8295_v16, %v10906_v24  ;;  %8320 = vpow2.f32 %v4338_v15  ;;  %v4342_v35 = vmul.f32 1.442695, %v4287_v44  ;;  %v4286_v20 = vsub.f32 0.0, %v11061_v21 }
 0x484   : > { %v8299_v29 = vpop.eup %8298  ;;  %8322 = vrcp.f32 %v4372_v13  ;;  %v4375_v40 = vadd.f32 1.0, %v8297_v27  ;;  %v11069_v2 = vadd.f32 %v10818_v5, %v4218_v36  ;;  %v4217_v43 = vadd.f32 %v4154_v53, %v10953_v19  ;;  %v8196_v22 = vpop.f32.mrf.mxu0  ;;  %v12287_v19 = vld [vmem:[#allocation10_spill] sm:$0xff] }
 0x485   : > { %v8301_v42 = vpop.eup %8300  ;;  %4552 = vst.msk [vmem:[#allocation3 + $0x69] sm:$0xff] %vm4488_vm3, %v4463_v4  ;;  %v4462_v25 = vmul.f32 %v8299_v29, %v10917_v23  ;;  %8324 = vpow2.f32 %v4336_v37  ;;  %v4340_v24 = vmul.f32 1.442695, %v4286_v20  ;;  %v4220_v26 = vadd.f32 %v8196_v22, %v10961_v3 }
 0x486   : > { %8326 = vrcp.f32 %v4375_v40  ;;  %v4374_v47 = vadd.f32 1.0, %v8301_v42  ;;  %v4289_v17 = vsub.f32 0.0, %v11069_v2  ;;  %v11077_v9 = vadd.f32 %v10818_v5, %v4217_v43  ;;  %v4164_v30 = vpop.f32.mrf.mxu0 }
 0x487   : > { %v8303_v50 = vpop.eup %8302  ;;  %v3833_v14 = vadd.f32 %v3794_v39, %v12287_v19  ;;  %4551 = vst.msk [vmem:[#allocation3 + $0x61] sm:$0xff] %vm4488_vm3, %v4462_v25  ;;  %8328 = vpow2.f32 %v4342_v35  ;;  %v11082_v23 = vadd.f32 %v10818_v5, %v4220_v26  ;;  %v4219_v34 = vadd.f32 %v4164_v30, %v10969_v52 }
 0x488   : > { %v8305_v3 = vpop.eup %8304  ;;  %v4465_v32 = vmul.f32 %v8303_v50, %v10928_v60  ;;  %8330 = vrcp.f32 %v4374_v47  ;;  %v4346_v0 = vmul.f32 1.442695, %v4289_v17  ;;  %v4288_v51 = vsub.f32 0.0, %v11077_v9  ;;  %v8199_v59 = vpop.f32.mrf.mxu0 }
 0x489   : > { %v8307_v61 = vpop.eup %8306  ;;  %v4377_v10 = vadd.f32 1.0, %v8305_v3  ;;  %8332 = vpow2.f32 %v4340_v24  ;;  %v4291_v15 = vsub.f32 0.0, %v11082_v23  ;;  %v11089_v57 = vadd.f32 %v10818_v5, %v4219_v34 }
 0x48a   : > { %v8309_v11 = vpop.eup %8308  ;;  %4554 = vst.msk [vmem:[#allocation3 + $0x81] sm:$0xff] %vm4488_vm3, %v4465_v32  ;;  %v4464_v52 = vmul.f32 %v8307_v61, %v10948_v8  ;;  %8334 = vpow2.f32 %v4346_v0  ;;  %v4344_v60 = vmul.f32 1.442695, %v4288_v51  ;;  %v4222_v56 = vadd.f32 %v8199_v59, %v10991_v38  ;;  %v4174_v58 = vpop.f32.mrf.mxu0 }
 0x48b   : > { %v8311_v44 = vpop.eup %8310  ;;  %8336 = vrcp.f32 %v4377_v10  ;;  %v4376_v16 = vadd.f32 1.0, %v8309_v11  ;;  %v4350_v13 = vmul.f32 1.442695, %v4291_v15  ;;  %v4290_v37 = vsub.f32 0.0, %v11089_v57 }
 0x48c   : > { %v8313_v36 = vpop.eup %8312  ;;  %4553 = vst.msk [vmem:[#allocation3 + $0x79] sm:$0xff] %vm4488_vm3, %v4464_v52  ;;  %v4467_v53 = vmul.f32 %v8311_v44, %v10951_v55  ;;  %8338 = vpow2.f32 %v4344_v60  ;;  %v11098_v27 = vadd.f32 %v10818_v5, %v4222_v56  ;;  %v4221_v8 = vadd.f32 %v4174_v58, %v10995_v18  ;;  %v8202_v4 = vpop.f32.mrf.mxu0 }
 0x48d   : > { %v8315_v38 = vpop.eup %8314  ;;  %8340 = vrcp.f32 %v4376_v16  ;;  %v4379_v35 = vadd.f32 1.0, %v8313_v36  ;;  %v4348_v20 = vmul.f32 1.442695, %v4290_v37  ;;  %v4224_v29 = vadd.f32 %v8202_v4, %v11021_v31 }
 0x48e   : > { %v8317_v39 = vpop.eup %8316  ;;  %4556 = vst.msk [vmem:[#allocation3 + $0x99] sm:$0xff] %vm4488_vm3, %v4467_v53  ;;  %v4466_v40 = vmul.f32 %v8315_v38, %v10964_v48  ;;  %8342 = vpow2.f32 %v4350_v13  ;;  %v4293_v55 = vsub.f32 0.0, %v11098_v27  ;;  %v11106_v43 = vadd.f32 %v10818_v5, %v4221_v8  ;;  %v4184_v22 = vpop.f32.mrf.mxu0 }
 0x48f   : > { %v8319_v18 = vpop.eup %8318  ;;  %v4469_v42 = vmul.f32 %v8317_v39, %v10967_v63  ;;  %8344 = vrcp.f32 %v4379_v35  ;;  %v11110_v25 = vadd.f32 %v10818_v5, %v4224_v29  ;;  %v4223_v31 = vadd.f32 %v4184_v22, %v3833_v14 }
 0x490   : > { %v8321_v24 = vpop.eup %8320  ;;  %4555 = vst.msk [vmem:[#allocation3 + $0x91] sm:$0xff] %vm4488_vm3, %v4466_v40  ;;  %v4378_v26 = vadd.f32 1.0, %v8319_v18  ;;  %8346 = vpow2.f32 %v4348_v20  ;;  %v4354_v48 = vmul.f32 1.442695, %v4293_v55  ;;  %v4292_v47 = vsub.f32 0.0, %v11106_v43 }
 0x491   : > { %v8323_v17 = vpop.eup %8322  ;;  %4558 = vst.msk [vmem:[#allocation3 + $0xb1] sm:$0xff] %vm4488_vm3, %v4469_v42  ;;  %v4381_v30 = vadd.f32 1.0, %v8321_v24  ;;  %v4295_v50 = vsub.f32 0.0, %v11110_v25  ;;  %v11117_v63 = vadd.f32 %v10818_v5, %v4223_v31 }
 0x492   : > { %v8325_v19 = vpop.eup %8324  ;;  %v4468_v14 = vmul.f32 %v8323_v17, %v10978_v28  ;;  %8348 = vrcp.f32 %v4378_v26  ;;  %v4352_v34 = vmul.f32 1.442695, %v4292_v47 }
 0x493   : > { %v8327_v3 = vpop.eup %8326  ;;  %8350 = vrcp.f32 %v4381_v30  ;;  %v4380_v32 = vadd.f32 1.0, %v8325_v19  ;;  %v4294_v0 = vsub.f32 0.0, %v11117_v63  ;;  %v4358_v61 = vmul.f32 1.442695, %v4295_v50 }
 0x494   : > { %v8329_v51 = vpop.eup %8328  ;;  %4557 = vst.msk [vmem:[#allocation3 + $0xa9] sm:$0xff] %vm4488_vm3, %v4468_v14  ;;  %v4471_v59 = vmul.f32 %v8327_v3, %v10981_v7  ;;  %8352 = vpow2.f32 %v4354_v48 }
 0x495   : > { %v8331_v10 = vpop.eup %8330  ;;  %8354 = vrcp.f32 %v4380_v32  ;;  %v4383_v5 = vadd.f32 1.0, %v8329_v51  ;;  %v4356_v60 = vmul.f32 1.442695, %v4294_v0 }
 0x496   : > { %v8333_v15 = vpop.eup %8332  ;;  %4560 = vst.msk [vmem:[#allocation3 + $0xc9] sm:$0xff] %vm4488_vm3, %v4471_v59  ;;  %v4470_v28 = vmul.f32 %v8331_v10, %v10989_v41  ;;  %8356 = vpow2.f32 %v4352_v34 }
 0x497   : > { %v8335_v11 = vpop.eup %8334  ;;  %8358 = vrcp.f32 %v4383_v5  ;;  %v4382_v52 = vadd.f32 1.0, %v8333_v15  ;;  %v11198_v15 = vld [vmem:[#allocation3 + $0x99] sm:$0xff] }
 0x498   : > { %v8337_v56 = vpop.eup %8336  ;;  %4559 = vst.msk [vmem:[#allocation3 + $0xc1] sm:$0xff] %vm4488_vm3, %v4470_v28  ;;  %v4385_v58 = vadd.f32 1.0, %v8335_v11  ;;  %8360 = vpow2.f32 %v4358_v61  ;;  %v11206_v11 = vld [vmem:[#allocation3 + $0x98] sm:$0xff] }
 0x499   : > { %v8339_v7 = vpop.eup %8338  ;;  %v4473_v44 = vmul.f32 %v8337_v56, %v10998_v6  ;;  %8362 = vrcp.f32 %v4382_v52  ;;  %12293 = vst [vmem:[#allocation17_spill] sm:$0xff] %v11206_v11 }
 0x49a   : > { %v8341_v16 = vpop.eup %8340  ;;  %8364 = vrcp.f32 %v4385_v58  ;;  %v4384_v13 = vadd.f32 1.0, %v8339_v7  ;;  %v11222_v58 = vld [vmem:[#allocation3 + $0x90] sm:$0xff] }
 0x49b   : > { %v8343_v37 = vpop.eup %8342  ;;  %4562 = vst.msk [vmem:[#allocation3 + $0xe1] sm:$0xff] %vm4488_vm3, %v4473_v44  ;;  %v4472_v41 = vmul.f32 %v8341_v16, %v11006_v33  ;;  %8366 = vpow2.f32 %v4356_v60  ;;  %v11182_v59 = vld [vmem:[#allocation3 + $0xa9] sm:$0xff]  ;;  %v11214_v60 = vld [vmem:[#allocation3 + $0x91] sm:$0xff]  ;;  %12295 = vst [vmem:[#allocation18_spill] sm:$0xff] %v11222_v58 }
 0x49c   : > { %v8345_v36 = vpop.eup %8344  ;;  %8368 = vrcp.f32 %v4384_v13  ;;  %v4387_v53 = vadd.f32 1.0, %v8343_v37  ;;  %v11190_v10 = vld [vmem:[#allocation3 + $0xa8] sm:$0xff]  ;;  %v11238_v13 = vld [vmem:[#allocation3 + $0x80] sm:$0xff] }
 0x49d   : > { %v8347_v8 = vpop.eup %8346  ;;  %4561 = vst.msk [vmem:[#allocation3 + $0xd9] sm:$0xff] %vm4488_vm3, %v4472_v41  ;;  %v4475_v4 = vmul.f32 %v8345_v36, %v11010_v45  ;;  %12291 = vst [vmem:[#allocation14_spill] sm:$0xff] %v11190_v10  ;;  %v11230_v44 = vld [vmem:[#allocation3 + $0x81] sm:$0xff]  ;;  %v11246_v41 = vld [vmem:[#allocation3 + $0x79] sm:$0xff] }
 0x49e   : > { %8370 = vrcp.f32 %v4387_v53  ;;  %v4386_v6 = vadd.f32 1.0, %v8347_v8  ;;  %12297 = vst [vmem:[#allocation28_spill] sm:$0xff] %v11238_v13  ;;  %v11254_v53 = vld [vmem:[#allocation3 + $0x78] sm:$0xff] }
 0x49f   : > { %v8349_v38 = vpop.eup %8348  ;;  %4564 = vst.msk [vmem:[#allocation3 + $0xf9] sm:$0xff] %vm4488_vm3, %v4475_v4  ;;  %12299 = vst [vmem:[#allocation24_spill] sm:$0xff] %v11254_v53  ;;  %v11262_v4 = vld [vmem:[#allocation3 + $0x69] sm:$0xff] }
 0x4a0   : > { %v8351_v35 = vpop.eup %8350  ;;  %v4474_v20 = vmul.f32 %v8349_v38, %v11018_v46  ;;  %8372 = vrcp.f32 %v4386_v6  ;;  %v11270_v38 = vld [vmem:[#allocation3 + $0x68] sm:$0xff] }
 0x4a1   : > { %v8353_v29 = vpop.eup %8352  ;;  %v4477_v33 = vmul.f32 %v8351_v35, %v11034_v49  ;;  %12301 = vst [vmem:[#allocation19_spill] sm:$0xff] %v11270_v38 }
 0x4a2   : > { %v8355_v39 = vpop.eup %8354  ;;  %4563 = vst.msk [vmem:[#allocation3 + $0xf1] sm:$0xff] %vm4488_vm3, %v4474_v20  ;;  %v4389_v40 = vadd.f32 1.0, %v8353_v29  ;;  %v11278_v20 = vld [vmem:[#allocation3 + $0x61] sm:$0xff] }
 0x4a3   : > { %v8357_v55 = vpop.eup %8356  ;;  %4566 = vst.msk [vmem:[#allocation3 + $0x111] sm:$0xff] %vm4488_vm3, %v4477_v33  ;;  %v4476_v45 = vmul.f32 %v8355_v39, %v11049_v1  ;;  %v11286_v33 = vld [vmem:[#allocation3 + $0x60] sm:$0xff] }
 0x4a4   : > { %v8359_v22 = vpop.eup %8358  ;;  %8374 = vrcp.f32 %v4389_v40  ;;  %v4388_v18 = vadd.f32 1.0, %v8357_v55  ;;  %12303 = vst [vmem:[#allocation21_spill] sm:$0xff] %v11286_v33  ;;  %v11294_v40 = vld [vmem:[#allocation3 + $0x51] sm:$0xff] }
 0x4a5   : > { %v8361_v42 = vpop.eup %8360  ;;  %4565 = vst.msk [vmem:[#allocation3 + $0x109] sm:$0xff] %vm4488_vm3, %v4476_v45  ;;  %v4479_v46 = vmul.f32 %v8359_v22, %v11053_v62  ;;  %v11302_v45 = vld [vmem:[#allocation3 + $0x50] sm:$0xff] }
 0x4a6   : > { %v8363_v31 = vpop.eup %8362  ;;  %8376 = vrcp.f32 %v4388_v18  ;;  %v4391_v49 = vadd.f32 1.0, %v8361_v42  ;;  %12305 = vst [vmem:[#allocation35_spill] sm:$0xff] %v11302_v45  ;;  %v11310_v18 = vld [vmem:[#allocation3 + $0x49] sm:$0xff]  ;;  %v11314_v42 = vld [vmem:[#allocation3 + $0xf9] sm:$0xff] }
 0x4a7   : > { %v8365_v24 = vpop.eup %8364  ;;  %4568 = vst.msk [vmem:[#allocation3 + $0x129] sm:$0xff] %vm4488_vm3, %v4479_v46  ;;  %v4478_v26 = vmul.f32 %v8363_v31, %v11061_v21  ;;  %v11318_v46 = vld [vmem:[#allocation3 + $0x48] sm:$0xff] }
 0x4a8   : > { %v8367_v48 = vpop.eup %8366  ;;  %v4481_v47 = vmul.f32 %v8365_v24, %v11069_v2  ;;  %8378 = vrcp.f32 %v4391_v49  ;;  %12307 = vst [vmem:[#allocation26_spill] sm:$0xff] %v11318_v46  ;;  %v11326_v49 = vld [vmem:[#allocation3 + $0x39] sm:$0xff] }
 0x4a9   : > { %v8369_v1 = vpop.eup %8368  ;;  %4567 = vst.msk [vmem:[#allocation3 + $0x121] sm:$0xff] %vm4488_vm3, %v4478_v26  ;;  %v4390_v17 = vadd.f32 1.0, %v8367_v48  ;;  %v11322_v31 = vld [vmem:[#allocation3 + $0xf8] sm:$0xff]  ;;  %v11338_v48 = vld [vmem:[#allocation3 + $0xf0] sm:$0xff] }
 0x4aa   : > { %4570 = vst.msk [vmem:[#allocation3 + $0x141] sm:$0xff] %vm4488_vm3, %v4481_v47  ;;  %v4480_v62 = vmul.f32 %v8369_v1, %v11077_v9  ;;  %v11282_v29 = vld [vmem:[#allocation3 + $0x111] sm:$0xff]  ;;  %12308 = vst [vmem:[#allocation33_spill] sm:$0xff] %v11322_v31  ;;  %v11346_v1 = vld [vmem:[#allocation3 + $0xe1] sm:$0xff] }
 0x4ab   : > { %v8371_v30 = vpop.eup %8370  ;;  %8380 = vrcp.f32 %v4390_v17  ;;  %v11330_v24 = vld [vmem:[#allocation3 + $0xf1] sm:$0xff]  ;;  %12310 = vst [vmem:[#allocation31_spill] sm:$0xff] %v11338_v48  ;;  %12312 = vst [vmem:[#allocation38_spill] sm:$0xff] %v11346_v1 }
 0x4ac   : > { %4569 = vst.msk [vmem:[#allocation3 + $0x139] sm:$0xff] %vm4488_vm3, %v4480_v62  ;;  %v4483_v50 = vmul.f32 %v8371_v30, %v11082_v23  ;;  %v11290_v39 = vld [vmem:[#allocation3 + $0x110] sm:$0xff]  ;;  %v11306_v22 = vld [vmem:[#allocation3 + $0x108] sm:$0xff]  ;;  %v11334_v26 = vld [vmem:[#allocation3 + $0x38] sm:$0xff] }
 0x4ad   : > { %v8373_v19 = vpop.eup %8372  ;;  %12304 = vst [vmem:[#allocation7_spill] sm:$0xff] %v11290_v39  ;;  %v11298_v55 = vld [vmem:[#allocation3 + $0x109] sm:$0xff]  ;;  %12306 = vst [vmem:[#allocation25_spill] sm:$0xff] %v11306_v22  ;;  %v11342_v47 = vld [vmem:[#allocation3 + $0x31] sm:$0xff] }
 0x4ae   : > { %4572 = vst.msk [vmem:[#allocation3 + $0x159] sm:$0xff] %vm4488_vm3, %v4483_v50  ;;  %v4482_v21 = vmul.f32 %v8373_v19, %v11089_v57  ;;  %v11250_v36 = vld [vmem:[#allocation3 + $0x129] sm:$0xff]  ;;  %12309 = vst [vmem:[#allocation27_spill] sm:$0xff] %v11334_v26  ;;  %v11354_v62 = vld [vmem:[#allocation3 + $0xe0] sm:$0xff] }
 0x4af   : > { %12311 = vst [vmem:[#allocation37_spill] sm:$0xff] %v11342_v47  ;;  %v11350_v17 = vld [vmem:[#allocation3 + $0x30] sm:$0xff]  ;;  %12314 = vst [vmem:[#allocation34_spill] sm:$0xff] %v11354_v62  ;;  %v11358_v30 = vld [vmem:[#allocation3 + $0x21] sm:$0xff] }
 0x4b0   : > { %4571 = vst.msk [vmem:[#allocation3 + $0x151] sm:$0xff] %vm4488_vm3, %v4482_v21  ;;  %v11258_v8 = vld [vmem:[#allocation3 + $0x128] sm:$0xff]  ;;  %v11274_v35 = vld [vmem:[#allocation3 + $0x120] sm:$0xff]  ;;  %12313 = vst [vmem:[#allocation30_spill] sm:$0xff] %v11350_v17 }
 0x4b1   : > { %v8375_v2 = vpop.eup %8374  ;;  %v11218_v56 = vld [vmem:[#allocation3 + $0x141] sm:$0xff]  ;;  %12300 = vst [vmem:[#allocation20_spill] sm:$0xff] %v11258_v8  ;;  %12302 = vst [vmem:[#allocation22_spill] sm:$0xff] %v11274_v35  ;;  %v11362_v50 = vld [vmem:[#allocation3 + $0xd9] sm:$0xff] }
 0x4b2   : > { %v4485_v14 = vmul.f32 %v8375_v2, %v11098_v27  ;;  %v11162_v27 = vld [vmem:[#allocation3 + $0xb1] sm:$0xff]  ;;  %v11266_v6 = vld [vmem:[#allocation3 + $0x121] sm:$0xff]  ;;  %12315 = vst [vmem:[#allocation36_spill] sm:$0xff] %v11358_v30  ;;  %12316 = vst [vmem:[#allocation8_spill] sm:$0xff] %v11362_v50 }
 0x4b3   : > { %v8377_v34 = vpop.eup %8376  ;;  %v11226_v7 = vld [vmem:[#allocation3 + $0x140] sm:$0xff]  ;;  %v11242_v37 = vld [vmem:[#allocation3 + $0x138] sm:$0xff] }
 0x4b4   : > { %4574 = vst.msk [vmem:[#allocation3 + $0x171] sm:$0xff] %vm4488_vm3, %v4485_v14  ;;  %v4484_v9 = vmul.f32 %v8377_v34, %v11106_v43  ;;  %12296 = vst [vmem:[#allocation23_spill] sm:$0xff] %v11226_v7  ;;  %v11234_v16 = vld [vmem:[#allocation3 + $0x139] sm:$0xff]  ;;  %v11378_v14 = vld [vmem:[#allocation3 + $0xc9] sm:$0xff] }
 0x4b5   : > { %v8379_v3 = vpop.eup %8378  ;;  %v11186_v61 = vld [vmem:[#allocation3 + $0x159] sm:$0xff]  ;;  %12298 = vst [vmem:[#allocation32_spill] sm:$0xff] %v11242_v37 }
 0x4b6   : > { %4573 = vst.msk [vmem:[#allocation3 + $0x169] sm:$0xff] %vm4488_vm3, %v4484_v9  ;;  %v4487_v23 = vmul.f32 %v8379_v3, %v11110_v25  ;;  %v11366_v19 = vld [vmem:[#allocation3 + $0x20] sm:$0xff]  ;;  %v11370_v21 = vld [vmem:[#allocation3 + $0xd8] sm:$0xff]  ;;  %v4611_v9 = vld [vmem:[#allocation3 + $0x9] sm:$0xff] }
 0x4b7   : > { %v11194_v5 = vld [vmem:[#allocation3 + $0x158] sm:$0xff]  ;;  %v11210_v52 = vld [vmem:[#allocation3 + $0x150] sm:$0xff]  ;;  %v11386_v3 = vld [vmem:[#allocation3 + $0xc8] sm:$0xff] }
 0x4b8   : > { %v8381_v32 = vpop.eup %8380  ;;  %4576 = vst.msk [vmem:[#allocation3 + $0x189] sm:$0xff] %vm4488_vm3, %v4487_v23  ;;  %12292 = vst [vmem:[#allocation15_spill] sm:$0xff] %v11194_v5  ;;  %v11202_v28 = vld [vmem:[#allocation3 + $0x151] sm:$0xff]  ;;  %v11374_v2 = vld [vmem:[#allocation3 + $0x19] sm:$0xff] }
 0x4b9   : > { %v4486_v57 = vmul.f32 %v8381_v32, %v11117_v63  ;;  %v11174_v63 = vld [vmem:[#allocation3 + $0xb0] sm:$0xff]  ;;  %12294 = vst [vmem:[#allocation16_spill] sm:$0xff] %v11210_v52  ;;  %12317 = vst [vmem:[#allocation40_spill] sm:$0xff] %v11374_v2  ;;  %v11382_v34 = vld [vmem:[#allocation3 + $0x18] sm:$0xff] }
 0x4ba   : > { %12289 = vst [vmem:[#allocation12_spill] sm:$0xff] %v11174_v63  ;;  %12318 = vst [vmem:[#allocation41_spill] sm:$0xff] %v11386_v3  ;;  %v4578_v23 = vld [vmem:[#allocation3 + $0x8] sm:$0xff] }
 0x4bb   : > { %4575 = vst.msk [vmem:[#allocation3 + $0x181] sm:$0xff] %vm4488_vm3, %v4486_v57  ;;  %v11158_v0 = vld [vmem:[#allocation3 + $0x171] sm:$0xff]  ;;  %v11391_v32 = vld [vmem:[#allocation3 + $0xc1] sm:$0xff] }
 0x4bc   : > { %7447 = vmatprep.subr.msk.mxu1 %vm4488_vm3, %v11158_v0  ;;  %v4610_v57 = vld [vmem:[#allocation3 + $0x1] sm:$0xff] }
 0x4bd   : > { %7448 = vmatpush3.xpose.msk.msra.mxu1 %vm4488_vm3, %v11162_v27  ;;  %v11166_v43 = vld [vmem:[#allocation3 + $0x169] sm:$0xff] }
 0x4be   : > { %v11168_v25 = vld [vmem:[#allocation3 + $0x170] sm:$0xff]  ;;  %7449 = vmatprep.subr.msk.mxu1 %vm4488_vm3, %v11166_v43  ;;  %v11178_v51 = vld [vmem:[#allocation3 + $0x168] sm:$0xff] }
 0x4bf   : > { %12288 = vst [vmem:[#allocation11_spill] sm:$0xff] %v11168_v25  ;;  %7481 = vmatprep.subr.msk.mxu0 %vm4488_vm3, %v11168_v25  ;;  %12290 = vst [vmem:[#allocation13_spill] sm:$0xff] %v11178_v51 }
 0x4c0   : > { %7482 = vmatpush3.xpose.msk.msra.mxu0 %vm4488_vm3, %v11174_v63 }
 0x4c1   : > { %7483 = vmatprep.subr.msk.mxu0 %vm4488_vm3, %v11178_v51  ;;  %7450 = vmatpush3.xpose.msk.msra.mxu1 %vm4488_vm3, %v11182_v59 }
 0x4c2   : > { %7451 = vmatprep.subr.msk.mxu1 %vm4488_vm3, %v11186_v61 }
 0x4c4   : > { %7484 = vmatpush3.xpose.msk.msra.mxu0 %vm4488_vm3, %v11190_v10 }
 0x4c5   : > { %7485 = vmatprep.subr.msk.mxu0 %vm4488_vm3, %v11194_v5  ;;  %7452 = vmatpush3.xpose.msk.msra.mxu1 %vm4488_vm3, %v11198_v15 }
 0x4c6   : > { %7453 = vmatprep.subr.msk.mxu1 %vm4488_vm3, %v11202_v28 }
 0x4c8   : > { %7486 = vmatpush3.xpose.msk.msra.mxu0 %vm4488_vm3, %v11206_v11 }
 0x4c9   : > { %7487 = vmatprep.subr.msk.mxu0 %vm4488_vm3, %v11210_v52  ;;  %7454 = vmatpush3.xpose.msk.msra.mxu1 %vm4488_vm3, %v11214_v60 }
 0x4ca   : > { %7455 = vmatprep.subr.msk.mxu1 %vm4488_vm3, %v11218_v56 }
 0x4cc   : > { %7488 = vmatpush3.xpose.msk.msra.mxu0 %vm4488_vm3, %v11222_v58 }
 0x4cd   : > { %7489 = vmatprep.subr.msk.mxu0 %vm4488_vm3, %v11226_v7  ;;  %7456 = vmatpush3.xpose.msk.msra.mxu1 %vm4488_vm3, %v11230_v44 }
 0x4ce   : > { %7457 = vmatprep.subr.msk.mxu1 %vm4488_vm3, %v11234_v16 }
 0x4d0   : > { %7490 = vmatpush3.xpose.msk.msra.mxu0 %vm4488_vm3, %v11238_v13 }
 0x4d1   : > { %7491 = vmatprep.subr.msk.mxu0 %vm4488_vm3, %v11242_v37  ;;  %7458 = vmatpush3.xpose.msk.msra.mxu1 %vm4488_vm3, %v11246_v41 }
 0x4d2   : > { %7459 = vmatprep.subr.msk.mxu1 %vm4488_vm3, %v11250_v36 }
 0x4d4   : > { %7492 = vmatpush3.xpose.msk.msra.mxu0 %vm4488_vm3, %v11254_v53 }
 0x4d5   : > { %7493 = vmatprep.subr.msk.mxu0 %vm4488_vm3, %v11258_v8  ;;  %7460 = vmatpush3.xpose.msk.msra.mxu1 %vm4488_vm3, %v11262_v4 }
 0x4d6   : > { %7461 = vmatprep.subr.msk.mxu1 %vm4488_vm3, %v11266_v6 }
 0x4d8   : > { %7494 = vmatpush3.xpose.msk.msra.mxu0 %vm4488_vm3, %v11270_v38 }
 0x4d9   : > { %7495 = vmatprep.subr.msk.mxu0 %vm4488_vm3, %v11274_v35  ;;  %7462 = vmatpush3.xpose.msk.msra.mxu1 %vm4488_vm3, %v11278_v20 }
 0x4da   : > { %7463 = vmatprep.subr.msk.mxu1 %vm4488_vm3, %v11282_v29 }
 0x4dc   : > { %7496 = vmatpush3.xpose.msk.msra.mxu0 %vm4488_vm3, %v11286_v33 }
 0x4dd   : > { %7497 = vmatprep.subr.msk.mxu0 %vm4488_vm3, %v11290_v39  ;;  %7464 = vmatpush3.xpose.msk.msra.mxu1 %vm4488_vm3, %v11294_v40 }
 0x4de   : > { %7465 = vmatprep.subr.msk.mxu1 %vm4488_vm3, %v11298_v55 }
 0x4e0   : > { %7498 = vmatpush3.xpose.msk.msra.mxu0 %vm4488_vm3, %v11302_v45 }
 0x4e1   : > { %7499 = vmatprep.subr.msk.mxu0 %vm4488_vm3, %v11306_v22  ;;  %7466 = vmatpush3.xpose.msk.msra.mxu1 %vm4488_vm3, %v11310_v18 }
 0x4e2   : > { %7467 = vmatprep.subr.msk.mxu1 %vm4488_vm3, %v11314_v42 }
 0x4e4   : > { %7500 = vmatpush3.xpose.msk.msra.mxu0 %vm4488_vm3, %v11318_v46 }
 0x4e5   : > { %7501 = vmatprep.subr.msk.mxu0 %vm4488_vm3, %v11322_v31  ;;  %7468 = vmatpush3.xpose.msk.msra.mxu1 %vm4488_vm3, %v11326_v49 }
 0x4e6   : > { %7469 = vmatprep.subr.msk.mxu1 %vm4488_vm3, %v11330_v24 }
 0x4e8   : > { %7502 = vmatpush3.xpose.msk.msra.mxu0 %vm4488_vm3, %v11334_v26 }
 0x4e9   : > { %7503 = vmatprep.subr.msk.mxu0 %vm4488_vm3, %v11338_v48  ;;  %7470 = vmatpush3.xpose.msk.msra.mxu1 %vm4488_vm3, %v11342_v47  ;;  %v11426_v47 = vld [vmem:[#allocation3 + $0x16a] sm:$0xff] }
 0x4ea   : > { %7471 = vmatprep.subr.msk.mxu1 %vm4488_vm3, %v11346_v1  ;;  %v11422_v1 = vld [vmem:[%s12019_s5 + $0x18] sm:$0xff] }
 0x4ec   : > { %7504 = vmatpush3.xpose.msk.msra.mxu0 %vm4488_vm3, %v11350_v17 }
 0x4ed   : > { %7505 = vmatprep.subr.msk.mxu0 %vm4488_vm3, %v11354_v62  ;;  %7472 = vmatpush3.xpose.msk.msra.mxu1 %vm4488_vm3, %v11358_v30  ;;  %v11401_v30 = vld [vmem:[#allocation3 + $0x172] sm:$0xff] }
 0x4ee   : > { %7473 = vmatprep.subr.msk.mxu1 %vm4488_vm3, %v11362_v50  ;;  %v4577_v50 = vld [vmem:[#allocation3] sm:$0xff] }
 0x4f0   : > { %7506 = vmatpush3.xpose.msk.msra.mxu0 %vm4488_vm3, %v11366_v19 }
 0x4f1   : > { %7507 = vmatprep.subr.msk.mxu0 %vm4488_vm3, %v11370_v21  ;;  %7474 = vmatpush3.xpose.msk.msra.mxu1 %vm4488_vm3, %v11374_v2  ;;  %v11396_v2 = vld [vmem:[#allocation3 + $0xc0] sm:$0xff] }
 0x4f2   : > { %7475 = vmatprep.subr.msk.mxu1 %vm4488_vm3, %v11378_v14  ;;  %12319 = vst [vmem:[#allocation29_spill] sm:$0xff] %v11396_v2 }
 0x4f4   : > { %7508 = vmatpush3.xpose.msk.msra.mxu0 %vm4488_vm3, %v11382_v34 }
 0x4f5   : > { %7509 = vmatprep.subr.msk.mxu0 %vm4488_vm3, %v11386_v3  ;;  %7476 = vmatpush3.xpose.msk.msra.mxu1 %vm4488_vm3, %v4611_v9  ;;  %v11408_v9 = vld [vmem:[%s12019_s5 + $0x10] sm:$0xff] }
 0x4f6   : > { %7477 = vmatprep.subr.msk.mxu1 %vm4488_vm3, %v11391_v32 }
 0x4f8   : > { %7510 = vmatpush3.xpose.msk.msra.mxu0 %vm4488_vm3, %v4578_v23  ;;  %v11411_v23 = vld [vmem:[#allocation3 + $0x188] sm:$0xff] }
 0x4f9   : > { %7511 = vmatprep.subr.msk.mxu0 %vm4488_vm3, %v11396_v2  ;;  %7478 = vmatpush3.xpose.msk.msra.mxu1 %vm4488_vm3, %v4610_v57  ;;  %12320 = vst [vmem:[#allocation9_spill] sm:$0xff] %v11411_v23  ;;  %v11417_v57 = vld [vmem:[#allocation3 + $0xb2] sm:$0xff] }
 0x4fa   : > { %7515 = vmatprep.subr.msk.mxu1 %vm4488_vm3, %v11401_v30 }
 0x4fc   : > { %7512 = vmatpush3.xpose.msk.msra.mxu0 %vm4488_vm3, %v4577_v50  ;;  %7480 = vmatmul.mubr.msk.f32.vlgmr.msra.gmra.mxu1 %vm4488_vm3, %v11026_v54  ;;  %v11436_v54 = vld [vmem:[#allocation3 + $0x180] sm:$0xff]  ;;  %v11442_v50 = vld [vmem:[#allocation3 + $0xaa] sm:$0xff] }
 0x4fd   : > { %7549 = vmatprep.subr.msk.mxu0 %vm4488_vm3, %v11411_v23  ;;  %7516 = vmatpush3.xpose.msk.msra.mxu1 %vm4488_vm3, %v11417_v57  ;;  %12321 = vst [vmem:[#allocation39_spill] sm:$0xff] %v11436_v54  ;;  %v4985_v23 = vld [vmem:[#allocation3 + $0xa] sm:$0xff] }
 0x4fe   : > { %7547 = vmatprep.mubr.msk.f32.mxu1 %vm4488_vm3, %v11408_v9  ;;  %7517 = vmatprep.subr.msk.mxu1 %vm4488_vm3, %v11426_v47 }
 0x4ff   : > { %7514 = vmatmul.mubr.msk.f32.vlgmr.msra.gmra.mxu0 %vm4488_vm3, %v11040_v12  ;;  %v11446_v12 = vld [vmem:[#allocation3 + $0x15a] sm:$0xff] }
 0x500   : > { %7550 = vmatpush3.xpose.msk.msra.mxu0 %vm4488_vm3, %v11386_v3  ;;  %7581 = vmatprep.mubr.msk.f32.mxu0 %vm4488_vm3, %v11422_v1  ;;  %v11454_v3 = vld [vmem:[#allocation3 + $0x9a] sm:$0xff] }
 0x501   : > { %7551 = vmatprep.subr.msk.mxu0 %vm4488_vm3, %v11436_v54  ;;  %7518 = vmatpush3.xpose.msk.msra.mxu1 %vm4488_vm3, %v11442_v50  ;;  %v11458_v54 = vld [vmem:[#allocation3 + $0x152] sm:$0xff] }
 0x502   : > { %7519 = vmatprep.subr.msk.mxu1 %vm4488_vm3, %v11446_v12 }
 0x504   : > { %7552 = vmatpush3.xpose.msk.msra.mxu0 %vm4488_vm3, %v11396_v2  ;;  %v11466_v2 = vld [vmem:[#allocation3 + $0x92] sm:$0xff] }
 0x505   : > { %7553 = vmatprep.subr.msk.mxu0 %vm4488_vm3, %v11168_v25  ;;  %7520 = vmatpush3.xpose.msk.msra.mxu1 %vm4488_vm3, %v11454_v3  ;;  %v11470_v25 = vld [vmem:[#allocation3 + $0x142] sm:$0xff] }
 0x506   : > { %7521 = vmatprep.subr.msk.mxu1 %vm4488_vm3, %v11458_v54 }
 0x508   : > { %7554 = vmatpush3.xpose.msk.msra.mxu0 %vm4488_vm3, %v11174_v63  ;;  %v11478_v63 = vld [vmem:[#allocation3 + $0x82] sm:$0xff] }
 0x509   : > { %7555 = vmatprep.subr.msk.mxu0 %vm4488_vm3, %v11178_v51  ;;  %7522 = vmatpush3.xpose.msk.msra.mxu1 %vm4488_vm3, %v11466_v2  ;;  %v11482_v51 = vld [vmem:[#allocation3 + $0x13a] sm:$0xff] }
 0x50a   : > { %7523 = vmatprep.subr.msk.mxu1 %vm4488_vm3, %v11470_v25 }
 0x50c   : > { %7556 = vmatpush3.xpose.msk.msra.mxu0 %vm4488_vm3, %v11190_v10  ;;  %v11490_v10 = vld [vmem:[#allocation3 + $0x7a] sm:$0xff] }
 0x50d   : > { %7557 = vmatprep.subr.msk.mxu0 %vm4488_vm3, %v11194_v5  ;;  %7524 = vmatpush3.xpose.msk.msra.mxu1 %vm4488_vm3, %v11478_v63  ;;  %v11494_v5 = vld [vmem:[#allocation3 + $0x12a] sm:$0xff] }
 0x50e   : > { %7525 = vmatprep.subr.msk.mxu1 %vm4488_vm3, %v11482_v51 }
 0x510   : > { %7558 = vmatpush3.xpose.msk.msra.mxu0 %vm4488_vm3, %v11206_v11  ;;  %v11502_v11 = vld [vmem:[#allocation3 + $0x6a] sm:$0xff] }
 0x511   : > { %7559 = vmatprep.subr.msk.mxu0 %vm4488_vm3, %v11210_v52  ;;  %7526 = vmatpush3.xpose.msk.msra.mxu1 %vm4488_vm3, %v11490_v10  ;;  %v11506_v52 = vld [vmem:[#allocation3 + $0x122] sm:$0xff] }
 0x512   : > { %7527 = vmatprep.subr.msk.mxu1 %vm4488_vm3, %v11494_v5 }
 0x514   : > { %7560 = vmatpush3.xpose.msk.msra.mxu0 %vm4488_vm3, %v11222_v58  ;;  %v11514_v58 = vld [vmem:[#allocation3 + $0x62] sm:$0xff] }
 0x515   : > { %7561 = vmatprep.subr.msk.mxu0 %vm4488_vm3, %v11226_v7  ;;  %7528 = vmatpush3.xpose.msk.msra.mxu1 %vm4488_vm3, %v11502_v11  ;;  %v11518_v7 = vld [vmem:[#allocation3 + $0x112] sm:$0xff] }
 0x516   : > { %7529 = vmatprep.subr.msk.mxu1 %vm4488_vm3, %v11506_v52 }
 0x518   : > { %7562 = vmatpush3.xpose.msk.msra.mxu0 %vm4488_vm3, %v11238_v13  ;;  %v11526_v13 = vld [vmem:[#allocation3 + $0x52] sm:$0xff] }
 0x519   : > { %7563 = vmatprep.subr.msk.mxu0 %vm4488_vm3, %v11242_v37  ;;  %7530 = vmatpush3.xpose.msk.msra.mxu1 %vm4488_vm3, %v11514_v58  ;;  %v11530_v37 = vld [vmem:[#allocation3 + $0x10a] sm:$0xff] }
 0x51a   : > { %7531 = vmatprep.subr.msk.mxu1 %vm4488_vm3, %v11518_v7  ;;  %12322 = vst [vmem:[#allocation42_spill] sm:$0xff] %v11530_v37 }
 0x51c   : > { %7564 = vmatpush3.xpose.msk.msra.mxu0 %vm4488_vm3, %v11254_v53  ;;  %v11538_v53 = vld [vmem:[#allocation3 + $0x4a] sm:$0xff] }
 0x51d   : > { %7565 = vmatprep.subr.msk.mxu0 %vm4488_vm3, %v11258_v8  ;;  %7532 = vmatpush3.xpose.msk.msra.mxu1 %vm4488_vm3, %v11526_v13  ;;  %12323 = vst [vmem:[#allocation43_spill] sm:$0xff] %v11538_v53  ;;  %v11542_v8 = vld [vmem:[#allocation3 + $0xfa] sm:$0xff] }
 0x51e   : > { %7533 = vmatprep.subr.msk.mxu1 %vm4488_vm3, %v11530_v37  ;;  %12324 = vst [vmem:[#allocation45_spill] sm:$0xff] %v11542_v8 }
 0x520   : > { %7566 = vmatpush3.xpose.msk.msra.mxu0 %vm4488_vm3, %v11270_v38  ;;  %v11550_v38 = vld [vmem:[#allocation3 + $0x3a] sm:$0xff] }
 0x521   : > { %7567 = vmatprep.subr.msk.mxu0 %vm4488_vm3, %v11274_v35  ;;  %7534 = vmatpush3.xpose.msk.msra.mxu1 %vm4488_vm3, %v11538_v53  ;;  %12325 = vst [vmem:[#allocation48_spill] sm:$0xff] %v11550_v38  ;;  %v11554_v35 = vld [vmem:[#allocation3 + $0xf2] sm:$0xff] }
 0x522   : > { %7535 = vmatprep.subr.msk.mxu1 %vm4488_vm3, %v11542_v8  ;;  %12326 = vst [vmem:[#allocation44_spill] sm:$0xff] %v11554_v35 }
 0x524   : > { %7568 = vmatpush3.xpose.msk.msra.mxu0 %vm4488_vm3, %v11286_v33  ;;  %v11562_v33 = vld [vmem:[#allocation3 + $0x32] sm:$0xff] }
 0x525   : > { %7569 = vmatprep.subr.msk.mxu0 %vm4488_vm3, %v11290_v39  ;;  %7536 = vmatpush3.xpose.msk.msra.mxu1 %vm4488_vm3, %v11550_v38  ;;  %12327 = vst [vmem:[#allocation46_spill] sm:$0xff] %v11562_v33  ;;  %v11566_v39 = vld [vmem:[#allocation3 + $0xe2] sm:$0xff] }
 0x526   : > { %7537 = vmatprep.subr.msk.mxu1 %vm4488_vm3, %v11554_v35 }
 0x528   : > { %7570 = vmatpush3.xpose.msk.msra.mxu0 %vm4488_vm3, %v11302_v45  ;;  %v11574_v45 = vld [vmem:[#allocation3 + $0x22] sm:$0xff] }
 0x529   : > { %7571 = vmatprep.subr.msk.mxu0 %vm4488_vm3, %v11306_v22  ;;  %7538 = vmatpush3.xpose.msk.msra.mxu1 %vm4488_vm3, %v11562_v33  ;;  %v11578_v22 = vld [vmem:[#allocation3 + $0xda] sm:$0xff] }
 0x52a   : > { %7539 = vmatprep.subr.msk.mxu1 %vm4488_vm3, %v11566_v39 }
 0x52c   : > { %7572 = vmatpush3.xpose.msk.msra.mxu0 %vm4488_vm3, %v11318_v46  ;;  %v11586_v46 = vld [vmem:[#allocation3 + $0x1a] sm:$0xff] }
 0x52d   : > { %7573 = vmatprep.subr.msk.mxu0 %vm4488_vm3, %v11322_v31  ;;  %7540 = vmatpush3.xpose.msk.msra.mxu1 %vm4488_vm3, %v11574_v45  ;;  %v11590_v31 = vld [vmem:[#allocation3 + $0xca] sm:$0xff] }
 0x52e   : > { %7541 = vmatprep.subr.msk.mxu1 %vm4488_vm3, %v11578_v22 }
 0x530   : > { %7574 = vmatpush3.xpose.msk.msra.mxu0 %vm4488_vm3, %v11334_v26  ;;  %v4984_v26 = vld [vmem:[#allocation3 + $0x2] sm:$0xff] }
 0x531   : > { %7575 = vmatprep.subr.msk.mxu0 %vm4488_vm3, %v11338_v48  ;;  %7542 = vmatpush3.xpose.msk.msra.mxu1 %vm4488_vm3, %v11586_v46  ;;  %v11599_v48 = vld [vmem:[#allocation3 + $0xc2] sm:$0xff] }
 0x532   : > { %7543 = vmatprep.subr.msk.mxu1 %vm4488_vm3, %v11590_v31 }
 0x534   : > { %7576 = vmatpush3.xpose.msk.msra.mxu0 %vm4488_vm3, %v11350_v17  ;;  %v11608_v17 = vld [vmem:[#allocation3 + $0x189] sm:$0xff] }
 0x535   : > { %7577 = vmatprep.subr.msk.mxu0 %vm4488_vm3, %v11354_v62  ;;  %7544 = vmatpush3.xpose.msk.msra.mxu1 %vm4488_vm3, %v4985_v23  ;;  %v11615_v23 = vld [vmem:[%s12019_s5 + $0x20] sm:$0xff] }
 0x536   : > { %7545 = vmatprep.subr.msk.mxu1 %vm4488_vm3, %v11599_v48  ;;  %v11619_v62 = vld [vmem:[#allocation3 + $0x18a] sm:$0xff] }
 0x538   : > { %7578 = vmatpush3.xpose.msk.msra.mxu0 %vm4488_vm3, %v11366_v19  ;;  %v11632_v19 = vld [vmem:[#allocation3 + $0x181] sm:$0xff] }
 0x539   : > { %7579 = vmatprep.subr.msk.mxu0 %vm4488_vm3, %v11370_v21  ;;  %7546 = vmatpush3.xpose.msk.msra.mxu1 %vm4488_vm3, %v4984_v26  ;;  %v11628_v26 = vld [vmem:[%s12019_s5 + $0x28] sm:$0xff] }
 0x53a   : > { %7583 = vmatprep.subr.msk.mxu1 %vm4488_vm3, %v11608_v17 }
 0x53c   : > { %7580 = vmatpush3.xpose.msk.msra.mxu0 %vm4488_vm3, %v11382_v34  ;;  %7548 = vmatmul.mubr.msk.f32.vlgmr.msra.gmra.mxu1 %vm4488_vm3, %v11408_v9  ;;  %v11642_v34 = vld [vmem:[#allocation3 + $0x182] sm:$0xff] }
 0x53d   : > { %7617 = vmatprep.subr.msk.mxu0 %vm4488_vm3, %v11619_v62  ;;  %7584 = vmatpush3.xpose.msk.msra.mxu1 %vm4488_vm3, %v11378_v14  ;;  %v12329_v9 = vld [vmem:[#allocation38_spill] sm:$0xff] }
 0x53e   : > { %7615 = vmatprep.mubr.msk.f32.mxu1 %vm4488_vm3, %v11615_v23  ;;  %7585 = vmatprep.subr.msk.mxu1 %vm4488_vm3, %v11632_v19 }
 0x53f   : > { %7582 = vmatmul.mubr.msk.f32.vlgmr.msra.gmra.mxu0 %vm4488_vm3, %v11422_v1  ;;  %v12328_v1 = vld [vmem:[#allocation37_spill] sm:$0xff] }
 0x540   : > { %7618 = vmatpush3.xpose.msk.msra.mxu0 %vm4488_vm3, %v11590_v31  ;;  %7649 = vmatprep.mubr.msk.f32.mxu0 %vm4488_vm3, %v11628_v26 }
 0x541   : > { %7619 = vmatprep.subr.msk.mxu0 %vm4488_vm3, %v11642_v34  ;;  %7586 = vmatpush3.xpose.msk.msra.mxu1 %vm4488_vm3, %v11391_v32 }
 0x542   : > { %7587 = vmatprep.subr.msk.mxu1 %vm4488_vm3, %v11158_v0 }
 0x544   : > { %7620 = vmatpush3.xpose.msk.msra.mxu0 %vm4488_vm3, %v11599_v48 }
 0x545   : > { %7621 = vmatprep.subr.msk.mxu0 %vm4488_vm3, %v11401_v30  ;;  %7588 = vmatpush3.xpose.msk.msra.mxu1 %vm4488_vm3, %v11162_v27 }
 0x546   : > { %7589 = vmatprep.subr.msk.mxu1 %vm4488_vm3, %v11166_v43 }
 0x548   : > { %7622 = vmatpush3.xpose.msk.msra.mxu0 %vm4488_vm3, %v11417_v57 }
 0x549   : > { %7623 = vmatprep.subr.msk.mxu0 %vm4488_vm3, %v11426_v47  ;;  %7590 = vmatpush3.xpose.msk.msra.mxu1 %vm4488_vm3, %v11182_v59 }
 0x54a   : > { %7591 = vmatprep.subr.msk.mxu1 %vm4488_vm3, %v11186_v61 }
 0x54c   : > { %7624 = vmatpush3.xpose.msk.msra.mxu0 %vm4488_vm3, %v11442_v50 }
 0x54d   : > { %7625 = vmatprep.subr.msk.mxu0 %vm4488_vm3, %v11446_v12  ;;  %7592 = vmatpush3.xpose.msk.msra.mxu1 %vm4488_vm3, %v11198_v15 }
 0x54e   : > { %7593 = vmatprep.subr.msk.mxu1 %vm4488_vm3, %v11202_v28 }
 0x550   : > { %7626 = vmatpush3.xpose.msk.msra.mxu0 %vm4488_vm3, %v11454_v3 }
 0x551   : > { %7627 = vmatprep.subr.msk.mxu0 %vm4488_vm3, %v11458_v54  ;;  %7594 = vmatpush3.xpose.msk.msra.mxu1 %vm4488_vm3, %v11214_v60 }
 0x552   : > { %7595 = vmatprep.subr.msk.mxu1 %vm4488_vm3, %v11218_v56 }
 0x554   : > { %7628 = vmatpush3.xpose.msk.msra.mxu0 %vm4488_vm3, %v11466_v2 }
 0x555   : > { %7629 = vmatprep.subr.msk.mxu0 %vm4488_vm3, %v11470_v25  ;;  %7596 = vmatpush3.xpose.msk.msra.mxu1 %vm4488_vm3, %v11230_v44 }
 0x556   : > { %7597 = vmatprep.subr.msk.mxu1 %vm4488_vm3, %v11234_v16 }
 0x558   : > { %7630 = vmatpush3.xpose.msk.msra.mxu0 %vm4488_vm3, %v11478_v63 }
 0x559   : > { %7631 = vmatprep.subr.msk.mxu0 %vm4488_vm3, %v11482_v51  ;;  %7598 = vmatpush3.xpose.msk.msra.mxu1 %vm4488_vm3, %v11246_v41 }
 0x55a   : > { %7599 = vmatprep.subr.msk.mxu1 %vm4488_vm3, %v11250_v36 }
 0x55c   : > { %7632 = vmatpush3.xpose.msk.msra.mxu0 %vm4488_vm3, %v11490_v10 }
 0x55d   : > { %7633 = vmatprep.subr.msk.mxu0 %vm4488_vm3, %v11494_v5  ;;  %7600 = vmatpush3.xpose.msk.msra.mxu1 %vm4488_vm3, %v11262_v4 }
 0x55e   : > { %7601 = vmatprep.subr.msk.mxu1 %vm4488_vm3, %v11266_v6 }
 0x560   : > { %7634 = vmatpush3.xpose.msk.msra.mxu0 %vm4488_vm3, %v11502_v11 }
 0x561   : > { %7635 = vmatprep.subr.msk.mxu0 %vm4488_vm3, %v11506_v52  ;;  %7602 = vmatpush3.xpose.msk.msra.mxu1 %vm4488_vm3, %v11278_v20 }
 0x562   : > { %7603 = vmatprep.subr.msk.mxu1 %vm4488_vm3, %v11282_v29 }
 0x564   : > { %7636 = vmatpush3.xpose.msk.msra.mxu0 %vm4488_vm3, %v11514_v58 }
 0x565   : > { %7637 = vmatprep.subr.msk.mxu0 %vm4488_vm3, %v11518_v7  ;;  %7604 = vmatpush3.xpose.msk.msra.mxu1 %vm4488_vm3, %v11294_v40 }
 0x566   : > { %7605 = vmatprep.subr.msk.mxu1 %vm4488_vm3, %v11298_v55 }
 0x568   : > { %7638 = vmatpush3.xpose.msk.msra.mxu0 %vm4488_vm3, %v11526_v13 }
 0x569   : > { %7639 = vmatprep.subr.msk.mxu0 %vm4488_vm3, %v11530_v37  ;;  %7606 = vmatpush3.xpose.msk.msra.mxu1 %vm4488_vm3, %v11310_v18  ;;  %v5839_v37 = vld [vmem:[#allocation3 + $0x198] sm:$0xff] }
 0x56a   : > { %7607 = vmatprep.subr.msk.mxu1 %vm4488_vm3, %v11314_v42 }
 0x56c   : > { %7640 = vmatpush3.xpose.msk.msra.mxu0 %vm4488_vm3, %v11538_v53  ;;  %v12331_v53 = vld [vmem:[#allocation8_spill] sm:$0xff] }
 0x56d   : > { %7641 = vmatprep.subr.msk.mxu0 %vm4488_vm3, %v11542_v8  ;;  %7608 = vmatpush3.xpose.msk.msra.mxu1 %vm4488_vm3, %v11326_v49  ;;  %v12330_v8 = vld [vmem:[#allocation36_spill] sm:$0xff] }
 0x56e   : > { %7609 = vmatprep.subr.msk.mxu1 %vm4488_vm3, %v11330_v24 }
 0x570   : > { %7642 = vmatpush3.xpose.msk.msra.mxu0 %vm4488_vm3, %v11550_v38  ;;  %v12332_v38 = vld [vmem:[#allocation40_spill] sm:$0xff] }
 0x571   : > { %7643 = vmatprep.subr.msk.mxu0 %vm4488_vm3, %v11554_v35  ;;  %7610 = vmatpush3.xpose.msk.msra.mxu1 %vm4488_vm3, %v12328_v1  ;;  %v5840_v35 = vld [vmem:[#allocation3 + $0x1a0] sm:$0xff] }
 0x572   : > { %7611 = vmatprep.subr.msk.mxu1 %vm4488_vm3, %v12329_v9 }
 0x574   : > { %7644 = vmatpush3.xpose.msk.msra.mxu0 %vm4488_vm3, %v11562_v33  ;;  %v6046_v33 = vld [vmem:[#allocation3 + $0x1a1] sm:$0xff] }
 0x575   : > { %7645 = vmatprep.subr.msk.mxu0 %vm4488_vm3, %v11566_v39  ;;  %7612 = vmatpush3.xpose.msk.msra.mxu1 %vm4488_vm3, %v12330_v8  ;;  %v11766_v8 = vld [vmem:[%s12019_s5 + $0x30] sm:$0xff] }
 0x576   : > { %7613 = vmatprep.subr.msk.mxu1 %vm4488_vm3, %v12331_v53 }
 0x578   : > { %7646 = vmatpush3.xpose.msk.msra.mxu0 %vm4488_vm3, %v11574_v45  ;;  %v6045_v45 = vld [vmem:[#allocation3 + $0x199] sm:$0xff] }
 0x579   : > { %7647 = vmatprep.subr.msk.mxu0 %vm4488_vm3, %v11578_v22  ;;  %7614 = vmatpush3.xpose.msk.msra.mxu1 %vm4488_vm3, %v12332_v38  ;;  %v11776_v38 = vld [vmem:[%s12019_s5 + $0x38] sm:$0xff] }
 0x57a   : > { %7651 = vmatprep.subr.msk.mxu1 %vm4488_vm3, %v5840_v35  ;;  %v12333_v35 = vld [vmem:[#allocation34_spill] sm:$0xff] }
 0x57c   : > { %7648 = vmatpush3.xpose.msk.msra.mxu0 %vm4488_vm3, %v11586_v46  ;;  %7616 = vmatmul.mubr.msk.f32.vlgmr.msra.gmra.mxu1 %vm4488_vm3, %v11615_v23  ;;  %v12336_v46 = vld [vmem:[#allocation39_spill] sm:$0xff] }
 0x57d   : > { %7685 = vmatprep.subr.msk.mxu0 %vm4488_vm3, %v6046_v33  ;;  %7652 = vmatpush3.xpose.msk.msra.mxu1 %vm4488_vm3, %v12333_v35  ;;  %v12334_v33 = vld [vmem:[#allocation9_spill] sm:$0xff]  ;;  %v12338_v23 = vld [vmem:[#allocation11_spill] sm:$0xff] }
 0x57e   : > { %7683 = vmatprep.mubr.msk.f32.mxu1 %vm4488_vm3, %v11766_v8  ;;  %7653 = vmatprep.subr.msk.mxu1 %vm4488_vm3, %v5839_v37  ;;  %v12335_v37 = vld [vmem:[#allocation41_spill] sm:$0xff] }
 0x57f   : > { %7650 = vmatmul.mubr.msk.f32.vlgmr.msra.gmra.mxu0 %vm4488_vm3, %v11628_v26  ;;  %v12342_v26 = vld [vmem:[#allocation15_spill] sm:$0xff] }
 0x580   : > { %7686 = vmatpush3.xpose.msk.msra.mxu0 %vm4488_vm3, %v12329_v9  ;;  %7717 = vmatprep.mubr.msk.f32.mxu0 %vm4488_vm3, %v11776_v38 }
 0x581   : > { %7687 = vmatprep.subr.msk.mxu0 %vm4488_vm3, %v6045_v45  ;;  %7654 = vmatpush3.xpose.msk.msra.mxu1 %vm4488_vm3, %v11370_v21  ;;  %v12337_v21 = vld [vmem:[#allocation29_spill] sm:$0xff] }
 0x582   : > { %7655 = vmatprep.subr.msk.mxu1 %vm4488_vm3, %v12334_v33 }
 0x584   : > { %7688 = vmatpush3.xpose.msk.msra.mxu0 %vm4488_vm3, %v12331_v53  ;;  %v12339_v53 = vld [vmem:[#allocation12_spill] sm:$0xff] }
 0x585   : > { %7689 = vmatprep.subr.msk.mxu0 %vm4488_vm3, %v11608_v17  ;;  %7656 = vmatpush3.xpose.msk.msra.mxu1 %vm4488_vm3, %v12335_v37  ;;  %v12340_v17 = vld [vmem:[#allocation13_spill] sm:$0xff] }
 0x586   : > { %7657 = vmatprep.subr.msk.mxu1 %vm4488_vm3, %v12336_v46 }
 0x588   : > { %7690 = vmatpush3.xpose.msk.msra.mxu0 %vm4488_vm3, %v11378_v14  ;;  %v12341_v14 = vld [vmem:[#allocation14_spill] sm:$0xff] }
 0x589   : > { %7691 = vmatprep.subr.msk.mxu0 %vm4488_vm3, %v11632_v19  ;;  %7658 = vmatpush3.xpose.msk.msra.mxu1 %vm4488_vm3, %v12337_v21 }
 0x58a   : > { %7659 = vmatprep.subr.msk.mxu1 %vm4488_vm3, %v12338_v23 }
 0x58c   : > { %7692 = vmatpush3.xpose.msk.msra.mxu0 %vm4488_vm3, %v11391_v32  ;;  %v12344_v32 = vld [vmem:[#allocation16_spill] sm:$0xff] }
 0x58d   : > { %7693 = vmatprep.subr.msk.mxu0 %vm4488_vm3, %v11158_v0  ;;  %7660 = vmatpush3.xpose.msk.msra.mxu1 %vm4488_vm3, %v12339_v53  ;;  %v12343_v0 = vld [vmem:[#allocation17_spill] sm:$0xff] }
 0x58e   : > { %7661 = vmatprep.subr.msk.mxu1 %vm4488_vm3, %v12340_v17 }
 0x590   : > { %7694 = vmatpush3.xpose.msk.msra.mxu0 %vm4488_vm3, %v11162_v27  ;;  %v12345_v27 = vld [vmem:[#allocation18_spill] sm:$0xff] }
 0x591   : > { %7695 = vmatprep.subr.msk.mxu0 %vm4488_vm3, %v11166_v43  ;;  %7662 = vmatpush3.xpose.msk.msra.mxu1 %vm4488_vm3, %v12341_v14  ;;  %v12346_v43 = vld [vmem:[#allocation23_spill] sm:$0xff] }
 0x592   : > { %7663 = vmatprep.subr.msk.mxu1 %vm4488_vm3, %v12342_v26 }
 0x594   : > { %7696 = vmatpush3.xpose.msk.msra.mxu0 %vm4488_vm3, %v11182_v59  ;;  %v12347_v59 = vld [vmem:[#allocation28_spill] sm:$0xff] }
 0x595   : > { %7697 = vmatprep.subr.msk.mxu0 %vm4488_vm3, %v11186_v61  ;;  %7664 = vmatpush3.xpose.msk.msra.mxu1 %vm4488_vm3, %v12343_v0  ;;  %v12348_v61 = vld [vmem:[#allocation32_spill] sm:$0xff] }
 0x596   : > { %7665 = vmatprep.subr.msk.mxu1 %vm4488_vm3, %v12344_v32 }
 0x598   : > { %7698 = vmatpush3.xpose.msk.msra.mxu0 %vm4488_vm3, %v11198_v15  ;;  %v12349_v15 = vld [vmem:[#allocation24_spill] sm:$0xff] }
 0x599   : > { %7699 = vmatprep.subr.msk.mxu0 %vm4488_vm3, %v11202_v28  ;;  %7666 = vmatpush3.xpose.msk.msra.mxu1 %vm4488_vm3, %v12345_v27  ;;  %v12350_v28 = vld [vmem:[#allocation20_spill] sm:$0xff] }
 0x59a   : > { %7667 = vmatprep.subr.msk.mxu1 %vm4488_vm3, %v12346_v43 }
 0x59c   : > { %7700 = vmatpush3.xpose.msk.msra.mxu0 %vm4488_vm3, %v11214_v60  ;;  %v12351_v60 = vld [vmem:[#allocation19_spill] sm:$0xff] }
 0x59d   : > { %7701 = vmatprep.subr.msk.mxu0 %vm4488_vm3, %v11218_v56  ;;  %7668 = vmatpush3.xpose.msk.msra.mxu1 %vm4488_vm3, %v12347_v59  ;;  %v12352_v56 = vld [vmem:[#allocation22_spill] sm:$0xff] }
 0x59e   : > { %7669 = vmatprep.subr.msk.mxu1 %vm4488_vm3, %v12348_v61 }
 0x5a0   : > { %7702 = vmatpush3.xpose.msk.msra.mxu0 %vm4488_vm3, %v11230_v44  ;;  %v12353_v44 = vld [vmem:[#allocation21_spill] sm:$0xff] }
 0x5a1   : > { %7703 = vmatprep.subr.msk.mxu0 %vm4488_vm3, %v11234_v16  ;;  %7670 = vmatpush3.xpose.msk.msra.mxu1 %vm4488_vm3, %v12349_v15  ;;  %v12354_v16 = vld [vmem:[#allocation7_spill] sm:$0xff] }
 0x5a2   : > { %7671 = vmatprep.subr.msk.mxu1 %vm4488_vm3, %v12350_v28 }
 0x5a4   : > { %7704 = vmatpush3.xpose.msk.msra.mxu0 %vm4488_vm3, %v11246_v41  ;;  %v12355_v41 = vld [vmem:[#allocation35_spill] sm:$0xff] }
 0x5a5   : > { %7705 = vmatprep.subr.msk.mxu0 %vm4488_vm3, %v11250_v36  ;;  %7672 = vmatpush3.xpose.msk.msra.mxu1 %vm4488_vm3, %v12351_v60  ;;  %v12356_v36 = vld [vmem:[#allocation25_spill] sm:$0xff] }
 0x5a6   : > { %7673 = vmatprep.subr.msk.mxu1 %vm4488_vm3, %v12352_v56 }
 0x5a8   : > { %7706 = vmatpush3.xpose.msk.msra.mxu0 %vm4488_vm3, %v11262_v4  ;;  %v12357_v4 = vld [vmem:[#allocation26_spill] sm:$0xff] }
 0x5a9   : > { %7707 = vmatprep.subr.msk.mxu0 %vm4488_vm3, %v11266_v6  ;;  %7674 = vmatpush3.xpose.msk.msra.mxu1 %vm4488_vm3, %v12353_v44  ;;  %v12358_v6 = vld [vmem:[#allocation33_spill] sm:$0xff] }
 0x5aa   : > { %7675 = vmatprep.subr.msk.mxu1 %vm4488_vm3, %v12354_v16 }
 0x5ac   : > { %7708 = vmatpush3.xpose.msk.msra.mxu0 %vm4488_vm3, %v11278_v20  ;;  %v12359_v20 = vld [vmem:[#allocation27_spill] sm:$0xff] }
 0x5ad   : > { %7709 = vmatprep.subr.msk.mxu0 %vm4488_vm3, %v11282_v29  ;;  %7676 = vmatpush3.xpose.msk.msra.mxu1 %vm4488_vm3, %v12355_v41  ;;  %v12360_v29 = vld [vmem:[#allocation31_spill] sm:$0xff] }
 0x5ae   : > { %7677 = vmatprep.subr.msk.mxu1 %vm4488_vm3, %v12356_v36 }
 0x5b0   : > { %7710 = vmatpush3.xpose.msk.msra.mxu0 %vm4488_vm3, %v11294_v40  ;;  %v6252_v40 = vld [vmem:[#allocation3 + $0x1a2] sm:$0xff] }
 0x5b1   : > { %7711 = vmatprep.subr.msk.mxu0 %vm4488_vm3, %v11298_v55  ;;  %7678 = vmatpush3.xpose.msk.msra.mxu1 %vm4488_vm3, %v12357_v4  ;;  %v12361_v55 = vld [vmem:[#allocation30_spill] sm:$0xff] }
 0x5b2   : > { %7679 = vmatprep.subr.msk.mxu1 %vm4488_vm3, %v12358_v6 }
 0x5b4   : > { %7712 = vmatpush3.xpose.msk.msra.mxu0 %vm4488_vm3, %v11310_v18  ;;  %v7109_v18 = vld [vmem:[%s12019_s5 + $0x40] sm:$0xff] }
 0x5b5   : > { %7713 = vmatprep.subr.msk.mxu0 %vm4488_vm3, %v11314_v42  ;;  %7680 = vmatpush3.xpose.msk.msra.mxu1 %vm4488_vm3, %v12359_v20  ;;  %v6251_v42 = vld [vmem:[#allocation3 + $0x19a] sm:$0xff] }
 0x5b6   : > { %7681 = vmatprep.subr.msk.mxu1 %vm4488_vm3, %v12360_v29 }
 0x5b8   : > { %7714 = vmatpush3.xpose.msk.msra.mxu0 %vm4488_vm3, %v11326_v49  ;;  %v6427_v49 = vld [vmem:[%s12020_s6] sm:$0xff] }
 0x5b9   : > { %7715 = vmatprep.subr.msk.mxu0 %vm4488_vm3, %v11330_v24  ;;  %7682 = vmatpush3.xpose.msk.msra.mxu1 %vm4488_vm3, %v12361_v55  ;;  %v8453_v24 = vmov 0  }
 0x5ba   : > { %7719 = vmatprep.subr.msk.mxu1 %vm4488_vm3, %v6252_v40  ;;  %8250 = vset.pattern.permute.xlu1 %v8453_v24 }
 0x5bb   : > { %6430 = vperm.xlu1 %8250, %v6427_v49   ;;  %8251 = vset.pattern.permute.xlu0 %v8453_v24 }
 0x5bc   : > { %7716 = vmatpush3.xpose.msk.msra.mxu0 %vm4488_vm3, %v12328_v1  ;;  %7684 = vmatmul.mubr.msk.f32.vlgmr.msra.gmra.mxu1 %vm4488_vm3, %v11766_v8 }
 0x5bd   : > { %7720 = vmatpush3.xpose.msk.msra.mxu1 %vm4488_vm3, %v11566_v39  ;;  %7751 = vmatprep.mubr.msk.f32.mxu1 %vm4488_vm3, %v7109_v18 }
 0x5be   : > { %7721 = vmatprep.subr.msk.mxu1 %vm4488_vm3, %v6251_v42 }
 0x5bf   : > { %7718 = vmatmul.mubr.msk.f32.vlgmr.msra.gmra.mxu0 %vm4488_vm3, %v11776_v38 }
 0x5c1   : > { %7722 = vmatpush3.xpose.msk.msra.mxu1 %vm4488_vm3, %v11578_v22 }
 0x5c2   : > { %7723 = vmatprep.subr.msk.mxu1 %vm4488_vm3, %v11619_v62 }
 0x5c5   : > { %7724 = vmatpush3.xpose.msk.msra.mxu1 %vm4488_vm3, %v11590_v31 }
 0x5c6   : > { %7725 = vmatprep.subr.msk.mxu1 %vm4488_vm3, %v11642_v34 }
 0x5c9   : > { %7726 = vmatpush3.xpose.msk.msra.mxu1 %vm4488_vm3, %v11599_v48 }
 0x5ca   : > { %7727 = vmatprep.subr.msk.mxu1 %vm4488_vm3, %v11401_v30 }
 0x5cd   : > { %7728 = vmatpush3.xpose.msk.msra.mxu1 %vm4488_vm3, %v11417_v57 }
 0x5ce   : > { %7729 = vmatprep.subr.msk.mxu1 %vm4488_vm3, %v11426_v47 }
 0x5d1   : > { %7730 = vmatpush3.xpose.msk.msra.mxu1 %vm4488_vm3, %v11442_v50 }
 0x5d2   : > { %7731 = vmatprep.subr.msk.mxu1 %vm4488_vm3, %v11446_v12 }
 0x5d5   : > { %7732 = vmatpush3.xpose.msk.msra.mxu1 %vm4488_vm3, %v11454_v3 }
 0x5d6   : > { %7733 = vmatprep.subr.msk.mxu1 %vm4488_vm3, %v11458_v54 }
 0x5d9   : > { %7734 = vmatpush3.xpose.msk.msra.mxu1 %vm4488_vm3, %v11466_v2 }
 0x5da   : > { %7735 = vmatprep.subr.msk.mxu1 %vm4488_vm3, %v11470_v25  ;;  %v12362_v25 = vld [vmem:[#allocation42_spill] sm:$0xff] }
 0x5dd   : > { %7736 = vmatpush3.xpose.msk.msra.mxu1 %vm4488_vm3, %v11478_v63  ;;  %v12363_v63 = vld [vmem:[#allocation43_spill] sm:$0xff] }
 0x5de   : > { %7737 = vmatprep.subr.msk.mxu1 %vm4488_vm3, %v11482_v51  ;;  %v12364_v51 = vld [vmem:[#allocation45_spill] sm:$0xff] }
 0x5e1   : > { %7738 = vmatpush3.xpose.msk.msra.mxu1 %vm4488_vm3, %v11490_v10  ;;  %v12365_v10 = vld [vmem:[#allocation48_spill] sm:$0xff] }
 0x5e2   : > { %7739 = vmatprep.subr.msk.mxu1 %vm4488_vm3, %v11494_v5  ;;  %v12366_v5 = vld [vmem:[#allocation44_spill] sm:$0xff] }
 0x5e5   : > { %7740 = vmatpush3.xpose.msk.msra.mxu1 %vm4488_vm3, %v11502_v11  ;;  %v12367_v11 = vld [vmem:[#allocation46_spill] sm:$0xff] }
 0x5e6   : > { %7741 = vmatprep.subr.msk.mxu1 %vm4488_vm3, %v11506_v52  ;;  %v4809_v52 = vpop.f32.mrf.mxu1 }
 0x5e9   : > { %7742 = vmatpush3.xpose.msk.msra.mxu1 %vm4488_vm3, %v11514_v58  ;;  %v4811_v58 = vpop.f32.mrf.mxu1 }
 0x5ea   : > { %7743 = vmatprep.subr.msk.mxu1 %vm4488_vm3, %v11518_v7  ;;  %v4979_v7 = vpop.f32.mrf.mxu0 }
 0x5eb   : > { %v4980_v22 = vadd.f32 %v4979_v7, %v4809_v52 }
 0x5ec   : > { %v4981_v39 = vpop.f32.mrf.mxu0 }
 0x5ed   : > { %7744 = vmatpush3.xpose.msk.msra.mxu1 %vm4488_vm3, %v11526_v13  ;;  %v4982_v47 = vadd.f32 %v4981_v39, %v4811_v58 }
 0x5ee   : > { %7745 = vmatprep.subr.msk.mxu1 %vm4488_vm3, %v12362_v25 }
 0x5f1   : > { %7746 = vmatpush3.xpose.msk.msra.mxu1 %vm4488_vm3, %v12363_v63 }
 0x5f2   : > { %7747 = vmatprep.subr.msk.mxu1 %vm4488_vm3, %v12364_v51 }
 0x5f5   : > { %7748 = vmatpush3.xpose.msk.msra.mxu1 %vm4488_vm3, %v12365_v10 }
 0x5f6   : > { %7749 = vmatprep.subr.msk.mxu1 %vm4488_vm3, %v12366_v5 }
 0x5f9   : > { %7750 = vmatpush3.xpose.msk.msra.mxu1 %vm4488_vm3, %v12367_v11 }
 0x5fc   : > { %7752 = vmatmul.mubr.msk.f32.vlgmr.msra.gmra.mxu1 %vm4488_vm3, %v7109_v18  ;;  %v5183_v13 = vpop.f32.mrf.mxu1 }
 0x5fd   : > { %v5188_v62 = vadd.f32 %v5183_v13, %v4980_v22 }
 0x5fe   : > { %v5185_v31 = vpop.f32.mrf.mxu1 }
 0x5ff   : > { %v5389_v48 = vpop.f32.mrf.mxu0  ;;  %v5189_v2 = vadd.f32 %v5185_v31, %v4982_v47 }
 0x600   : > { %v5394_v57 = vadd.f32 %v5389_v48, %v5188_v62 }
 0x601   : > { %v5391_v3 = vpop.f32.mrf.mxu0 }
 0x602   : > { %v5395_v12 = vadd.f32 %v5391_v3, %v5189_v2 }
 0x636   : > { %v6431_v53 = vpop.permute.xlu1 %6430 }
 0x63c   : > { %v5595_v30 = vpop.f32.mrf.mxu1 }
 0x63d   : > { %v5600_v19 = vadd.f32 %v5595_v30, %v5394_v57 }
 0x63e   : > { %v5597_v54 = vpop.f32.mrf.mxu1 }
 0x63f   : > { %v5801_v50 = vpop.f32.mrf.mxu0  ;;  %v5601_v1 = vadd.f32 %v5597_v54, %v5395_v12 }
 0x640   : > { %v5806_v8 = vadd.f32 %v5801_v50, %v5600_v19 }
 0x641   : > { %v5803_v9 = vpop.f32.mrf.mxu0 }
 0x642   : > { %v5807_v45 = vadd.f32 %v5803_v9, %v5601_v1 }
 0x67c   : > { %v6008_v34 = vpop.f32.mrf.mxu1 }
 0x67d   : > { %v6013_v33 = vadd.f32 %v6008_v34, %v5806_v8 }
 0x67e   : > { %v6010_v38 = vpop.f32.mrf.mxu1 }
 0x67f   : > { %v6214_v35 = vpop.f32.mrf.mxu0  ;;  %v6014_v37 = vadd.f32 %v6010_v38, %v5807_v45 }
 0x680   : > { %v6219_v21 = vadd.f32 %v6214_v35, %v6013_v33 }
 0x681   : > { %v6216_v46 = vpop.f32.mrf.mxu0 }
 0x682   : > { %v6220_v17 = vadd.f32 %v6216_v46, %v6014_v37 }
 0x6bc   : > { %v6420_v23 = vpop.f32.mrf.mxu1 }
 0x6bd   : > { %v6425_v14 = vadd.f32 %v6420_v23, %v6219_v21 }
 0x6be   : > { %v6422_v26 = vpop.f32.mrf.mxu1 }
 0x6bf   : > { %v6433_v0 = vadd.f32 %v6431_v53, %v6425_v14  ;;  %v6426_v32 = vadd.f32 %v6422_v26, %v6220_v17 }
 0x6c1   : > { %v6435_v27 = vsub.f32 0.0, %v6433_v0  ;;  %v6434_v43 = vadd.f32 %v6431_v53, %v6426_v32 }
 0x6c3   : > { %v6437_v59 = vmul.f32 1.442695, %v6435_v27  ;;  %v6436_v61 = vsub.f32 0.0, %v6434_v43 }
 0x6c5   : > { %8382 = vpow2.f32 %v6437_v59  ;;  %v6439_v15 = vmul.f32 1.442695, %v6436_v61 }
 0x6c7   : > { %8384 = vpow2.f32 %v6439_v15 }
 0x6d2   : > { %v8383_v28 = vpop.eup %8382 }
 0x6d3   : > { %v6441_v60 = vadd.f32 1.0, %v8383_v28 }
 0x6d4   : > { %v8385_v56 = vpop.eup %8384 }
 0x6d5   : > { %8386 = vrcp.f32 %v6441_v60  ;;  %v6442_v44 = vadd.f32 1.0, %v8385_v56 }
 0x6d7   : > { %8388 = vrcp.f32 %v6442_v44 }
 0x6e2   : > { %v8387_v16 = vpop.eup %8386 }
 0x6e3   : > { %v6447_v41 = vmul.f32 %v8387_v16, %v6433_v0 }
 0x6e4   : > { %v8389_v36 = vpop.eup %8388 }
 0x6e5   : > { %6449 = vst [vmem:[%s271_s13] sm:$0xff] %v6447_v41  ;;  %v6448_v4 = vmul.f32 %v8389_v36, %v6434_v43 }
 0x6e7   : > { %6450 = vst [vmem:[%s271_s13 + $0x8] sm:$0xff] %v6448_v4 }
 0x6e8   : > { %8403 = shalt.err (!%p8400_p3)
}
 0x6e9   : > { %s8404_s22 = scalar_lea.hbm %s6464_s17, 256  ;;  %s8408_s8 = scalar_lea.hbm %s12021_s7, 512 }
 0x6ea   : > { %p8405_p4 = scmp.ne.s32.totalorder %s6464_s17, %s8404_s22  ;;  %p8409_p9 = scmp.lt.s32.totalorder %s6464_s17, %s12021_s7 }
 0x6eb   : > { %p8410_p10 = scmp.lt.s32.totalorder %s8408_s8, %s8404_s22 }
 0x6ec   : > { %p8406_p7 = pnand %p8405_p4, %p8533_p5 }
 0x6ed   : > { %p8411_p11 = por %p8410_p10, %p8409_p9 }
 0x6ee   : > { %p8407_p8 = pneg %p8406_p7 }
 0x6f0   : > { %p8412_p12 = pnand %p8411_p11, %p8407_p8 }
 0x6f2   : > { %8415 = shalt.err (!%p8412_p12)
}
 0x6f3   : > { %8209 = dma.vmem_to_hbm [thread:$0]  (%p8533_p5), %s6467_s14, 256, %s6464_s17, %s6452_s18  }
 0x6f4 PF: > { %p8215_p13 = scmp.ge.s32.totalorder %s8450_s27, 2  ;;  %s6478_s15 = sand.u32 1, %s8438_s24  }
 0x6f5   : > { %s6479_s16 = scalar_lea.sflag [#allocation5], %s6478_s15 }
 0x6f6   : > { %p8212_p0 = pnand %p8215_p13, %p8537_p6 }
 0x6f8   : > { %p8213_p1 = pneg %p8212_p0 }
 0x6fa   : > { %8433 = dma.done.wait (%p8213_p1), %s6479_s16, 256  }
 0x6fb   : > { %8435 = vsyncadd (%p8213_p1), %s6479_s16, 4294967040  ;;  %p17_p2 = scmp.ge.s32.totalorder %s8520_s30, 4   ;;  %s12368_s24 = smov %s8442_s25 }
 0x6fc   : > { %s12369_s25 = smov %s8446_s26  ;;  %s12370_s26 = smov %s8531_s10 }
 0x6fd   : > { %s12371_s27 = smov %s8520_s30  ;;  %19 = sbr.rel (!%p17_p2) target bundleno = 3 (0x3), region = 103 }
 0x702   :  { %6484 = vsyncpa [#allocation5], 1 }
 0x703   :  { %6486 = vsyncpa [#allocation5 + $0x1], 1 }

</bundles_post_ra>
